<compile_context>
chip_gen: v7x
topology: tpu7x:2x2x1
jax: 0.10.0
libtpu: 0.0.40
codegen_flags: <defaults>
</compile_context>

<pallas_src>
import functools
import math

import jax
import jax.numpy as jnp
from jax import lax
from jax.experimental import pallas as pl
from jax.experimental.pallas import tpu as pltpu


_N_PER_LAYER = 5   # wqkv_t, wo_t, w1_t, w2_t, vec_slab


# ----------------------------------------------------------------------------
# Fused Pallas kernel: one-hot embedding -> L encoder layers -> padded FC
# ----------------------------------------------------------------------------
def _fused_forward_kernel(B, S, E, H, L, *refs):
    """refs = (ids, emb, <5 refs per layer> * L, fc_w_t, fc_b, out)."""
    ids_ref, emb_ref = refs[0], refs[1]
    fcw_ref = refs[2 + L * _N_PER_LAYER]
    fcb_ref = refs[3 + L * _N_PER_LAYER]
    o_ref = refs[4 + L * _N_PER_LAYER]

    M = B * S
    Dh = E // H
    scale = 1.0 / math.sqrt(Dh)
    bf16 = jnp.bfloat16
    V = emb_ref.shape[0]

    # ---- embedding lookup as an exact one-hot MXU matmul ---------------------------
    ids = ids_ref[...]                                                   # (M, 1) int32
    onehot = (ids == lax.broadcasted_iota(jnp.int32, (M, V), 1)).astype(jnp.float32)
    x = jnp.dot(onehot, emb_ref[...], preferred_element_type=jnp.float32)  # (M, E) f32

    def layernorm(z, w, b):
        # one-pass variance: var = E[z^2] - mu^2 (one rsqrt, one fewer XLU reduce)
        mu = jnp.mean(z, axis=-1, keepdims=True)
        var = jnp.mean(z * z, axis=-1, keepdims=True) - mu * mu
        return (z - mu) * lax.rsqrt(var + 1e-5) * w + b

    for li in range(L):
        base = 2 + li * _N_PER_LAYER
        wqkv_ref, wo_ref, w1_ref, w2_ref, slab_ref = refs[base:base + _N_PER_LAYER]

        # Packed per-layer vectors (single DMA); rows: b1, bqkv, bo, ln1w, ln1b, b2,
        # ln2w, ln2b (zero-padded to dim_ff width).
        slab = slab_ref[...]                       # (8, F) f32
        b1 = slab[0:1, :]
        bqkv = slab[1:2, 0:3 * E]
        bo = slab[2:3, 0:E]
        ln1w = slab[3:4, 0:E]
        ln1b = slab[4:5, 0:E]
        b2 = slab[5:6, 0:E]
        ln2w = slab[6:7, 0:E]
        ln2b = slab[7:8, 0:E]

        # ---- multi-head self-attention: one fused QKV matmul -----------------------
        qkv = jnp.dot(x.astype(bf16), wqkv_ref[...],
                      preferred_element_type=jnp.float32) + bqkv          # (M, 3E) f32

        head_outs = []
        for hi in range(H):                        # static unroll; each head B-batched
            c = hi * Dh
            qh = qkv[:, c:c + Dh].reshape(B, S, Dh).astype(bf16)
            kh = qkv[:, E + c:E + c + Dh].reshape(B, S, Dh).astype(bf16)
            vh = qkv[:, 2 * E + c:2 * E + c + Dh].reshape(B, S, Dh).astype(bf16)
            s = lax.dot_general(qh, kh, (((2,), (2,)), ((0,), (0,))),
                                preferred_element_type=jnp.float32) * scale  # (B,S,S)
            m = jnp.max(s, axis=-1, keepdims=True)
            e = jnp.exp(s - m)
            p = e * pl.reciprocal(jnp.sum(e, axis=-1, keepdims=True), approx=True)
            oh = lax.dot_general(p.astype(bf16), vh, (((2,), (1,)), ((0,), (0,))),
                                 preferred_element_type=jnp.float32)        # (B,S,Dh)
            head_outs.append(oh.reshape(M, Dh))
        attn = jnp.concatenate(head_outs, axis=1)                           # (M, E)

        y = jnp.dot(attn.astype(bf16), wo_ref[...],
                    preferred_element_type=jnp.float32) + bo
        x1 = layernorm(x + y, ln1w, ln1b)

        # ---- feed-forward (bf16 operands, f32 accumulation) ------------------------
        h = jnp.maximum(jnp.dot(x1.astype(bf16), w1_ref[...],
                                preferred_element_type=jnp.float32) + b1, 0.0)
        ff = jnp.dot(h.astype(bf16), w2_ref[...],
                     preferred_element_type=jnp.float32) + b2
        x = layernorm(x1 + ff, ln2w, ln2b)

    # ---- final vocabulary projection (lane-dense: V padded to multiple of 128) -----
    o_ref[...] = (jnp.dot(x.astype(bf16), fcw_ref[...],
                          preferred_element_type=jnp.float32) + fcb_ref[...])


# ----------------------------------------------------------------------------
# One-time weight preparation (outside the per-forward path)
# ----------------------------------------------------------------------------
def prepare_params(params, mm_dtype=jnp.bfloat16):
    """Transpose weights to (in,out), fuse QKV, cast matmul weights to bf16, pack all
    small per-layer vectors into one (8, dim_ff) f32 slab, pad FC to lane-dense width."""
    emb = params['embedding']                       # (V, E) f32, kept exact
    V, E = emb.shape
    Vp = ((V + 127) // 128) * 128                   # lane-dense final projection width
    fc_w_t = jnp.zeros((E, Vp), mm_dtype).at[:, :V].set(params['fc_w'].T.astype(mm_dtype))
    fc_b = jnp.zeros((1, Vp), jnp.float32).at[:, :V].set(params['fc_b'][None, :])

    layers = []
    for p in params['layers']:
        F = p['lin1_w'].shape[0]
        assert F >= 3 * E, "vector slab packing assumes dim_ff >= 3*embed_dim"
        slab = jnp.zeros((8, F), jnp.float32)
        slab = slab.at[0, :].set(p['lin1_b'])
        slab = slab.at[1, :3 * E].set(p['in_proj_b'])
        slab = slab.at[2, :E].set(p['out_proj_b'])
        slab = slab.at[3, :E].set(p['ln1_w'])
        slab = slab.at[4, :E].set(p['ln1_b'])
        slab = slab.at[5, :E].set(p['lin2_b'])
        slab = slab.at[6, :E].set(p['ln2_w'])
        slab = slab.at[7, :E].set(p['ln2_b'])
        layers.append({
            'wqkv_t': p['in_proj_w'].T.astype(mm_dtype),   # (E, 3E)
            'wo_t': p['out_proj_w'].T.astype(mm_dtype),    # (E, E)
            'w1_t': p['lin1_w'].T.astype(mm_dtype),        # (E, F)
            'w2_t': p['lin2_w'].T.astype(mm_dtype),        # (F, E)
            'slab': slab,                                  # (8, F) f32
        })
    return {'embedding': emb, 'fc_w_t': fc_w_t, 'fc_b': fc_b, 'layers': layers}


def _cost_estimate(B, S, E, H, F, V, Vp, L, operands):
    M = B * S
    Dh = E // H
    per_layer = (2 * M * E * 3 * E                 # fused QKV projection
                 + 2 * 2 * B * H * S * S * Dh      # scores + attn @ v
                 + 2 * M * E * E                   # out-projection
                 + 2 * 2 * M * E * F)              # feed-forward
    flops = 2 * M * V * E + L * per_layer + 2 * M * E * Vp
    transcendentals = L * (B * H * S * S + B * H * S + 2 * M)
    bytes_accessed = (sum(int(a.size) * a.dtype.itemsize for a in operands)
                      + M * Vp * 4)
    return pl.CostEstimate(flops=flops, transcendentals=transcendentals,
                           bytes_accessed=bytes_accessed)


# ----------------------------------------------------------------------------
# Forward: one fused pallas_call (embedding gather included)
# ----------------------------------------------------------------------------
def transformer_model_forward(token_ids, prepped, num_heads):
    B, S = token_ids.shape
    emb = prepped['embedding']
    V, E = emb.shape
    L = len(prepped['layers'])
    F = prepped['layers'][0]['w1_t'].shape[1]
    Vp = prepped['fc_w_t'].shape[1]
    M = B * S

    ids2d = token_ids.reshape(M, 1).astype(jnp.int32)

    operands = [ids2d, emb]
    for lp in prepped['layers']:
        operands += [lp['wqkv_t'], lp['wo_t'], lp['w1_t'], lp['w2_t'], lp['slab']]
    operands += [prepped['fc_w_t'], prepped['fc_b']]

    # Single fused invocation: every operand is a whole-array VMEM block (grid=()).
    # v7x note: keep single-TC at these sizes; add a size-2 "parallel" batch grid axis
    # only once B*S spans multiple full (8,128) row blocks.
    logits_pad = pl.pallas_call(
        functools.partial(_fused_forward_kernel, B, S, E, num_heads, L),
        out_shape=jax.ShapeDtypeStruct((M, Vp), jnp.float32),
        cost_estimate=_cost_estimate(B, S, E, num_heads, F, V, Vp, L, operands),
        compiler_params=pltpu.CompilerParams(vmem_limit_bytes=64 * 1024 * 1024),
    )(*operands)
    return logits_pad[:, :V].reshape(B, S, V)


# ----------------------------------------------------------------------------
# Pure-JAX reference (same math, original f32 params) for a sanity check
# ----------------------------------------------------------------------------
def _reference_forward(token_ids, params, num_heads):
    def ln(z, w, b):
        mu = jnp.mean(z, axis=-1, keepdims=True)
        var = jnp.mean((z - mu) ** 2, axis=-1, keepdims=True)
        return (z - mu) / jnp.sqrt(var + 1e-5) * w + b

    x = jnp.take(params['embedding'], token_ids, axis=0)
    B, S, E = x.shape
    H = num_heads
    Dh = E // H
    for p in params['layers']:
        qkv = x @ p['in_proj_w'].T + p['in_proj_b']
        q = qkv[..., :E].reshape(B, S, H, Dh)
        k = qkv[..., E:2 * E].reshape(B, S, H, Dh)
        v = qkv[..., 2 * E:].reshape(B, S, H, Dh)
        s = jnp.einsum('bqhd,bkhd->bhqk', q, k) / math.sqrt(Dh)
        a = jax.nn.softmax(s, axis=-1)
        o = jnp.einsum('bhqk,bkhd->bqhd', a, v).reshape(B, S, E)
        y = o @ p['out_proj_w'].T + p['out_proj_b']
        x1 = ln(x + y, p['ln1_w'], p['ln1_b'])
        h = jax.nn.relu(x1 @ p['lin1_w'].T + p['lin1_b'])
        ff = h @ p['lin2_w'].T + p['lin2_b']
        x = ln(x1 + ff, p['ln2_w'], p['ln2_b'])
    return x @ params['fc_w'].T + params['fc_b']


# ----------------------------------------------------------------------------
# Deterministic parameter init + run
# ----------------------------------------------------------------------------
def _init_params(key, vocab_size, embed_dim, num_layers, dim_ff):
    def nrm(k, shape, std=0.05):
        return (std * jax.random.normal(k, shape)).astype(jnp.float32)

    keys = jax.random.split(key, 2 + num_layers)
    params = {
        'embedding': nrm(keys[0], (vocab_size, embed_dim), std=0.5),
        'fc_w': nrm(keys[1], (vocab_size, embed_dim)),
        'fc_b': jnp.zeros((vocab_size,), jnp.float32),
        'layers': [],
    }
    for li in range(num_layers):
        lk = jax.random.split(keys[2 + li], 8)
        params['layers'].append({
            'in_proj_w': nrm(lk[0], (3 * embed_dim, embed_dim)),
            'in_proj_b': nrm(lk[1], (3 * embed_dim,)),
            'out_proj_w': nrm(lk[2], (embed_dim, embed_dim)),
            'out_proj_b': nrm(lk[3], (embed_dim,)),
            'ln1_w': jnp.ones((embed_dim,), jnp.float32),
            'ln1_b': jnp.zeros((embed_dim,), jnp.float32),
            'lin1_w': nrm(lk[4], (dim_ff, embed_dim)),
            'lin1_b': nrm(lk[5], (dim_ff,)),
            'lin2_w': nrm(lk[6], (embed_dim, dim_ff)),
            'lin2_b': nrm(lk[7], (embed_dim,)),
            'ln2_w': jnp.ones((embed_dim,), jnp.float32),
            'ln2_b': jnp.zeros((embed_dim,), jnp.float32),
        })
    return params


if __name__ == "__main__":
    vocab_size = 64
    embed_dim = 32
    num_heads = 4
    num_layers = 2
    dim_ff = 2048          # PyTorch TransformerEncoderLayer default
    B, S = 2, 8

    key = jax.random.PRNGKey(0)
    k_param, k_ids = jax.random.split(key)
    params = _init_params(k_param, vocab_size, embed_dim, num_layers, dim_ff)
    token_ids = jax.random.randint(k_ids, (B, S), 0, vocab_size, dtype=jnp.int32)

    prepped = prepare_params(params)    # one-time weight prep (fuse/transpose/pack/bf16)

    fwd = jax.jit(transformer_model_forward, static_argnums=2)
    out = jax.block_until_ready(fwd(token_ids, prepped, num_heads))
    assert out.shape == (B, S, vocab_size) and out.dtype == jnp.float32

    ref = _reference_forward(token_ids, params, num_heads)
    if not jnp.allclose(out, ref, rtol=5e-2, atol=5e-2):
        max_err = float(jnp.max(jnp.abs(out - ref)))
        raise AssertionError(f"Pallas output does not match reference (max abs err {max_err})")

    print("KERNEL_OK")
</pallas_src>

<mosaic_0001>
module attributes {stable_mosaic.version = 11 : i64} {
  func.func @_fused_forward_kernel(%arg0: memref<16x1xi32, #tpu.memory_space<vmem>>, %arg1: memref<64x32xf32, #tpu.memory_space<vmem>>, %arg2: memref<32x96xbf16, #tpu.memory_space<vmem>>, %arg3: memref<32x32xbf16, #tpu.memory_space<vmem>>, %arg4: memref<32x2048xbf16, #tpu.memory_space<vmem>>, %arg5: memref<2048x32xbf16, #tpu.memory_space<vmem>>, %arg6: memref<8x2048xf32, #tpu.memory_space<vmem>>, %arg7: memref<32x96xbf16, #tpu.memory_space<vmem>>, %arg8: memref<32x32xbf16, #tpu.memory_space<vmem>>, %arg9: memref<32x2048xbf16, #tpu.memory_space<vmem>>, %arg10: memref<2048x32xbf16, #tpu.memory_space<vmem>>, %arg11: memref<8x2048xf32, #tpu.memory_space<vmem>>, %arg12: memref<32x128xbf16, #tpu.memory_space<vmem>>, %arg13: memref<1x128xf32, #tpu.memory_space<vmem>>, %arg14: memref<16x128xf32, #tpu.memory_space<vmem>>) attributes {dimension_semantics = [], scalar_prefetch = 0 : i64, scratch_operands = 0 : i64, tpu.core_type = #tpu.core_type<tc>} {
    %c0 = arith.constant 0 : index
    %c0_0 = arith.constant 0 : index
    %0 = vector.load %arg0[%c0, %c0_0] : memref<16x1xi32, #tpu.memory_space<vmem>>, vector<16x1xi32>
    %1 = tpu.iota {dimensions = array<i32: 1>} : vector<16x64xi32>
    %2 = vector.broadcast %0 : vector<16x1xi32> to vector<16x64xi32>
    %3 = arith.cmpi eq, %2, %1 : vector<16x64xi32>
    %4 = arith.extui %3 : vector<16x64xi1> to vector<16x64xi32>
    %5 = arith.sitofp %4 : vector<16x64xi32> to vector<16x64xf32>
    %c0_1 = arith.constant 0 : index
    %c0_2 = arith.constant 0 : index
    %6 = vector.load %arg1[%c0_1, %c0_2] : memref<64x32xf32, #tpu.memory_space<vmem>>, vector<64x32xf32>
    %cst = arith.constant dense<0.000000e+00> : vector<16x32xf32>
    %7 = tpu.matmul %5, %6, %cst {dimension_numbers = #tpu.dot_dimension_numbers<[1], [0], [0], [1], [0, 0, 1, 1], [], []>} : vector<16x64xf32>, vector<64x32xf32>, vector<16x32xf32> -> vector<16x32xf32>
    %c0_3 = arith.constant 0 : index
    %c0_4 = arith.constant 0 : index
    %8 = vector.load %arg6[%c0_3, %c0_4] : memref<8x2048xf32, #tpu.memory_space<vmem>>, vector<8x2048xf32>
    %9 = vector.extract_strided_slice %8 {offsets = [0, 0], sizes = [1, 2048], strides = [1, 1]} : vector<8x2048xf32> to vector<1x2048xf32>
    %10 = vector.extract_strided_slice %8 {offsets = [1, 0], sizes = [1, 96], strides = [1, 1]} : vector<8x2048xf32> to vector<1x96xf32>
    %11 = vector.extract_strided_slice %8 {offsets = [2, 0], sizes = [1, 32], strides = [1, 1]} : vector<8x2048xf32> to vector<1x32xf32>
    %12 = vector.extract_strided_slice %8 {offsets = [3, 0], sizes = [1, 32], strides = [1, 1]} : vector<8x2048xf32> to vector<1x32xf32>
    %13 = vector.extract_strided_slice %8 {offsets = [4, 0], sizes = [1, 32], strides = [1, 1]} : vector<8x2048xf32> to vector<1x32xf32>
    %14 = vector.extract_strided_slice %8 {offsets = [5, 0], sizes = [1, 32], strides = [1, 1]} : vector<8x2048xf32> to vector<1x32xf32>
    %15 = vector.extract_strided_slice %8 {offsets = [6, 0], sizes = [1, 32], strides = [1, 1]} : vector<8x2048xf32> to vector<1x32xf32>
    %16 = vector.extract_strided_slice %8 {offsets = [7, 0], sizes = [1, 32], strides = [1, 1]} : vector<8x2048xf32> to vector<1x32xf32>
    %17 = arith.truncf %7 : vector<16x32xf32> to vector<16x32xbf16>
    %c0_5 = arith.constant 0 : index
    %c0_6 = arith.constant 0 : index
    %18 = vector.load %arg2[%c0_5, %c0_6] : memref<32x96xbf16, #tpu.memory_space<vmem>>, vector<32x96xbf16>
    %cst_7 = arith.constant dense<0.000000e+00> : vector<16x96xf32>
    %19 = tpu.matmul %17, %18, %cst_7 {dimension_numbers = #tpu.dot_dimension_numbers<[1], [0], [0], [1], [0, 0, 1, 1], [], []>} : vector<16x32xbf16>, vector<32x96xbf16>, vector<16x96xf32> -> vector<16x96xf32>
    %20 = vector.broadcast %10 : vector<1x96xf32> to vector<16x96xf32>
    %21 = arith.addf %19, %20 : vector<16x96xf32>
    %22 = vector.extract_strided_slice %21 {offsets = [0, 0], sizes = [16, 8], strides = [1, 1]} : vector<16x96xf32> to vector<16x8xf32>
    %23 = vector.shape_cast %22 : vector<16x8xf32> to vector<2x8x8xf32>
    %24 = arith.truncf %23 : vector<2x8x8xf32> to vector<2x8x8xbf16>
    %25 = vector.extract_strided_slice %21 {offsets = [0, 32], sizes = [16, 8], strides = [1, 1]} : vector<16x96xf32> to vector<16x8xf32>
    %26 = vector.shape_cast %25 : vector<16x8xf32> to vector<2x8x8xf32>
    %27 = arith.truncf %26 : vector<2x8x8xf32> to vector<2x8x8xbf16>
    %28 = vector.extract_strided_slice %21 {offsets = [0, 64], sizes = [16, 8], strides = [1, 1]} : vector<16x96xf32> to vector<16x8xf32>
    %29 = vector.shape_cast %28 : vector<16x8xf32> to vector<2x8x8xf32>
    %30 = arith.truncf %29 : vector<2x8x8xf32> to vector<2x8x8xbf16>
    %cst_8 = arith.constant dense<0.000000e+00> : vector<2x8x8xf32>
    %31 = tpu.matmul %24, %27, %cst_8 {dimension_numbers = #tpu.dot_dimension_numbers<[2], [2], [1], [1], [0, 0, 0, 1, 1, 1], [0], [0]>} : vector<2x8x8xbf16>, vector<2x8x8xbf16>, vector<2x8x8xf32> -> vector<2x8x8xf32>
    %cst_9 = arith.constant 0.353553385 : f32
    %32 = vector.broadcast %cst_9 : f32 to vector<2x8x8xf32>
    %33 = arith.mulf %31, %32 : vector<2x8x8xf32>
    %cst_10 = arith.constant dense<0xFF800000> : vector<2x8xf32>
    %34 = vector.multi_reduction <maximumf>, %33, %cst_10 [2] : vector<2x8x8xf32> to vector<2x8xf32>
    %35 = vector.shape_cast %34 : vector<2x8xf32> to vector<2x8x1xf32>
    %36 = vector.broadcast %35 : vector<2x8x1xf32> to vector<2x8x8xf32>
    %37 = arith.subf %33, %36 : vector<2x8x8xf32>
    %38 = math.exp %37 : vector<2x8x8xf32>
    %cst_11 = arith.constant dense<0.000000e+00> : vector<2x8xf32>
    %39 = vector.multi_reduction <add>, %38, %cst_11 [2] : vector<2x8x8xf32> to vector<2x8xf32>
    %40 = vector.shape_cast %39 : vector<2x8xf32> to vector<2x8x1xf32>
    %41 = tpu.reciprocal %40 {approx = true} : vector<2x8x1xf32> -> vector<2x8x1xf32>
    %42 = vector.broadcast %41 : vector<2x8x1xf32> to vector<2x8x8xf32>
    %43 = arith.mulf %38, %42 : vector<2x8x8xf32>
    %44 = arith.truncf %43 : vector<2x8x8xf32> to vector<2x8x8xbf16>
    %cst_12 = arith.constant dense<0.000000e+00> : vector<2x8x8xf32>
    %45 = tpu.matmul %44, %30, %cst_12 {dimension_numbers = #tpu.dot_dimension_numbers<[2], [1], [1], [2], [0, 0, 0, 1, 1, 2], [0], [0]>} : vector<2x8x8xbf16>, vector<2x8x8xbf16>, vector<2x8x8xf32> -> vector<2x8x8xf32>
    %46 = vector.shape_cast %45 : vector<2x8x8xf32> to vector<16x8xf32>
    %47 = vector.extract_strided_slice %21 {offsets = [0, 8], sizes = [16, 8], strides = [1, 1]} : vector<16x96xf32> to vector<16x8xf32>
    %48 = vector.shape_cast %47 : vector<16x8xf32> to vector<2x8x8xf32>
    %49 = arith.truncf %48 : vector<2x8x8xf32> to vector<2x8x8xbf16>
    %50 = vector.extract_strided_slice %21 {offsets = [0, 40], sizes = [16, 8], strides = [1, 1]} : vector<16x96xf32> to vector<16x8xf32>
    %51 = vector.shape_cast %50 : vector<16x8xf32> to vector<2x8x8xf32>
    %52 = arith.truncf %51 : vector<2x8x8xf32> to vector<2x8x8xbf16>
    %53 = vector.extract_strided_slice %21 {offsets = [0, 72], sizes = [16, 8], strides = [1, 1]} : vector<16x96xf32> to vector<16x8xf32>
    %54 = vector.shape_cast %53 : vector<16x8xf32> to vector<2x8x8xf32>
    %55 = arith.truncf %54 : vector<2x8x8xf32> to vector<2x8x8xbf16>
    %cst_13 = arith.constant dense<0.000000e+00> : vector<2x8x8xf32>
    %56 = tpu.matmul %49, %52, %cst_13 {dimension_numbers = #tpu.dot_dimension_numbers<[2], [2], [1], [1], [0, 0, 0, 1, 1, 1], [0], [0]>} : vector<2x8x8xbf16>, vector<2x8x8xbf16>, vector<2x8x8xf32> -> vector<2x8x8xf32>
    %cst_14 = arith.constant 0.353553385 : f32
    %57 = vector.broadcast %cst_14 : f32 to vector<2x8x8xf32>
    %58 = arith.mulf %56, %57 : vector<2x8x8xf32>
    %cst_15 = arith.constant dense<0xFF800000> : vector<2x8xf32>
    %59 = vector.multi_reduction <maximumf>, %58, %cst_15 [2] : vector<2x8x8xf32> to vector<2x8xf32>
    %60 = vector.shape_cast %59 : vector<2x8xf32> to vector<2x8x1xf32>
    %61 = vector.broadcast %60 : vector<2x8x1xf32> to vector<2x8x8xf32>
    %62 = arith.subf %58, %61 : vector<2x8x8xf32>
    %63 = math.exp %62 : vector<2x8x8xf32>
    %cst_16 = arith.constant dense<0.000000e+00> : vector<2x8xf32>
    %64 = vector.multi_reduction <add>, %63, %cst_16 [2] : vector<2x8x8xf32> to vector<2x8xf32>
    %65 = vector.shape_cast %64 : vector<2x8xf32> to vector<2x8x1xf32>
    %66 = tpu.reciprocal %65 {approx = true} : vector<2x8x1xf32> -> vector<2x8x1xf32>
    %67 = vector.broadcast %66 : vector<2x8x1xf32> to vector<2x8x8xf32>
    %68 = arith.mulf %63, %67 : vector<2x8x8xf32>
    %69 = arith.truncf %68 : vector<2x8x8xf32> to vector<2x8x8xbf16>
    %cst_17 = arith.constant dense<0.000000e+00> : vector<2x8x8xf32>
    %70 = tpu.matmul %69, %55, %cst_17 {dimension_numbers = #tpu.dot_dimension_numbers<[2], [1], [1], [2], [0, 0, 0, 1, 1, 2], [0], [0]>} : vector<2x8x8xbf16>, vector<2x8x8xbf16>, vector<2x8x8xf32> -> vector<2x8x8xf32>
    %71 = vector.shape_cast %70 : vector<2x8x8xf32> to vector<16x8xf32>
    %72 = vector.extract_strided_slice %21 {offsets = [0, 16], sizes = [16, 8], strides = [1, 1]} : vector<16x96xf32> to vector<16x8xf32>
    %73 = vector.shape_cast %72 : vector<16x8xf32> to vector<2x8x8xf32>
    %74 = arith.truncf %73 : vector<2x8x8xf32> to vector<2x8x8xbf16>
    %75 = vector.extract_strided_slice %21 {offsets = [0, 48], sizes = [16, 8], strides = [1, 1]} : vector<16x96xf32> to vector<16x8xf32>
    %76 = vector.shape_cast %75 : vector<16x8xf32> to vector<2x8x8xf32>
    %77 = arith.truncf %76 : vector<2x8x8xf32> to vector<2x8x8xbf16>
    %78 = vector.extract_strided_slice %21 {offsets = [0, 80], sizes = [16, 8], strides = [1, 1]} : vector<16x96xf32> to vector<16x8xf32>
    %79 = vector.shape_cast %78 : vector<16x8xf32> to vector<2x8x8xf32>
    %80 = arith.truncf %79 : vector<2x8x8xf32> to vector<2x8x8xbf16>
    %cst_18 = arith.constant dense<0.000000e+00> : vector<2x8x8xf32>
    %81 = tpu.matmul %74, %77, %cst_18 {dimension_numbers = #tpu.dot_dimension_numbers<[2], [2], [1], [1], [0, 0, 0, 1, 1, 1], [0], [0]>} : vector<2x8x8xbf16>, vector<2x8x8xbf16>, vector<2x8x8xf32> -> vector<2x8x8xf32>
    %cst_19 = arith.constant 0.353553385 : f32
    %82 = vector.broadcast %cst_19 : f32 to vector<2x8x8xf32>
    %83 = arith.mulf %81, %82 : vector<2x8x8xf32>
    %cst_20 = arith.constant dense<0xFF800000> : vector<2x8xf32>
    %84 = vector.multi_reduction <maximumf>, %83, %cst_20 [2] : vector<2x8x8xf32> to vector<2x8xf32>
    %85 = vector.shape_cast %84 : vector<2x8xf32> to vector<2x8x1xf32>
    %86 = vector.broadcast %85 : vector<2x8x1xf32> to vector<2x8x8xf32>
    %87 = arith.subf %83, %86 : vector<2x8x8xf32>
    %88 = math.exp %87 : vector<2x8x8xf32>
    %cst_21 = arith.constant dense<0.000000e+00> : vector<2x8xf32>
    %89 = vector.multi_reduction <add>, %88, %cst_21 [2] : vector<2x8x8xf32> to vector<2x8xf32>
    %90 = vector.shape_cast %89 : vector<2x8xf32> to vector<2x8x1xf32>
    %91 = tpu.reciprocal %90 {approx = true} : vector<2x8x1xf32> -> vector<2x8x1xf32>
    %92 = vector.broadcast %91 : vector<2x8x1xf32> to vector<2x8x8xf32>
    %93 = arith.mulf %88, %92 : vector<2x8x8xf32>
    %94 = arith.truncf %93 : vector<2x8x8xf32> to vector<2x8x8xbf16>
    %cst_22 = arith.constant dense<0.000000e+00> : vector<2x8x8xf32>
    %95 = tpu.matmul %94, %80, %cst_22 {dimension_numbers = #tpu.dot_dimension_numbers<[2], [1], [1], [2], [0, 0, 0, 1, 1, 2], [0], [0]>} : vector<2x8x8xbf16>, vector<2x8x8xbf16>, vector<2x8x8xf32> -> vector<2x8x8xf32>
    %96 = vector.shape_cast %95 : vector<2x8x8xf32> to vector<16x8xf32>
    %97 = vector.extract_strided_slice %21 {offsets = [0, 24], sizes = [16, 8], strides = [1, 1]} : vector<16x96xf32> to vector<16x8xf32>
    %98 = vector.shape_cast %97 : vector<16x8xf32> to vector<2x8x8xf32>
    %99 = arith.truncf %98 : vector<2x8x8xf32> to vector<2x8x8xbf16>
    %100 = vector.extract_strided_slice %21 {offsets = [0, 56], sizes = [16, 8], strides = [1, 1]} : vector<16x96xf32> to vector<16x8xf32>
    %101 = vector.shape_cast %100 : vector<16x8xf32> to vector<2x8x8xf32>
    %102 = arith.truncf %101 : vector<2x8x8xf32> to vector<2x8x8xbf16>
    %103 = vector.extract_strided_slice %21 {offsets = [0, 88], sizes = [16, 8], strides = [1, 1]} : vector<16x96xf32> to vector<16x8xf32>
    %104 = vector.shape_cast %103 : vector<16x8xf32> to vector<2x8x8xf32>
    %105 = arith.truncf %104 : vector<2x8x8xf32> to vector<2x8x8xbf16>
    %cst_23 = arith.constant dense<0.000000e+00> : vector<2x8x8xf32>
    %106 = tpu.matmul %99, %102, %cst_23 {dimension_numbers = #tpu.dot_dimension_numbers<[2], [2], [1], [1], [0, 0, 0, 1, 1, 1], [0], [0]>} : vector<2x8x8xbf16>, vector<2x8x8xbf16>, vector<2x8x8xf32> -> vector<2x8x8xf32>
    %cst_24 = arith.constant 0.353553385 : f32
    %107 = vector.broadcast %cst_24 : f32 to vector<2x8x8xf32>
    %108 = arith.mulf %106, %107 : vector<2x8x8xf32>
    %cst_25 = arith.constant dense<0xFF800000> : vector<2x8xf32>
    %109 = vector.multi_reduction <maximumf>, %108, %cst_25 [2] : vector<2x8x8xf32> to vector<2x8xf32>
    %110 = vector.shape_cast %109 : vector<2x8xf32> to vector<2x8x1xf32>
    %111 = vector.broadcast %110 : vector<2x8x1xf32> to vector<2x8x8xf32>
    %112 = arith.subf %108, %111 : vector<2x8x8xf32>
    %113 = math.exp %112 : vector<2x8x8xf32>
    %cst_26 = arith.constant dense<0.000000e+00> : vector<2x8xf32>
    %114 = vector.multi_reduction <add>, %113, %cst_26 [2] : vector<2x8x8xf32> to vector<2x8xf32>
    %115 = vector.shape_cast %114 : vector<2x8xf32> to vector<2x8x1xf32>
    %116 = tpu.reciprocal %115 {approx = true} : vector<2x8x1xf32> -> vector<2x8x1xf32>
    %117 = vector.broadcast %116 : vector<2x8x1xf32> to vector<2x8x8xf32>
    %118 = arith.mulf %113, %117 : vector<2x8x8xf32>
    %119 = arith.truncf %118 : vector<2x8x8xf32> to vector<2x8x8xbf16>
    %cst_27 = arith.constant dense<0.000000e+00> : vector<2x8x8xf32>
    %120 = tpu.matmul %119, %105, %cst_27 {dimension_numbers = #tpu.dot_dimension_numbers<[2], [1], [1], [2], [0, 0, 0, 1, 1, 2], [0], [0]>} : vector<2x8x8xbf16>, vector<2x8x8xbf16>, vector<2x8x8xf32> -> vector<2x8x8xf32>
    %121 = vector.shape_cast %120 : vector<2x8x8xf32> to vector<16x8xf32>
    %122 = tpu.concatenate %46, %71, %96, %121 in 1 : vector<16x8xf32>, vector<16x8xf32>, vector<16x8xf32>, vector<16x8xf32> -> vector<16x32xf32>
    %123 = arith.truncf %122 : vector<16x32xf32> to vector<16x32xbf16>
    %c0_28 = arith.constant 0 : index
    %c0_29 = arith.constant 0 : index
    %124 = vector.load %arg3[%c0_28, %c0_29] : memref<32x32xbf16, #tpu.memory_space<vmem>>, vector<32x32xbf16>
    %cst_30 = arith.constant dense<0.000000e+00> : vector<16x32xf32>
    %125 = tpu.matmul %123, %124, %cst_30 {dimension_numbers = #tpu.dot_dimension_numbers<[1], [0], [0], [1], [0, 0, 1, 1], [], []>} : vector<16x32xbf16>, vector<32x32xbf16>, vector<16x32xf32> -> vector<16x32xf32>
    %126 = vector.broadcast %11 : vector<1x32xf32> to vector<16x32xf32>
    %127 = arith.addf %125, %126 : vector<16x32xf32>
    %128 = arith.addf %7, %127 : vector<16x32xf32>
    %cst_31 = arith.constant dense<0.000000e+00> : vector<16xf32>
    %129 = vector.multi_reduction <add>, %128, %cst_31 [1] : vector<16x32xf32> to vector<16xf32>
    %130 = vector.shape_cast %129 : vector<16xf32> to vector<16x1xf32>
    %cst_32 = arith.constant 3.200000e+01 : f32
    %131 = vector.broadcast %cst_32 : f32 to vector<16x1xf32>
    %132 = arith.divf %130, %131 : vector<16x1xf32>
    %133 = arith.mulf %128, %128 : vector<16x32xf32>
    %cst_33 = arith.constant dense<0.000000e+00> : vector<16xf32>
    %134 = vector.multi_reduction <add>, %133, %cst_33 [1] : vector<16x32xf32> to vector<16xf32>
    %135 = vector.shape_cast %134 : vector<16xf32> to vector<16x1xf32>
    %cst_34 = arith.constant 3.200000e+01 : f32
    %136 = vector.broadcast %cst_34 : f32 to vector<16x1xf32>
    %137 = arith.divf %135, %136 : vector<16x1xf32>
    %138 = arith.mulf %132, %132 : vector<16x1xf32>
    %139 = arith.subf %137, %138 : vector<16x1xf32>
    %140 = vector.broadcast %132 : vector<16x1xf32> to vector<16x32xf32>
    %141 = arith.subf %128, %140 : vector<16x32xf32>
    %cst_35 = arith.constant 9.99999974E-6 : f32
    %142 = vector.broadcast %cst_35 : f32 to vector<16x1xf32>
    %143 = arith.addf %139, %142 : vector<16x1xf32>
    %144 = math.rsqrt %143 : vector<16x1xf32>
    %145 = vector.broadcast %144 : vector<16x1xf32> to vector<16x32xf32>
    %146 = arith.mulf %141, %145 : vector<16x32xf32>
    %147 = vector.broadcast %12 : vector<1x32xf32> to vector<16x32xf32>
    %148 = arith.mulf %146, %147 : vector<16x32xf32>
    %149 = vector.broadcast %13 : vector<1x32xf32> to vector<16x32xf32>
    %150 = arith.addf %148, %149 : vector<16x32xf32>
    %151 = arith.truncf %150 : vector<16x32xf32> to vector<16x32xbf16>
    %c0_36 = arith.constant 0 : index
    %c0_37 = arith.constant 0 : index
    %152 = vector.load %arg4[%c0_36, %c0_37] : memref<32x2048xbf16, #tpu.memory_space<vmem>>, vector<32x2048xbf16>
    %cst_38 = arith.constant dense<0.000000e+00> : vector<16x2048xf32>
    %153 = tpu.matmul %151, %152, %cst_38 {dimension_numbers = #tpu.dot_dimension_numbers<[1], [0], [0], [1], [0, 0, 1, 1], [], []>} : vector<16x32xbf16>, vector<32x2048xbf16>, vector<16x2048xf32> -> vector<16x2048xf32>
    %154 = vector.broadcast %9 : vector<1x2048xf32> to vector<16x2048xf32>
    %155 = arith.addf %153, %154 : vector<16x2048xf32>
    %cst_39 = arith.constant 0.000000e+00 : f32
    %156 = vector.broadcast %cst_39 : f32 to vector<16x2048xf32>
    %157 = arith.maximumf %155, %156 : vector<16x2048xf32>
    %158 = arith.truncf %157 : vector<16x2048xf32> to vector<16x2048xbf16>
    %c0_40 = arith.constant 0 : index
    %c0_41 = arith.constant 0 : index
    %159 = vector.load %arg5[%c0_40, %c0_41] : memref<2048x32xbf16, #tpu.memory_space<vmem>>, vector<2048x32xbf16>
    %cst_42 = arith.constant dense<0.000000e+00> : vector<16x32xf32>
    %160 = tpu.matmul %158, %159, %cst_42 {dimension_numbers = #tpu.dot_dimension_numbers<[1], [0], [0], [1], [0, 0, 1, 1], [], []>} : vector<16x2048xbf16>, vector<2048x32xbf16>, vector<16x32xf32> -> vector<16x32xf32>
    %161 = vector.broadcast %14 : vector<1x32xf32> to vector<16x32xf32>
    %162 = arith.addf %160, %161 : vector<16x32xf32>
    %163 = arith.addf %150, %162 : vector<16x32xf32>
    %cst_43 = arith.constant dense<0.000000e+00> : vector<16xf32>
    %164 = vector.multi_reduction <add>, %163, %cst_43 [1] : vector<16x32xf32> to vector<16xf32>
    %165 = vector.shape_cast %164 : vector<16xf32> to vector<16x1xf32>
    %cst_44 = arith.constant 3.200000e+01 : f32
    %166 = vector.broadcast %cst_44 : f32 to vector<16x1xf32>
    %167 = arith.divf %165, %166 : vector<16x1xf32>
    %168 = arith.mulf %163, %163 : vector<16x32xf32>
    %cst_45 = arith.constant dense<0.000000e+00> : vector<16xf32>
    %169 = vector.multi_reduction <add>, %168, %cst_45 [1] : vector<16x32xf32> to vector<16xf32>
    %170 = vector.shape_cast %169 : vector<16xf32> to vector<16x1xf32>
    %cst_46 = arith.constant 3.200000e+01 : f32
    %171 = vector.broadcast %cst_46 : f32 to vector<16x1xf32>
    %172 = arith.divf %170, %171 : vector<16x1xf32>
    %173 = arith.mulf %167, %167 : vector<16x1xf32>
    %174 = arith.subf %172, %173 : vector<16x1xf32>
    %175 = vector.broadcast %167 : vector<16x1xf32> to vector<16x32xf32>
    %176 = arith.subf %163, %175 : vector<16x32xf32>
    %cst_47 = arith.constant 9.99999974E-6 : f32
    %177 = vector.broadcast %cst_47 : f32 to vector<16x1xf32>
    %178 = arith.addf %174, %177 : vector<16x1xf32>
    %179 = math.rsqrt %178 : vector<16x1xf32>
    %180 = vector.broadcast %179 : vector<16x1xf32> to vector<16x32xf32>
    %181 = arith.mulf %176, %180 : vector<16x32xf32>
    %182 = vector.broadcast %15 : vector<1x32xf32> to vector<16x32xf32>
    %183 = arith.mulf %181, %182 : vector<16x32xf32>
    %184 = vector.broadcast %16 : vector<1x32xf32> to vector<16x32xf32>
    %185 = arith.addf %183, %184 : vector<16x32xf32>
    %c0_48 = arith.constant 0 : index
    %c0_49 = arith.constant 0 : index
    %186 = vector.load %arg11[%c0_48, %c0_49] : memref<8x2048xf32, #tpu.memory_space<vmem>>, vector<8x2048xf32>
    %187 = vector.extract_strided_slice %186 {offsets = [0, 0], sizes = [1, 2048], strides = [1, 1]} : vector<8x2048xf32> to vector<1x2048xf32>
    %188 = vector.extract_strided_slice %186 {offsets = [1, 0], sizes = [1, 96], strides = [1, 1]} : vector<8x2048xf32> to vector<1x96xf32>
    %189 = vector.extract_strided_slice %186 {offsets = [2, 0], sizes = [1, 32], strides = [1, 1]} : vector<8x2048xf32> to vector<1x32xf32>
    %190 = vector.extract_strided_slice %186 {offsets = [3, 0], sizes = [1, 32], strides = [1, 1]} : vector<8x2048xf32> to vector<1x32xf32>
    %191 = vector.extract_strided_slice %186 {offsets = [4, 0], sizes = [1, 32], strides = [1, 1]} : vector<8x2048xf32> to vector<1x32xf32>
    %192 = vector.extract_strided_slice %186 {offsets = [5, 0], sizes = [1, 32], strides = [1, 1]} : vector<8x2048xf32> to vector<1x32xf32>
    %193 = vector.extract_strided_slice %186 {offsets = [6, 0], sizes = [1, 32], strides = [1, 1]} : vector<8x2048xf32> to vector<1x32xf32>
    %194 = vector.extract_strided_slice %186 {offsets = [7, 0], sizes = [1, 32], strides = [1, 1]} : vector<8x2048xf32> to vector<1x32xf32>
    %195 = arith.truncf %185 : vector<16x32xf32> to vector<16x32xbf16>
    %c0_50 = arith.constant 0 : index
    %c0_51 = arith.constant 0 : index
    %196 = vector.load %arg7[%c0_50, %c0_51] : memref<32x96xbf16, #tpu.memory_space<vmem>>, vector<32x96xbf16>
    %cst_52 = arith.constant dense<0.000000e+00> : vector<16x96xf32>
    %197 = tpu.matmul %195, %196, %cst_52 {dimension_numbers = #tpu.dot_dimension_numbers<[1], [0], [0], [1], [0, 0, 1, 1], [], []>} : vector<16x32xbf16>, vector<32x96xbf16>, vector<16x96xf32> -> vector<16x96xf32>
    %198 = vector.broadcast %188 : vector<1x96xf32> to vector<16x96xf32>
    %199 = arith.addf %197, %198 : vector<16x96xf32>
    %200 = vector.extract_strided_slice %199 {offsets = [0, 0], sizes = [16, 8], strides = [1, 1]} : vector<16x96xf32> to vector<16x8xf32>
    %201 = vector.shape_cast %200 : vector<16x8xf32> to vector<2x8x8xf32>
    %202 = arith.truncf %201 : vector<2x8x8xf32> to vector<2x8x8xbf16>
    %203 = vector.extract_strided_slice %199 {offsets = [0, 32], sizes = [16, 8], strides = [1, 1]} : vector<16x96xf32> to vector<16x8xf32>
    %204 = vector.shape_cast %203 : vector<16x8xf32> to vector<2x8x8xf32>
    %205 = arith.truncf %204 : vector<2x8x8xf32> to vector<2x8x8xbf16>
    %206 = vector.extract_strided_slice %199 {offsets = [0, 64], sizes = [16, 8], strides = [1, 1]} : vector<16x96xf32> to vector<16x8xf32>
    %207 = vector.shape_cast %206 : vector<16x8xf32> to vector<2x8x8xf32>
    %208 = arith.truncf %207 : vector<2x8x8xf32> to vector<2x8x8xbf16>
    %cst_53 = arith.constant dense<0.000000e+00> : vector<2x8x8xf32>
    %209 = tpu.matmul %202, %205, %cst_53 {dimension_numbers = #tpu.dot_dimension_numbers<[2], [2], [1], [1], [0, 0, 0, 1, 1, 1], [0], [0]>} : vector<2x8x8xbf16>, vector<2x8x8xbf16>, vector<2x8x8xf32> -> vector<2x8x8xf32>
    %cst_54 = arith.constant 0.353553385 : f32
    %210 = vector.broadcast %cst_54 : f32 to vector<2x8x8xf32>
    %211 = arith.mulf %209, %210 : vector<2x8x8xf32>
    %cst_55 = arith.constant dense<0xFF800000> : vector<2x8xf32>
    %212 = vector.multi_reduction <maximumf>, %211, %cst_55 [2] : vector<2x8x8xf32> to vector<2x8xf32>
    %213 = vector.shape_cast %212 : vector<2x8xf32> to vector<2x8x1xf32>
    %214 = vector.broadcast %213 : vector<2x8x1xf32> to vector<2x8x8xf32>
    %215 = arith.subf %211, %214 : vector<2x8x8xf32>
    %216 = math.exp %215 : vector<2x8x8xf32>
    %cst_56 = arith.constant dense<0.000000e+00> : vector<2x8xf32>
    %217 = vector.multi_reduction <add>, %216, %cst_56 [2] : vector<2x8x8xf32> to vector<2x8xf32>
    %218 = vector.shape_cast %217 : vector<2x8xf32> to vector<2x8x1xf32>
    %219 = tpu.reciprocal %218 {approx = true} : vector<2x8x1xf32> -> vector<2x8x1xf32>
    %220 = vector.broadcast %219 : vector<2x8x1xf32> to vector<2x8x8xf32>
    %221 = arith.mulf %216, %220 : vector<2x8x8xf32>
    %222 = arith.truncf %221 : vector<2x8x8xf32> to vector<2x8x8xbf16>
    %cst_57 = arith.constant dense<0.000000e+00> : vector<2x8x8xf32>
    %223 = tpu.matmul %222, %208, %cst_57 {dimension_numbers = #tpu.dot_dimension_numbers<[2], [1], [1], [2], [0, 0, 0, 1, 1, 2], [0], [0]>} : vector<2x8x8xbf16>, vector<2x8x8xbf16>, vector<2x8x8xf32> -> vector<2x8x8xf32>
    %224 = vector.shape_cast %223 : vector<2x8x8xf32> to vector<16x8xf32>
    %225 = vector.extract_strided_slice %199 {offsets = [0, 8], sizes = [16, 8], strides = [1, 1]} : vector<16x96xf32> to vector<16x8xf32>
    %226 = vector.shape_cast %225 : vector<16x8xf32> to vector<2x8x8xf32>
    %227 = arith.truncf %226 : vector<2x8x8xf32> to vector<2x8x8xbf16>
    %228 = vector.extract_strided_slice %199 {offsets = [0, 40], sizes = [16, 8], strides = [1, 1]} : vector<16x96xf32> to vector<16x8xf32>
    %229 = vector.shape_cast %228 : vector<16x8xf32> to vector<2x8x8xf32>
    %230 = arith.truncf %229 : vector<2x8x8xf32> to vector<2x8x8xbf16>
    %231 = vector.extract_strided_slice %199 {offsets = [0, 72], sizes = [16, 8], strides = [1, 1]} : vector<16x96xf32> to vector<16x8xf32>
    %232 = vector.shape_cast %231 : vector<16x8xf32> to vector<2x8x8xf32>
    %233 = arith.truncf %232 : vector<2x8x8xf32> to vector<2x8x8xbf16>
    %cst_58 = arith.constant dense<0.000000e+00> : vector<2x8x8xf32>
    %234 = tpu.matmul %227, %230, %cst_58 {dimension_numbers = #tpu.dot_dimension_numbers<[2], [2], [1], [1], [0, 0, 0, 1, 1, 1], [0], [0]>} : vector<2x8x8xbf16>, vector<2x8x8xbf16>, vector<2x8x8xf32> -> vector<2x8x8xf32>
    %cst_59 = arith.constant 0.353553385 : f32
    %235 = vector.broadcast %cst_59 : f32 to vector<2x8x8xf32>
    %236 = arith.mulf %234, %235 : vector<2x8x8xf32>
    %cst_60 = arith.constant dense<0xFF800000> : vector<2x8xf32>
    %237 = vector.multi_reduction <maximumf>, %236, %cst_60 [2] : vector<2x8x8xf32> to vector<2x8xf32>
    %238 = vector.shape_cast %237 : vector<2x8xf32> to vector<2x8x1xf32>
    %239 = vector.broadcast %238 : vector<2x8x1xf32> to vector<2x8x8xf32>
    %240 = arith.subf %236, %239 : vector<2x8x8xf32>
    %241 = math.exp %240 : vector<2x8x8xf32>
    %cst_61 = arith.constant dense<0.000000e+00> : vector<2x8xf32>
    %242 = vector.multi_reduction <add>, %241, %cst_61 [2] : vector<2x8x8xf32> to vector<2x8xf32>
    %243 = vector.shape_cast %242 : vector<2x8xf32> to vector<2x8x1xf32>
    %244 = tpu.reciprocal %243 {approx = true} : vector<2x8x1xf32> -> vector<2x8x1xf32>
    %245 = vector.broadcast %244 : vector<2x8x1xf32> to vector<2x8x8xf32>
    %246 = arith.mulf %241, %245 : vector<2x8x8xf32>
    %247 = arith.truncf %246 : vector<2x8x8xf32> to vector<2x8x8xbf16>
    %cst_62 = arith.constant dense<0.000000e+00> : vector<2x8x8xf32>
    %248 = tpu.matmul %247, %233, %cst_62 {dimension_numbers = #tpu.dot_dimension_numbers<[2], [1], [1], [2], [0, 0, 0, 1, 1, 2], [0], [0]>} : vector<2x8x8xbf16>, vector<2x8x8xbf16>, vector<2x8x8xf32> -> vector<2x8x8xf32>
    %249 = vector.shape_cast %248 : vector<2x8x8xf32> to vector<16x8xf32>
    %250 = vector.extract_strided_slice %199 {offsets = [0, 16], sizes = [16, 8], strides = [1, 1]} : vector<16x96xf32> to vector<16x8xf32>
    %251 = vector.shape_cast %250 : vector<16x8xf32> to vector<2x8x8xf32>
    %252 = arith.truncf %251 : vector<2x8x8xf32> to vector<2x8x8xbf16>
    %253 = vector.extract_strided_slice %199 {offsets = [0, 48], sizes = [16, 8], strides = [1, 1]} : vector<16x96xf32> to vector<16x8xf32>
    %254 = vector.shape_cast %253 : vector<16x8xf32> to vector<2x8x8xf32>
    %255 = arith.truncf %254 : vector<2x8x8xf32> to vector<2x8x8xbf16>
    %256 = vector.extract_strided_slice %199 {offsets = [0, 80], sizes = [16, 8], strides = [1, 1]} : vector<16x96xf32> to vector<16x8xf32>
    %257 = vector.shape_cast %256 : vector<16x8xf32> to vector<2x8x8xf32>
    %258 = arith.truncf %257 : vector<2x8x8xf32> to vector<2x8x8xbf16>
    %cst_63 = arith.constant dense<0.000000e+00> : vector<2x8x8xf32>
    %259 = tpu.matmul %252, %255, %cst_63 {dimension_numbers = #tpu.dot_dimension_numbers<[2], [2], [1], [1], [0, 0, 0, 1, 1, 1], [0], [0]>} : vector<2x8x8xbf16>, vector<2x8x8xbf16>, vector<2x8x8xf32> -> vector<2x8x8xf32>
    %cst_64 = arith.constant 0.353553385 : f32
    %260 = vector.broadcast %cst_64 : f32 to vector<2x8x8xf32>
    %261 = arith.mulf %259, %260 : vector<2x8x8xf32>
    %cst_65 = arith.constant dense<0xFF800000> : vector<2x8xf32>
    %262 = vector.multi_reduction <maximumf>, %261, %cst_65 [2] : vector<2x8x8xf32> to vector<2x8xf32>
    %263 = vector.shape_cast %262 : vector<2x8xf32> to vector<2x8x1xf32>
    %264 = vector.broadcast %263 : vector<2x8x1xf32> to vector<2x8x8xf32>
    %265 = arith.subf %261, %264 : vector<2x8x8xf32>
    %266 = math.exp %265 : vector<2x8x8xf32>
    %cst_66 = arith.constant dense<0.000000e+00> : vector<2x8xf32>
    %267 = vector.multi_reduction <add>, %266, %cst_66 [2] : vector<2x8x8xf32> to vector<2x8xf32>
    %268 = vector.shape_cast %267 : vector<2x8xf32> to vector<2x8x1xf32>
    %269 = tpu.reciprocal %268 {approx = true} : vector<2x8x1xf32> -> vector<2x8x1xf32>
    %270 = vector.broadcast %269 : vector<2x8x1xf32> to vector<2x8x8xf32>
    %271 = arith.mulf %266, %270 : vector<2x8x8xf32>
    %272 = arith.truncf %271 : vector<2x8x8xf32> to vector<2x8x8xbf16>
    %cst_67 = arith.constant dense<0.000000e+00> : vector<2x8x8xf32>
    %273 = tpu.matmul %272, %258, %cst_67 {dimension_numbers = #tpu.dot_dimension_numbers<[2], [1], [1], [2], [0, 0, 0, 1, 1, 2], [0], [0]>} : vector<2x8x8xbf16>, vector<2x8x8xbf16>, vector<2x8x8xf32> -> vector<2x8x8xf32>
    %274 = vector.shape_cast %273 : vector<2x8x8xf32> to vector<16x8xf32>
    %275 = vector.extract_strided_slice %199 {offsets = [0, 24], sizes = [16, 8], strides = [1, 1]} : vector<16x96xf32> to vector<16x8xf32>
    %276 = vector.shape_cast %275 : vector<16x8xf32> to vector<2x8x8xf32>
    %277 = arith.truncf %276 : vector<2x8x8xf32> to vector<2x8x8xbf16>
    %278 = vector.extract_strided_slice %199 {offsets = [0, 56], sizes = [16, 8], strides = [1, 1]} : vector<16x96xf32> to vector<16x8xf32>
    %279 = vector.shape_cast %278 : vector<16x8xf32> to vector<2x8x8xf32>
    %280 = arith.truncf %279 : vector<2x8x8xf32> to vector<2x8x8xbf16>
    %281 = vector.extract_strided_slice %199 {offsets = [0, 88], sizes = [16, 8], strides = [1, 1]} : vector<16x96xf32> to vector<16x8xf32>
    %282 = vector.shape_cast %281 : vector<16x8xf32> to vector<2x8x8xf32>
    %283 = arith.truncf %282 : vector<2x8x8xf32> to vector<2x8x8xbf16>
    %cst_68 = arith.constant dense<0.000000e+00> : vector<2x8x8xf32>
    %284 = tpu.matmul %277, %280, %cst_68 {dimension_numbers = #tpu.dot_dimension_numbers<[2], [2], [1], [1], [0, 0, 0, 1, 1, 1], [0], [0]>} : vector<2x8x8xbf16>, vector<2x8x8xbf16>, vector<2x8x8xf32> -> vector<2x8x8xf32>
    %cst_69 = arith.constant 0.353553385 : f32
    %285 = vector.broadcast %cst_69 : f32 to vector<2x8x8xf32>
    %286 = arith.mulf %284, %285 : vector<2x8x8xf32>
    %cst_70 = arith.constant dense<0xFF800000> : vector<2x8xf32>
    %287 = vector.multi_reduction <maximumf>, %286, %cst_70 [2] : vector<2x8x8xf32> to vector<2x8xf32>
    %288 = vector.shape_cast %287 : vector<2x8xf32> to vector<2x8x1xf32>
    %289 = vector.broadcast %288 : vector<2x8x1xf32> to vector<2x8x8xf32>
    %290 = arith.subf %286, %289 : vector<2x8x8xf32>
    %291 = math.exp %290 : vector<2x8x8xf32>
    %cst_71 = arith.constant dense<0.000000e+00> : vector<2x8xf32>
    %292 = vector.multi_reduction <add>, %291, %cst_71 [2] : vector<2x8x8xf32> to vector<2x8xf32>
    %293 = vector.shape_cast %292 : vector<2x8xf32> to vector<2x8x1xf32>
    %294 = tpu.reciprocal %293 {approx = true} : vector<2x8x1xf32> -> vector<2x8x1xf32>
    %295 = vector.broadcast %294 : vector<2x8x1xf32> to vector<2x8x8xf32>
    %296 = arith.mulf %291, %295 : vector<2x8x8xf32>
    %297 = arith.truncf %296 : vector<2x8x8xf32> to vector<2x8x8xbf16>
    %cst_72 = arith.constant dense<0.000000e+00> : vector<2x8x8xf32>
    %298 = tpu.matmul %297, %283, %cst_72 {dimension_numbers = #tpu.dot_dimension_numbers<[2], [1], [1], [2], [0, 0, 0, 1, 1, 2], [0], [0]>} : vector<2x8x8xbf16>, vector<2x8x8xbf16>, vector<2x8x8xf32> -> vector<2x8x8xf32>
    %299 = vector.shape_cast %298 : vector<2x8x8xf32> to vector<16x8xf32>
    %300 = tpu.concatenate %224, %249, %274, %299 in 1 : vector<16x8xf32>, vector<16x8xf32>, vector<16x8xf32>, vector<16x8xf32> -> vector<16x32xf32>
    %301 = arith.truncf %300 : vector<16x32xf32> to vector<16x32xbf16>
    %c0_73 = arith.constant 0 : index
    %c0_74 = arith.constant 0 : index
    %302 = vector.load %arg8[%c0_73, %c0_74] : memref<32x32xbf16, #tpu.memory_space<vmem>>, vector<32x32xbf16>
    %cst_75 = arith.constant dense<0.000000e+00> : vector<16x32xf32>
    %303 = tpu.matmul %301, %302, %cst_75 {dimension_numbers = #tpu.dot_dimension_numbers<[1], [0], [0], [1], [0, 0, 1, 1], [], []>} : vector<16x32xbf16>, vector<32x32xbf16>, vector<16x32xf32> -> vector<16x32xf32>
    %304 = vector.broadcast %189 : vector<1x32xf32> to vector<16x32xf32>
    %305 = arith.addf %303, %304 : vector<16x32xf32>
    %306 = arith.addf %185, %305 : vector<16x32xf32>
    %cst_76 = arith.constant dense<0.000000e+00> : vector<16xf32>
    %307 = vector.multi_reduction <add>, %306, %cst_76 [1] : vector<16x32xf32> to vector<16xf32>
    %308 = vector.shape_cast %307 : vector<16xf32> to vector<16x1xf32>
    %cst_77 = arith.constant 3.200000e+01 : f32
    %309 = vector.broadcast %cst_77 : f32 to vector<16x1xf32>
    %310 = arith.divf %308, %309 : vector<16x1xf32>
    %311 = arith.mulf %306, %306 : vector<16x32xf32>
    %cst_78 = arith.constant dense<0.000000e+00> : vector<16xf32>
    %312 = vector.multi_reduction <add>, %311, %cst_78 [1] : vector<16x32xf32> to vector<16xf32>
    %313 = vector.shape_cast %312 : vector<16xf32> to vector<16x1xf32>
    %cst_79 = arith.constant 3.200000e+01 : f32
    %314 = vector.broadcast %cst_79 : f32 to vector<16x1xf32>
    %315 = arith.divf %313, %314 : vector<16x1xf32>
    %316 = arith.mulf %310, %310 : vector<16x1xf32>
    %317 = arith.subf %315, %316 : vector<16x1xf32>
    %318 = vector.broadcast %310 : vector<16x1xf32> to vector<16x32xf32>
    %319 = arith.subf %306, %318 : vector<16x32xf32>
    %cst_80 = arith.constant 9.99999974E-6 : f32
    %320 = vector.broadcast %cst_80 : f32 to vector<16x1xf32>
    %321 = arith.addf %317, %320 : vector<16x1xf32>
    %322 = math.rsqrt %321 : vector<16x1xf32>
    %323 = vector.broadcast %322 : vector<16x1xf32> to vector<16x32xf32>
    %324 = arith.mulf %319, %323 : vector<16x32xf32>
    %325 = vector.broadcast %190 : vector<1x32xf32> to vector<16x32xf32>
    %326 = arith.mulf %324, %325 : vector<16x32xf32>
    %327 = vector.broadcast %191 : vector<1x32xf32> to vector<16x32xf32>
    %328 = arith.addf %326, %327 : vector<16x32xf32>
    %329 = arith.truncf %328 : vector<16x32xf32> to vector<16x32xbf16>
    %c0_81 = arith.constant 0 : index
    %c0_82 = arith.constant 0 : index
    %330 = vector.load %arg9[%c0_81, %c0_82] : memref<32x2048xbf16, #tpu.memory_space<vmem>>, vector<32x2048xbf16>
    %cst_83 = arith.constant dense<0.000000e+00> : vector<16x2048xf32>
    %331 = tpu.matmul %329, %330, %cst_83 {dimension_numbers = #tpu.dot_dimension_numbers<[1], [0], [0], [1], [0, 0, 1, 1], [], []>} : vector<16x32xbf16>, vector<32x2048xbf16>, vector<16x2048xf32> -> vector<16x2048xf32>
    %332 = vector.broadcast %187 : vector<1x2048xf32> to vector<16x2048xf32>
    %333 = arith.addf %331, %332 : vector<16x2048xf32>
    %cst_84 = arith.constant 0.000000e+00 : f32
    %334 = vector.broadcast %cst_84 : f32 to vector<16x2048xf32>
    %335 = arith.maximumf %333, %334 : vector<16x2048xf32>
    %336 = arith.truncf %335 : vector<16x2048xf32> to vector<16x2048xbf16>
    %c0_85 = arith.constant 0 : index
    %c0_86 = arith.constant 0 : index
    %337 = vector.load %arg10[%c0_85, %c0_86] : memref<2048x32xbf16, #tpu.memory_space<vmem>>, vector<2048x32xbf16>
    %cst_87 = arith.constant dense<0.000000e+00> : vector<16x32xf32>
    %338 = tpu.matmul %336, %337, %cst_87 {dimension_numbers = #tpu.dot_dimension_numbers<[1], [0], [0], [1], [0, 0, 1, 1], [], []>} : vector<16x2048xbf16>, vector<2048x32xbf16>, vector<16x32xf32> -> vector<16x32xf32>
    %339 = vector.broadcast %192 : vector<1x32xf32> to vector<16x32xf32>
    %340 = arith.addf %338, %339 : vector<16x32xf32>
    %341 = arith.addf %328, %340 : vector<16x32xf32>
    %cst_88 = arith.constant dense<0.000000e+00> : vector<16xf32>
    %342 = vector.multi_reduction <add>, %341, %cst_88 [1] : vector<16x32xf32> to vector<16xf32>
    %343 = vector.shape_cast %342 : vector<16xf32> to vector<16x1xf32>
    %cst_89 = arith.constant 3.200000e+01 : f32
    %344 = vector.broadcast %cst_89 : f32 to vector<16x1xf32>
    %345 = arith.divf %343, %344 : vector<16x1xf32>
    %346 = arith.mulf %341, %341 : vector<16x32xf32>
    %cst_90 = arith.constant dense<0.000000e+00> : vector<16xf32>
    %347 = vector.multi_reduction <add>, %346, %cst_90 [1] : vector<16x32xf32> to vector<16xf32>
    %348 = vector.shape_cast %347 : vector<16xf32> to vector<16x1xf32>
    %cst_91 = arith.constant 3.200000e+01 : f32
    %349 = vector.broadcast %cst_91 : f32 to vector<16x1xf32>
    %350 = arith.divf %348, %349 : vector<16x1xf32>
    %351 = arith.mulf %345, %345 : vector<16x1xf32>
    %352 = arith.subf %350, %351 : vector<16x1xf32>
    %353 = vector.broadcast %345 : vector<16x1xf32> to vector<16x32xf32>
    %354 = arith.subf %341, %353 : vector<16x32xf32>
    %cst_92 = arith.constant 9.99999974E-6 : f32
    %355 = vector.broadcast %cst_92 : f32 to vector<16x1xf32>
    %356 = arith.addf %352, %355 : vector<16x1xf32>
    %357 = math.rsqrt %356 : vector<16x1xf32>
    %358 = vector.broadcast %357 : vector<16x1xf32> to vector<16x32xf32>
    %359 = arith.mulf %354, %358 : vector<16x32xf32>
    %360 = vector.broadcast %193 : vector<1x32xf32> to vector<16x32xf32>
    %361 = arith.mulf %359, %360 : vector<16x32xf32>
    %362 = vector.broadcast %194 : vector<1x32xf32> to vector<16x32xf32>
    %363 = arith.addf %361, %362 : vector<16x32xf32>
    %364 = arith.truncf %363 : vector<16x32xf32> to vector<16x32xbf16>
    %c0_93 = arith.constant 0 : index
    %c0_94 = arith.constant 0 : index
    %365 = vector.load %arg12[%c0_93, %c0_94] : memref<32x128xbf16, #tpu.memory_space<vmem>>, vector<32x128xbf16>
    %cst_95 = arith.constant dense<0.000000e+00> : vector<16x128xf32>
    %366 = tpu.matmul %364, %365, %cst_95 {dimension_numbers = #tpu.dot_dimension_numbers<[1], [0], [0], [1], [0, 0, 1, 1], [], []>} : vector<16x32xbf16>, vector<32x128xbf16>, vector<16x128xf32> -> vector<16x128xf32>
    %c0_96 = arith.constant 0 : index
    %c0_97 = arith.constant 0 : index
    %367 = vector.load %arg13[%c0_96, %c0_97] : memref<1x128xf32, #tpu.memory_space<vmem>>, vector<1x128xf32>
    %368 = vector.broadcast %367 : vector<1x128xf32> to vector<16x128xf32>
    %369 = arith.addf %366, %368 : vector<16x128xf32>
    %c0_98 = arith.constant 0 : index
    %c0_99 = arith.constant 0 : index
    %370 = vector.load %arg14[%c0_98, %c0_99] : memref<16x128xf32, #tpu.memory_space<vmem>>, vector<16x128xf32>
    tpu.vector_store %arg14[%c0_98, %c0_99], %369 {strides = array<i32>} : memref<16x128xf32, #tpu.memory_space<vmem>>, vector<16x128xf32>,
    return
  }
}

</mosaic_0001>

<bundles_post_ra>
// kernel: transformer_model_forward.1
= control target key start
LH: loop header
LB: loop body
LE: loop exit
PB: predicated region body
PF: predicated region fallthrough
CT: control target
= control target key end

     0   :  { %19 = vsyncpa [#allocation3], 0  ;;  %s9599_s0 = inlined_call_operand.hbm [shape: s32[16,1], index: 0, kind: input, shape index: {}]   ;;  %s9600_s1 = inlined_call_operand.hbm [shape: f32[64,32], index: 1, kind: input, shape index: {}]   ;;  %s9601_s2 = inlined_call_operand.hbm [shape: bf16[32,96], index: 2, kind: input, shape index: {}]   ;;  %s9602_s3 = inlined_call_operand.hbm [shape: bf16[32,32], index: 3, kind: input, shape index: {}]   ;;  %s9603_s4 = inlined_call_operand.hbm [shape: bf16[32,2048], index: 4, kind: input, shape index: {}]   ;;  %s9604_s5 = inlined_call_operand.hbm [shape: bf16[2048,32], index: 5, kind: input, shape index: {}]   ;;  %s9605_s6 = inlined_call_operand.hbm [shape: f32[8,2048], index: 6, kind: input, shape index: {}]   ;;  %s9606_s7 = inlined_call_operand.hbm [shape: bf16[32,96], index: 7, kind: input, shape index: {}]   ;;  %s9607_s8 = inlined_call_operand.hbm [shape: bf16[32,32], index: 8, kind: input, shape index: {}]   ;;  %s9608_s9 = inlined_call_operand.hbm [shape: bf16[32,2048], index: 9, kind: input, shape index: {}]   ;;  %s9609_s10 = inlined_call_operand.hbm [shape: bf16[2048,32], index: 10, kind: input, shape index: {}]   ;;  %s9610_s11 = inlined_call_operand.hbm [shape: f32[8,2048], index: 11, kind: input, shape index: {}]   ;;  %s9611_s12 = inlined_call_operand.hbm [shape: bf16[32,128], index: 12, kind: input, shape index: {}]   ;;  %s9612_s13 = inlined_call_operand.hbm [shape: f32[1,128], index: 13, kind: input, shape index: {}]   ;;  %s9613_s14 = inlined_call_operand.hbm [shape: f32[16,128], index: 14, kind: output, shape index: {}]  }
   0x1   :  { %20 = vsyncpa [#allocation6], 0 }
   0x2   :  { %21 = vsyncpa [#allocation9], 0 }
   0x3   :  { %22 = vsyncpa [#allocation12], 0 }
   0x4   :  { %23 = vsyncpa [#allocation15], 0 }
   0x5   :  { %24 = vsyncpa [#allocation18], 0 }
   0x6   :  { %25 = vsyncpa [#allocation21], 0 }
   0x7   :  { %26 = vsyncpa [#allocation24], 0 }
   0x8   :  { %27 = vsyncpa [#allocation4], 0  ;;  %s8617_s29 = smov [#allocation5]   ;;  %s8269_s17 = scalar_lea.hbm %s9600_s1, 1024 }
   0x9   :  { %s45_s30 = sshll.u32 %s8617_s29, 4  ;;  %p8270_p0 = scmp.ne.s32.totalorder %s9600_s1, %s8269_s17  ;;  %s46_s30 = int_to_ptr.vmem [resolvable:$true] %s45_s30 }
   0xa   :  { %p8273_p1 = scmp.lt.u32.totalorder %s8269_s17, %s9600_s1 }
   0xc   :  { %p8275_p2 = pnand %p8273_p1, %p8270_p0 }
   0xe   :  { %8278 = shalt.err (!%p8275_p2)
}
   0xf   :  { %s8279_s22 = scalar_lea.vmem %s46_s30, 1024  ;;  %p8284_p4 = scmp.lt.s32.totalorder %s46_s30, %s46_s30 }
  0x10   :  { %p8280_p3 = scmp.ne.s32.totalorder %s46_s30, %s8279_s22  ;;  %p8285_p5 = scmp.lt.s32.totalorder %s8279_s22, %s8279_s22 }
  0x12   :  { %p8286_p6 = por %p8285_p5, %p8284_p4 }
  0x14   :  { %p8287_p7 = pnand %p8286_p6, %p8280_p3 }
  0x16   :  { %8290 = shalt.err (!%p8287_p7)
}
  0x17   :  { %s8618_s23 = smov 128   ;;  %s8619_s24 = smov 8  }
  0x18   :  { %51 = dma.hbm_to_vmem [thread:$0]  %s9600_s1, 1024, %s46_s30, [#allocation6], %s8618_s23, %s8618_s23, %s8619_s24  }
  0x19   :  { %s8620_s27 = smov [#allocation8]   ;;  %s8621_s29 = smov [#allocation11]  }
  0x1a   :  { %s69_s28 = sshll.u32 %s8620_s27, 4  ;;  %s93_s15 = sshll.u32 %s8621_s29, 4  ;;  %s70_s28 = int_to_ptr.vmem [resolvable:$true] %s69_s28  ;;  %s94_s15 = int_to_ptr.vmem [resolvable:$true] %s93_s15 }
  0x1b   :  { %s8291_s18 = scalar_lea.hbm %s9602_s3, 256 }
  0x1c   :  { %p8292_p8 = scmp.ne.s32.totalorder %s9602_s3, %s8291_s18  ;;  %p8295_p9 = scmp.lt.u32.totalorder %s8291_s18, %s9602_s3 }
  0x1e   :  { %p8297_p10 = pnand %p8295_p9, %p8292_p8 }
  0x20   :  { %8300 = shalt.err (!%p8297_p10)
}
  0x21   :  { %s8301_s1 = scalar_lea.vmem %s70_s28, 256  ;;  %p8306_p12 = scmp.lt.s32.totalorder %s70_s28, %s70_s28 }
  0x22   :  { %p8302_p11 = scmp.ne.s32.totalorder %s70_s28, %s8301_s1  ;;  %p8307_p13 = scmp.lt.s32.totalorder %s8301_s1, %s8301_s1 }
  0x24   :  { %p8308_p0 = por %p8307_p13, %p8306_p12 }
  0x26   :  { %p8309_p1 = pnand %p8308_p0, %p8302_p11 }
  0x28   :  { %8312 = shalt.err (!%p8309_p1)
}
  0x29   :  { %s8622_s30 = smov 64   ;;  %s8623_s25 = smov 4  }
  0x2a   :  { %75 = dma.hbm_to_vmem [thread:$0]  %s9602_s3, 256, %s70_s28, [#allocation9], %s8622_s30, %s8622_s30, %s8623_s25  }
  0x2b   :  { %s8313_s17 = scalar_lea.hbm %s9604_s5, 16384 }
  0x2c   :  { %p8314_p2 = scmp.ne.s32.totalorder %s9604_s5, %s8313_s17  ;;  %p8317_p3 = scmp.lt.u32.totalorder %s8313_s17, %s9604_s5 }
  0x2e   :  { %p8319_p4 = pnand %p8317_p3, %p8314_p2 }
  0x30   :  { %8322 = shalt.err (!%p8319_p4)
}
  0x31   :  { %s8323_s22 = scalar_lea.vmem %s94_s15, 16384  ;;  %p8328_p6 = scmp.lt.s32.totalorder %s94_s15, %s94_s15 }
  0x32   :  { %p8324_p5 = scmp.ne.s32.totalorder %s94_s15, %s8323_s22  ;;  %p8329_p7 = scmp.lt.s32.totalorder %s8323_s22, %s8323_s22 }
  0x34   :  { %p8330_p8 = por %p8329_p7, %p8328_p6 }
  0x36   :  { %p8331_p9 = pnand %p8330_p8, %p8324_p5 }
  0x38   :  { %8334 = shalt.err (!%p8331_p9)
}
  0x39   :  { %99 = dma.hbm_to_vmem [thread:$0]  %s9604_s5, 16384, %s94_s15, [#allocation12], %s8622_s30, %s8622_s30, %s8623_s25  }
  0x3a   :  { %s8624_s1 = smov [#allocation14]   ;;  %s8335_s16 = scalar_lea.hbm %s9606_s7, 256 }
  0x3b   :  { %s115_s26 = sshll.u32 %s8624_s1, 4  ;;  %p8336_p10 = scmp.ne.s32.totalorder %s9606_s7, %s8335_s16  ;;  %s116_s26 = int_to_ptr.vmem [resolvable:$true] %s115_s26 }
  0x3c   :  { %p8339_p11 = scmp.lt.u32.totalorder %s8335_s16, %s9606_s7 }
  0x3e   :  { %p8341_p12 = pnand %p8339_p11, %p8336_p10 }
  0x40   :  { %8344 = shalt.err (!%p8341_p12)
}
  0x41   :  { %s8345_s21 = scalar_lea.vmem %s116_s26, 256  ;;  %p8350_p0 = scmp.lt.s32.totalorder %s116_s26, %s116_s26 }
  0x42   :  { %p8346_p13 = scmp.ne.s32.totalorder %s116_s26, %s8345_s21  ;;  %p8351_p1 = scmp.lt.s32.totalorder %s8345_s21, %s8345_s21 }
  0x44   :  { %p8352_p2 = por %p8351_p1, %p8350_p0 }
  0x46   :  { %p8353_p3 = pnand %p8352_p2, %p8346_p13 }
  0x48   :  { %8356 = shalt.err (!%p8353_p3)
}
  0x49   :  { %121 = dma.hbm_to_vmem [thread:$0]  %s9606_s7, 256, %s116_s26, [#allocation15], %s8622_s30, %s8622_s30, %s8623_s25  }
  0x4a   :  { %s8625_s22 = smov [#allocation17]   ;;  %s8626_s28 = smov [#allocation20]  }
  0x4b   :  { %s139_s3 = sshll.u32 %s8625_s22, 4  ;;  %s164_s1 = sshll.u32 %s8626_s28, 4  ;;  %s140_s3 = int_to_ptr.vmem [resolvable:$true] %s139_s3  ;;  %s165_s1 = int_to_ptr.vmem [resolvable:$true] %s164_s1 }
  0x4c   :  { %s8357_s16 = scalar_lea.hbm %s9608_s9, 4096 }
  0x4d   :  { %p8358_p4 = scmp.ne.s32.totalorder %s9608_s9, %s8357_s16  ;;  %p8361_p5 = scmp.lt.u32.totalorder %s8357_s16, %s9608_s9 }
  0x4f   :  { %p8363_p6 = pnand %p8361_p5, %p8358_p4 }
  0x51   :  { %8366 = shalt.err (!%p8363_p6)
}
  0x52   :  { %s8367_s7 = scalar_lea.vmem %s140_s3, 4096  ;;  %p8372_p8 = scmp.lt.s32.totalorder %s140_s3, %s140_s3 }
  0x53   :  { %p8368_p7 = scmp.ne.s32.totalorder %s140_s3, %s8367_s7  ;;  %p8373_p9 = scmp.lt.s32.totalorder %s8367_s7, %s8367_s7 }
  0x55   :  { %p8374_p10 = por %p8373_p9, %p8372_p8 }
  0x57   :  { %p8375_p11 = pnand %p8374_p10, %p8368_p7 }
  0x59   :  { %8378 = shalt.err (!%p8375_p11)
}
  0x5a   :  { %s8627_s26 = smov 1024   ;;  %s8379_s28 = scalar_lea.hbm %s9610_s11, 2048 }
  0x5b   :  { %145 = dma.hbm_to_vmem [thread:$0]  %s9608_s9, 4096, %s140_s3, [#allocation18], %s8627_s26, %s8627_s26, %s8622_s30  }
  0x5c   :  { %p8380_p12 = scmp.ne.s32.totalorder %s9610_s11, %s8379_s28  ;;  %p8383_p13 = scmp.lt.u32.totalorder %s8379_s28, %s9610_s11 }
  0x5e   :  { %p8385_p0 = pnand %p8383_p13, %p8380_p12 }
  0x60   :  { %8388 = shalt.err (!%p8385_p0)
}
  0x61   :  { %s8389_s18 = scalar_lea.vmem %s165_s1, 2048  ;;  %p8394_p2 = scmp.lt.s32.totalorder %s165_s1, %s165_s1 }
  0x62   :  { %p8390_p1 = scmp.ne.s32.totalorder %s165_s1, %s8389_s18  ;;  %p8395_p3 = scmp.lt.s32.totalorder %s8389_s18, %s8389_s18 }
  0x64   :  { %p8396_p4 = por %p8395_p3, %p8394_p2 }
  0x66   :  { %p8397_p5 = pnand %p8396_p4, %p8390_p1 }
  0x68   :  { %8400 = shalt.err (!%p8397_p5)
}
  0x69   :  { %167 = dma.hbm_to_vmem [thread:$0]  %s9610_s11, 2048, %s165_s1, [#allocation21]  }
  0x6a   :  { %s8628_s19 = smov [#allocation2]   ;;  %s8629_s7 = smov [#allocation7]  }
  0x6b   :  { %s33_s20 = sshll.u32 %s8628_s19, 4  ;;  %s57_s21 = sshll.u32 %s8629_s7, 4  ;;  %s34_s20 = int_to_ptr.vmem [resolvable:$true] %s33_s20  ;;  %s58_s21 = int_to_ptr.vmem [resolvable:$true] %s57_s21 }
  0x6c   :  { %s8401_s22 = scalar_lea.hbm %s9599_s0, 256 }
  0x6d   :  { %p8402_p6 = scmp.ne.s32.totalorder %s9599_s0, %s8401_s22  ;;  %p8405_p7 = scmp.lt.u32.totalorder %s8401_s22, %s9599_s0 }
  0x6f   :  { %p8407_p8 = pnand %p8405_p7, %p8402_p6 }
  0x71   :  { %8410 = shalt.err (!%p8407_p8)
}
  0x72   :  { %s8411_s11 = scalar_lea.vmem %s34_s20, 256  ;;  %p8416_p10 = scmp.lt.s32.totalorder %s34_s20, %s34_s20 }
  0x73   :  { %p8412_p9 = scmp.ne.s32.totalorder %s34_s20, %s8411_s11  ;;  %p8417_p11 = scmp.lt.s32.totalorder %s8411_s11, %s8411_s11 }
  0x75   :  { %p8418_p12 = por %p8417_p11, %p8416_p10 }
  0x77   :  { %p8419_p13 = pnand %p8418_p12, %p8412_p9 }
  0x79   :  { %8422 = shalt.err (!%p8419_p13)
}
  0x7a   :  { %39 = dma.hbm_to_vmem [thread:$0]  %s9599_s0, 256, %s34_s20, [#allocation3], %s8618_s23, %s8618_s23, %s8619_s24  }
  0x7b   :  { %s8423_s3 = scalar_lea.hbm %s9601_s2, 256 }
  0x7c   :  { %p8424_p0 = scmp.ne.s32.totalorder %s9601_s2, %s8423_s3  ;;  %p8427_p1 = scmp.lt.u32.totalorder %s8423_s3, %s9601_s2 }
  0x7e   :  { %p8429_p2 = pnand %p8427_p1, %p8424_p0 }
  0x80   :  { %8432 = shalt.err (!%p8429_p2)
}
  0x81   :  { %s8433_s22 = scalar_lea.vmem %s58_s21, 256  ;;  %p8438_p4 = scmp.lt.s32.totalorder %s58_s21, %s58_s21 }
  0x82   :  { %p8434_p3 = scmp.ne.s32.totalorder %s58_s21, %s8433_s22  ;;  %p8439_p5 = scmp.lt.s32.totalorder %s8433_s22, %s8433_s22 }
  0x84   :  { %p8440_p6 = por %p8439_p5, %p8438_p4 }
  0x86   :  { %p8441_p7 = pnand %p8440_p6, %p8434_p3 }
  0x88   :  { %8444 = shalt.err (!%p8441_p7)
}
  0x89   :  { %63 = dma.hbm_to_vmem [thread:$0]  %s9601_s2, 256, %s58_s21, [#allocation6], %s8622_s30, %s8622_s30, %s8623_s25  }
  0x8a   :  { %s8630_s28 = smov [#allocation10]   ;;  %s8631_s29 = smov [#allocation13]  }
  0x8b   :  { %s81_s27 = sshll.u32 %s8630_s28, 4  ;;  %s106_s16 = sshll.u32 %s8631_s29, 4  ;;  %s82_s27 = int_to_ptr.vmem [resolvable:$true] %s81_s27  ;;  %s107_s16 = int_to_ptr.vmem [resolvable:$true] %s106_s16 }
  0x8c   :  { %s8445_s17 = scalar_lea.hbm %s9603_s4, 4096 }
  0x8d   :  { %p8446_p8 = scmp.ne.s32.totalorder %s9603_s4, %s8445_s17  ;;  %p8449_p9 = scmp.lt.u32.totalorder %s8445_s17, %s9603_s4 }
  0x8f   :  { %p8451_p10 = pnand %p8449_p9, %p8446_p8 }
  0x91   :  { %8454 = shalt.err (!%p8451_p10)
}
  0x92   :  { %s8455_s2 = scalar_lea.vmem %s82_s27, 4096  ;;  %p8460_p12 = scmp.lt.s32.totalorder %s82_s27, %s82_s27 }
  0x93   :  { %p8456_p11 = scmp.ne.s32.totalorder %s82_s27, %s8455_s2  ;;  %p8461_p13 = scmp.lt.s32.totalorder %s8455_s2, %s8455_s2 }
  0x95   :  { %p8462_p0 = por %p8461_p13, %p8460_p12 }
  0x97   :  { %p8463_p1 = pnand %p8462_p0, %p8456_p11 }
  0x99   :  { %8466 = shalt.err (!%p8463_p1)
}
  0x9a   :  { %87 = dma.hbm_to_vmem [thread:$0]  %s9603_s4, 4096, %s82_s27, [#allocation9], %s8627_s26, %s8627_s26, %s8622_s30  }
  0x9b   :  { %s8467_s22 = scalar_lea.hbm %s9605_s6, 2048 }
  0x9c   :  { %p8468_p2 = scmp.ne.s32.totalorder %s9605_s6, %s8467_s22  ;;  %p8471_p3 = scmp.lt.u32.totalorder %s8467_s22, %s9605_s6 }
  0x9e   :  { %p8473_p4 = pnand %p8471_p3, %p8468_p2 }
  0xa0   :  { %8476 = shalt.err (!%p8473_p4)
}
  0xa1   :  { %s8477_s11 = scalar_lea.vmem %s107_s16, 2048  ;;  %p8482_p6 = scmp.lt.s32.totalorder %s107_s16, %s107_s16 }
  0xa2   :  { %p8478_p5 = scmp.ne.s32.totalorder %s107_s16, %s8477_s11  ;;  %p8483_p7 = scmp.lt.s32.totalorder %s8477_s11, %s8477_s11 }
  0xa4   :  { %p8484_p8 = por %p8483_p7, %p8482_p6 }
  0xa6   :  { %p8485_p9 = pnand %p8484_p8, %p8478_p5 }
  0xa8   :  { %8488 = shalt.err (!%p8485_p9)
}
  0xa9   :  { %109 = dma.hbm_to_vmem [thread:$0]  %s9605_s6, 2048, %s107_s16, [#allocation12]  }
  0xaa   :  { %s8632_s27 = smov [#allocation16]   ;;  %s8633_s17 = smov [#allocation19]  }
  0xab   :  { %s127_s1 = sshll.u32 %s8632_s27, 4  ;;  %s151_s18 = sshll.u32 %s8633_s17, 4  ;;  %s128_s1 = int_to_ptr.vmem [resolvable:$true] %s127_s1  ;;  %s152_s18 = int_to_ptr.vmem [resolvable:$true] %s151_s18 }
  0xac   :  { %s8489_s19 = scalar_lea.hbm %s9607_s8, 256 }
  0xad   :  { %p8490_p10 = scmp.ne.s32.totalorder %s9607_s8, %s8489_s19  ;;  %p8493_p11 = scmp.lt.u32.totalorder %s8489_s19, %s9607_s8 }
  0xaf   :  { %p8495_p12 = pnand %p8493_p11, %p8490_p10 }
  0xb1   :  { %8498 = shalt.err (!%p8495_p12)
}
  0xb2   :  { %s8499_s6 = scalar_lea.vmem %s128_s1, 256  ;;  %p8504_p0 = scmp.lt.s32.totalorder %s128_s1, %s128_s1 }
  0xb3   :  { %p8500_p13 = scmp.ne.s32.totalorder %s128_s1, %s8499_s6  ;;  %p8505_p1 = scmp.lt.s32.totalorder %s8499_s6, %s8499_s6 }
  0xb5   :  { %p8506_p2 = por %p8505_p1, %p8504_p0 }
  0xb7   :  { %p8507_p3 = pnand %p8506_p2, %p8500_p13 }
  0xb9   :  { %8510 = shalt.err (!%p8507_p3)
}
  0xba   :  { %133 = dma.hbm_to_vmem [thread:$0]  %s9607_s8, 256, %s128_s1, [#allocation15], %s8622_s30, %s8622_s30, %s8623_s25  }
  0xbb   :  { %s8511_s20 = scalar_lea.hbm %s9609_s10, 16384 }
  0xbc   :  { %p8512_p4 = scmp.ne.s32.totalorder %s9609_s10, %s8511_s20  ;;  %p8515_p5 = scmp.lt.u32.totalorder %s8511_s20, %s9609_s10 }
  0xbe   :  { %p8517_p6 = pnand %p8515_p5, %p8512_p4 }
  0xc0   :  { %8520 = shalt.err (!%p8517_p6)
}
  0xc1   :  { %s8521_s26 = scalar_lea.vmem %s152_s18, 16384  ;;  %p8526_p8 = scmp.lt.s32.totalorder %s152_s18, %s152_s18 }
  0xc2   :  { %p8522_p7 = scmp.ne.s32.totalorder %s152_s18, %s8521_s26  ;;  %p8527_p9 = scmp.lt.s32.totalorder %s8521_s26, %s8521_s26 }
  0xc4   :  { %p8528_p10 = por %p8527_p9, %p8526_p8 }
  0xc6   :  { %p8529_p11 = pnand %p8528_p10, %p8522_p7 }
  0xc8   :  { %8532 = shalt.err (!%p8529_p11)
}
  0xc9   :  { %157 = dma.hbm_to_vmem [thread:$0]  %s9609_s10, 16384, %s152_s18, [#allocation18], %s8622_s30, %s8622_s30, %s8623_s25  }
  0xca   :  { %s8634_s1 = smov [#allocation22]   ;;  %s8635_s9 = smov [#allocation23]  }
  0xcb   :  { %s173_s17 = sshll.u32 %s8634_s1, 4  ;;  %s186_s3 = sshll.u32 %s8635_s9, 4  ;;  %s174_s17 = int_to_ptr.vmem [resolvable:$true] %s173_s17  ;;  %s187_s3 = int_to_ptr.vmem [resolvable:$true] %s186_s3 }
  0xcc   :  { %s8533_s21 = scalar_lea.hbm %s9611_s12, 256 }
  0xcd   :  { %p8534_p12 = scmp.ne.s32.totalorder %s9611_s12, %s8533_s21  ;;  %p8537_p13 = scmp.lt.u32.totalorder %s8533_s21, %s9611_s12 }
  0xcf   :  { %p8539_p0 = pnand %p8537_p13, %p8534_p12 }
  0xd1   :  { %8542 = shalt.err (!%p8539_p0)
}
  0xd2   :  { %s8543_s10 = scalar_lea.vmem %s174_s17, 256  ;;  %p8548_p2 = scmp.lt.s32.totalorder %s174_s17, %s174_s17 }
  0xd3   :  { %p8544_p1 = scmp.ne.s32.totalorder %s174_s17, %s8543_s10  ;;  %p8549_p3 = scmp.lt.s32.totalorder %s8543_s10, %s8543_s10 }
  0xd5   :  { %p8550_p4 = por %p8549_p3, %p8548_p2 }
  0xd7   :  { %p8551_p5 = pnand %p8550_p4, %p8544_p1 }
  0xd9   :  { %8554 = shalt.err (!%p8551_p5)
}
  0xda   :  { %179 = dma.hbm_to_vmem [thread:$0]  %s9611_s12, 256, %s174_s17, [#allocation21], %s8622_s30, %s8622_s30, %s8623_s25  }
  0xdb   :  { %s8555_s20 = scalar_lea.hbm %s9612_s13, 16 }
  0xdc   :  { %p8556_p6 = scmp.ne.s32.totalorder %s9612_s13, %s8555_s20  ;;  %p8559_p7 = scmp.lt.u32.totalorder %s8555_s20, %s9612_s13 }
  0xde   :  { %p8561_p8 = pnand %p8559_p7, %p8556_p6 }
  0xe0   :  { %8564 = shalt.err (!%p8561_p8)
}
  0xe1   :  { %s8565_s26 = scalar_lea.vmem %s187_s3, 16  ;;  %s8569_s8 = scalar_lea.vmem %s187_s3, 32 }
  0xe2   :  { %p8566_p9 = scmp.ne.s32.totalorder %s187_s3, %s8565_s26  ;;  %p8570_p10 = scmp.lt.s32.totalorder %s187_s3, %s187_s3 }
  0xe3   :  { %p8571_p11 = scmp.lt.s32.totalorder %s8569_s8, %s8565_s26 }
  0xe5   :  { %p8572_p12 = por %p8571_p11, %p8570_p10 }
  0xe7   :  { %p8573_p13 = pnand %p8572_p12, %p8566_p9 }
  0xe9   :  { %8576 = shalt.err (!%p8573_p13)
}
  0xea   :  { %189 = dma.hbm_to_vmem [thread:$0]  %s9612_s13, 16, %s187_s3, [#allocation24]  }
  0xeb   :  { %8599 = dma.done.wait [#allocation3], 256  }
  0xec   :  { %8600 = vsyncadd [#allocation3], 4294967040 }
  0xed   :  { %8601 = dma.done.wait [#allocation6], 1280  }
  0xee   :  { %8602 = vsyncadd [#allocation6], 4294966016 }
  0xef   :  { %8603 = dma.done.wait [#allocation9], 4352  }
  0xf0   :  { %8604 = vsyncadd [#allocation9], 4294962944 }
  0xf1   :  { %8605 = dma.done.wait [#allocation12], 18432  }
  0xf2   :  { %8606 = vsyncadd [#allocation12], 4294948864 }
  0xf3   :  { %8607 = dma.done.wait [#allocation15], 512  }
  0xf4   :  { %8608 = vsyncadd [#allocation15], 4294966784 }
  0xf5   :  { %8609 = dma.done.wait [#allocation18], 20480  }
  0xf6   :  { %8610 = vsyncadd [#allocation18], 4294946816 }
  0xf7   :  { %8611 = dma.done.wait [#allocation21], 2304  }
  0xf8   :  { %8612 = vsyncadd [#allocation21], 4294964992 }
  0xf9   :  { %8613 = dma.done.wait [#allocation24], 16  }
  0xfa   :  { %8614 = vsyncadd [#allocation24], 4294967280  ;;  %v8636_v0 = vmov 0   ;;  %v233_v1 = vld [vmem:[#allocation2] sm:$0xff]  ;;  %v249_v2 = vld [vmem:[#allocation5] sm:$0xff]  ;;  %v8637_v10 = vmov 0.0   ;;  %v235_v12 = vlaneseq }
  0xfb   :  { %7890 = vset.pattern.permute.xlu0 %v8636_v0  ;;  %v250_v3 = vld [vmem:[#allocation5 + $0x8] sm:$0xff]  ;;  %v251_v4 = vld [vmem:[#allocation5 + $0x10] sm:$0xff]  ;;  %v252_v5 = vld [vmem:[#allocation5 + $0x18] sm:$0xff]  ;;  %7607 = vmatprep.subr.bf16.mxu1 %v8637_v10  ;;  %vm257_vm0 = vcmask 523264   ;;  %vm8638_vm3 = vmmov 0   ;;  %vm376_vm4 = vcmask 261120  }
  0xfc   :  { %238 = vperm.xlu0 %7890, %v233_v1   ;;  %v234_v6 = vld [vmem:[#allocation2 + $0x8] sm:$0xff]  ;;  %v7839_v7 = vpack.c.bf16 %v250_v3, %v249_v2  ;;  %v7843_v8 = vpack.c.bf16 %v252_v5, %v251_v4  ;;  %v253_v9 = vld [vmem:[#allocation5 + $0x20] sm:$0xff]  ;;  %v254_v11 = vld [vmem:[#allocation5 + $0x28] sm:$0xff]  ;;  %v236_v16 = vand.u32 127, %v235_v12  ;;  %7611 = vmatprep.mubr.msk.bf16.mxu1 %vm8638_vm3, %v8637_v10  ;;  %v8948_v27 = vshrl.u32 %v235_v12, 7  ;;  %s8639_s13 = smov 96  }
  0xfd   :  { %v255_v13 = vld [vmem:[#allocation5 + $0x30] sm:$0xff]  ;;  %v256_v14 = vld [vmem:[#allocation5 + $0x38] sm:$0xff]  ;;  %v7847_v15 = vpack.c.bf16 %v254_v11, %v253_v9  ;;  %v7921_v17 = vld [vmem:[#allocation7] sm:$0xff]   ;;  %vm426_vm5 = vcmask 64512   ;;  %s8640_s27 = smov 88   ;;  %s8641_s1 = smov 120  }
  0xfe   :  { %7840 = vmatprep.subr.bf16.mxu0 %v7839_v7  ;;  %7608 = vmatpush3.bf16.msra.mxu1 %v7921_v17  ;;  %v7851_v18 = vpack.c.bf16 %v256_v14, %v255_v13  ;;  %v7922_v23 = vld [vmem:[#allocation7 + $0x8] sm:$0xff]   ;;  %v362_v28 = vsub.s32 1, %v8948_v27  ;;  %v8951_v29 = vld [vmem:[#allocation13] sm:$0xff]  ;;  %vm553_vm6 = vcmask 1043456   ;;  %s8642_s17 = smov 56   ;;  %s8643_s9 = smov 80  }
  0xff   :  { %7842 = vmatpush3.bf16.msra.mxu0 %v7839_v7  ;;  %7609 = vmatprep.subr.bf16.mxu1 %v8637_v10  ;;  %s8644_s3 = smov 112   ;;  %s8645_s19 = smov 48   ;;  %vm1337_vm7 = vcmask 130048   ;;  %vm1340_vm8 = vcmask 195584  }
 0x100   :  { %241 = vperm.xlu0 %7890, %v234_v6   ;;  %7844 = vmatprep.subr.bf16.mxu0 %v7843_v8  ;;  %v363_v30 = vrot.slane %v8951_v29, %v362_v28  ;;  %s8646_s2 = smov 72   ;;  %s8647_s21 = smov 104  }
 0x101   :  { %s8648_s7 = smov 40   ;;  %s8649_s5 = smov 16  }
 0x102   :  { %7610 = vmatpush3.bf16.msra.mxu1 %v7922_v23  ;;  %s8650_s6 = smov 24  }
 0x103   :  { %7846 = vmatpush3.bf16.msra.mxu0 %v7843_v8  ;;  %7615 = vmatprep.subr.bf16.mxu1 %v8637_v10 }
 0x104   :  { %7848 = vmatprep.subr.bf16.mxu0 %v7847_v15 }
 0x107   :  { %7850 = vmatpush3.bf16.msra.mxu0 %v7847_v15 }
 0x108   :  { %7852 = vmatprep.subr.bf16.mxu0 %v7851_v18 }
 0x10b   :  { %7854 = vmatpush3.bf16.msra.mxu0 %v7851_v18 }
 0x10c   :  { %7621 = vmatprep.subr.bf16.mxu0 %v8637_v10 }
 0x17b   :  { %v239_v19 = vpop.permute.xlu0 %238 }
 0x17c   :  { %vm243_vm1 = vcmp.eq.s32.totalorder %v239_v19, %v236_v16 }
 0x17d   :  { %v6759_v20 = vsel %vm243_vm1, 1.0, %v8637_v10 }
 0x17e   :  { %7604 = vmatprep.mubr.msk.f32.mxu0 %vm257_vm0, %v6759_v20 }
 0x17f   :  { %v242_v21 = vpop.permute.xlu0 %241 }
 0x180   :  { %vm244_vm2 = vcmp.eq.s32.totalorder %v242_v21, %v236_v16 }
 0x181   :  { %v6760_v22 = vsel %vm244_vm2, 1.0, %v8637_v10 }
 0x182   :  { %7605 = vmatmul.mubr.msk.f32.vlgmr.msra.gmra.mrb[0].mxu0 %vm257_vm0, %v6760_v22 }
 0x183   :  { %7623 = vmatprep.mubr.msk.bf16.mxu0 %vm8638_vm3, %v8637_v10 }
 0x255   :  { %v8939_v24 = vpop.f32.mrb[0].mxu0 }
 0x256   :  { %v8941_v25 = vpop.f32.mrb[1].mxu0 }
 0x257   :  { %v355_v26 = vpack.c.bf16 %v8939_v24, %v8941_v25 }
 0x259   :  { %7612 = vmatmul.mubr.msk.bf16.vlgmr.msra.gmra.mrb[0].mxu1 %vm376_vm4, %v355_v26 }
 0x25a   :  { %7617 = vmatprep.mubr.msk.bf16.mxu1 %vm8638_vm3, %v8637_v10 }
 0x32c   :  { %v414_v31 = vpop.f32.mrb[0].mxu1 }
 0x32d   :  { %v415_v32 = vadd.f32 %v414_v31, %v363_v30  ;;  %v7613_v33 = vpop.f32.mrb[1].mxu1 }
 0x32e   :  { %v417_v34 = vpop.f32.mrb[2].mxu1 }
 0x32f   :  { %v8956_v35 = vpack.c.bf16 %v415_v32, %v415_v32  ;;  %v418_v36 = vadd.f32 %v417_v34, %v363_v30  ;;  %v7614_v37 = vpop.f32.mrb[3].mxu1 }
 0x331   :  { %424 = vrot.lane.b32.xlu1 %v8956_v35, %s8639_s13  ;;  %v8960_v38 = vpack.c.bf16 %v418_v36, %v418_v36 }
 0x335   :  { %474 = vrot.lane.b32.xlu1 %v8960_v38, %s8639_s13 }
 0x3a3   :  { %v425_v39 = vpop.permute.xlu1 %424 }
 0x3a4   :  { %v431_v40 = vsel %vm426_vm5, %v425_v39, 0 }
 0x3a5   :  { %7616 = vmatpush3.bf16.xpose.msra.mxu1 %v431_v40 }
 0x3a6   :  { %7627 = vmatprep.subr.bf16.mxu1 %v8637_v10 }
 0x3a7   :  { %v475_v41 = vpop.permute.xlu1 %474 }
 0x3a8   :  { %v480_v42 = vsel %vm426_vm5, %v475_v41, 0 }
 0x3a9   :  { %7622 = vmatpush3.bf16.xpose.msra.mxu0 %v480_v42 }
 0x3aa   :  { %7633 = vmatprep.subr.bf16.mxu0 %v8637_v10 }
 0x3ac   :  { %7618 = vmatmul.mubr.msk.bf16.vlgmr.msra.gmra.mrb[4].mxu1 %vm426_vm5, %v8956_v35 }
 0x3ad   :  { %7629 = vmatprep.mubr.msk.bf16.mxu1 %vm8638_vm3, %v8637_v10 }
 0x3b0   :  { %7624 = vmatmul.mubr.msk.bf16.vlgmr.msra.gmra.mrb[4].mxu0 %vm426_vm5, %v8960_v38 }
 0x3b1   :  { %7635 = vmatprep.mubr.msk.bf16.mxu0 %vm8638_vm3, %v8637_v10 }
 0x47f   :  { %v467_v43 = vpop.f32.mrb[4].mxu1 }
 0x480   :  { %v522_v44 = vmul.f32 0.35355338, %v467_v43  ;;  %v7619_v45 = vpop.f32.mrb[5].mxu1 }
 0x481   :  { %v470_v46 = vpop.f32.mrb[6].mxu1 }
 0x482   :  { %v7620_v47 = vpop.f32.mrb[7].mxu1  ;;  %v524_v48 = vsel %vm426_vm5, %v522_v44, -inf }
 0x483   :  { %v516_v49 = vpop.f32.mrb[4].mxu0  ;;  %525 = vmax.xlane.f32.xlu0 %v524_v48 }
 0x484   :  { %v523_v50 = vmul.f32 0.35355338, %v516_v49  ;;  %v7625_v51 = vpop.f32.mrb[5].mxu0 }
 0x485   :  { %v519_v52 = vpop.f32.mrb[6].mxu0 }
 0x486   :  { %v7626_v53 = vpop.f32.mrb[7].mxu0  ;;  %v527_v54 = vsel %vm426_vm5, %v523_v50, -inf }
 0x487   :  { %528 = vmax.xlane.f32.xlu1 %v527_v54 }
 0x498   :  { %548 = vrot.lane.b32.xlu1 %v8956_v35, %s8622_s30 }
 0x49c   :  { %647 = vrot.lane.b32.xlu1 %v8956_v35, %s8640_s27 }
 0x4a0   :  { %697 = vrot.lane.b32.xlu1 %v8960_v38, %s8640_s27 }
 0x4a4   :  { %695 = vrot.lane.b32.xlu1 %v8960_v38, %s8641_s1 }
 0x510   :  { %v526_v55 = vpop.xlane.xlu0 %525 }
 0x511   :  { %v530_v56 = vsub.f32 %v522_v44, %v526_v55 }
 0x513   :  { %v532_v57 = vmul.f32 1.442695, %v530_v56 }
 0x514   :  { %v529_v58 = vpop.xlane.xlu1 %528 }
 0x515   :  { %8187 = vpow2.f32 %v532_v57  ;;  %v531_v59 = vsub.f32 %v523_v50, %v529_v58 }
 0x517   :  { %v534_v60 = vmul.f32 1.442695, %v531_v59 }
 0x518   :  { %v549_v61 = vpop.permute.xlu1 %548 }
 0x519   :  { %8189 = vpow2.f32 %v534_v60  ;;  %v555_v62 = vsel %vm553_vm6, %v549_v61, 0 }
 0x51a   :  { %7628 = vmatpush3.bf16.msra.mxu1 %v555_v62 }
 0x51b   :  { %7639 = vmatprep.subr.bf16.mxu1 %v8637_v10 }
 0x51c   :  { %v648_v9 = vpop.permute.xlu1 %647 }
 0x51d   :  { %v653_v14 = vsel %vm426_vm5, %v648_v9, 0 }
 0x51f   :  { %v8188_v63 = vpop.eup %8187 }
 0x520   :  { %v536_v1 = vsel %vm426_vm5, %v8188_v63, 0.0  ;;  %v698_v16 = vpop.permute.xlu1 %697 }
 0x521   :  { %537 = vadd.xlane.f32.xlu0 %v536_v1  ;;  %v703_v18 = vsel %vm426_vm5, %v698_v16, 0 }
 0x523   :  { %v8190_v2 = vpop.eup %8189 }
 0x524   :  { %v539_v3 = vsel %vm426_vm5, %v8190_v2, 0.0  ;;  %v696_v20 = vpop.permute.xlu1 %695 }
 0x525   :  { %540 = vadd.xlane.f32.xlu0 %v539_v3 }
 0x53b   :  { %597 = vrot.lane.b32.xlu0 %v8960_v38, %s8622_s30 }
 0x53f   :  { %645 = vrot.lane.b32.xlu0 %v8956_v35, %s8641_s1 }
 0x5ae   :  { %v538_v4 = vpop.xlane.xlu0 %537 }
 0x5af   :  { %8191 = vrcp.f32 %v538_v4 }
 0x5b2   :  { %v541_v5 = vpop.xlane.xlu0 %540 }
 0x5b3   :  { %8193 = vrcp.f32 %v541_v5 }
 0x5b6   :  { %v598_v6 = vpop.permute.xlu0 %597 }
 0x5b7   :  { %v603_v7 = vsel %vm553_vm6, %v598_v6, 0 }
 0x5b8   :  { %7634 = vmatpush3.bf16.msra.mxu0 %v603_v7 }
 0x5b9   :  { %v8192_v8 = vpop.eup %8191  ;;  %7645 = vmatprep.subr.bf16.mxu0 %v8637_v10 }
 0x5ba   :  { %v544_v11 = vmul.f32 %v8192_v8, %v8188_v63  ;;  %v646_v19 = vpop.permute.xlu0 %645 }
 0x5bc   :  { %v546_v12 = vpack.c.bf16 %v544_v11, %v544_v11 }
 0x5bd   :  { %v8194_v13 = vpop.eup %8193 }
 0x5be   :  { %v545_v15 = vmul.f32 %v8194_v13, %v8190_v2  ;;  %7630 = vmatmul.mubr.msk.bf16.vlgmr.msra.gmra.mrb[8].mxu1 %vm426_vm5, %v546_v12 }
 0x5bf   :  { %7640 = vmatpush3.bf16.xpose.msra.mxu1 %v653_v14  ;;  %7641 = vmatprep.mubr.msk.bf16.mxu1 %vm8638_vm3, %v8637_v10 }
 0x5c0   :  { %v547_v17 = vpack.c.bf16 %v545_v15, %v545_v15  ;;  %7651 = vmatprep.subr.bf16.mxu1 %v8637_v10 }
 0x5c2   :  { %7636 = vmatmul.mubr.msk.bf16.vlgmr.msra.gmra.mrb[8].mxu0 %vm426_vm5, %v547_v17 }
 0x5c3   :  { %7646 = vmatpush3.bf16.xpose.msra.mxu0 %v703_v18  ;;  %7647 = vmatprep.mubr.msk.bf16.mxu0 %vm8638_vm3, %v8637_v10 }
 0x5c4   :  { %7657 = vmatprep.subr.bf16.mxu0 %v8637_v10 }
 0x5c6   :  { %7642 = vmatmul.mubr.msk.bf16.vlgmr.msra.gmra.mrb[12].mxu1 %vm426_vm5, %v646_v19 }
 0x5c7   :  { %7653 = vmatprep.mubr.msk.bf16.mxu1 %vm8638_vm3, %v8637_v10 }
 0x5ca   :  { %7648 = vmatmul.mubr.msk.bf16.vlgmr.msra.gmra.mrb[12].mxu0 %vm426_vm5, %v696_v20 }
 0x5cb   :  { %7659 = vmatprep.mubr.msk.bf16.mxu0 %vm8638_vm3, %v8637_v10 }
 0x691   :  { %v9012_v21 = vpop.f32.mrb[8].mxu1 }
 0x692   :  { %v7631_v22 = vpop.f32.mrb[9].mxu1 }
 0x693   :  { %v594_v23 = vpop.f32.mrb[10].mxu1 }
 0x694   :  { %v7632_v26 = vpop.f32.mrb[11].mxu1 }
 0x695   :  { %v9014_v30 = vpop.f32.mrb[8].mxu0 }
 0x696   :  { %v7637_v31 = vpop.f32.mrb[9].mxu0 }
 0x697   :  { %v642_v32 = vpop.f32.mrb[10].mxu0 }
 0x698   :  { %v7638_v33 = vpop.f32.mrb[11].mxu0 }
 0x699   :  { %v689_v34 = vpop.f32.mrb[12].mxu1 }
 0x69a   :  { %v745_v36 = vmul.f32 0.35355338, %v689_v34  ;;  %v7643_v37 = vpop.f32.mrb[13].mxu1 }
 0x69b   :  { %v692_v39 = vpop.f32.mrb[14].mxu1 }
 0x69c   :  { %v7644_v40 = vpop.f32.mrb[15].mxu1  ;;  %v747_v41 = vsel %vm426_vm5, %v745_v36, -inf }
 0x69d   :  { %v739_v42 = vpop.f32.mrb[12].mxu0  ;;  %748 = vmax.xlane.f32.xlu0 %v747_v41 }
 0x69e   :  { %v746_v43 = vmul.f32 0.35355338, %v739_v42  ;;  %v7649_v44 = vpop.f32.mrb[13].mxu0 }
 0x69f   :  { %v742_v45 = vpop.f32.mrb[14].mxu0 }
 0x6a0   :  { %v7650_v46 = vpop.f32.mrb[15].mxu0  ;;  %v750_v47 = vsel %vm426_vm5, %v746_v43, -inf }
 0x6a1   :  { %751 = vmax.xlane.f32.xlu1 %v750_v47 }
 0x6b2   :  { %771 = vrot.lane.b32.xlu1 %v8956_v35, %s8642_s17 }
 0x6b6   :  { %869 = vrot.lane.b32.xlu1 %v8956_v35, %s8643_s9 }
 0x6ba   :  { %919 = vrot.lane.b32.xlu1 %v8960_v38, %s8643_s9 }
 0x6be   :  { %917 = vrot.lane.b32.xlu1 %v8960_v38, %s8644_s3 }
 0x72a   :  { %v749_v48 = vpop.xlane.xlu0 %748 }
 0x72b   :  { %v753_v49 = vsub.f32 %v745_v36, %v749_v48 }
 0x72d   :  { %v755_v50 = vmul.f32 1.442695, %v753_v49 }
 0x72e   :  { %v752_v51 = vpop.xlane.xlu1 %751 }
 0x72f   :  { %8195 = vpow2.f32 %v755_v50  ;;  %v754_v52 = vsub.f32 %v746_v43, %v752_v51 }
 0x731   :  { %v757_v53 = vmul.f32 1.442695, %v754_v52 }
 0x732   :  { %v772_v54 = vpop.permute.xlu1 %771 }
 0x733   :  { %8197 = vpow2.f32 %v757_v53  ;;  %v777_v55 = vsel %vm553_vm6, %v772_v54, 0 }
 0x734   :  { %7652 = vmatpush3.bf16.msra.mxu1 %v777_v55 }
 0x735   :  { %7663 = vmatprep.subr.bf16.mxu1 %v8637_v10 }
 0x736   :  { %v870_v2 = vpop.permute.xlu1 %869 }
 0x737   :  { %v875_v6 = vsel %vm426_vm5, %v870_v2, 0 }
 0x739   :  { %v8196_v56 = vpop.eup %8195 }
 0x73a   :  { %v759_v57 = vsel %vm426_vm5, %v8196_v56, 0.0  ;;  %v920_v8 = vpop.permute.xlu1 %919 }
 0x73b   :  { %760 = vadd.xlane.f32.xlu0 %v759_v57  ;;  %v925_v11 = vsel %vm426_vm5, %v920_v8, 0 }
 0x73d   :  { %v8198_v58 = vpop.eup %8197 }
 0x73e   :  { %v762_v59 = vsel %vm426_vm5, %v8198_v58, 0.0  ;;  %v918_v13 = vpop.permute.xlu1 %917 }
 0x73f   :  { %763 = vadd.xlane.f32.xlu0 %v762_v59 }
 0x755   :  { %819 = vrot.lane.b32.xlu0 %v8960_v38, %s8642_s17 }
 0x759   :  { %867 = vrot.lane.b32.xlu0 %v8956_v35, %s8644_s3 }
 0x7c8   :  { %v761_v60 = vpop.xlane.xlu0 %760 }
 0x7c9   :  { %8199 = vrcp.f32 %v761_v60 }
 0x7cc   :  { %v764_v61 = vpop.xlane.xlu0 %763 }
 0x7cd   :  { %8201 = vrcp.f32 %v764_v61 }
 0x7d0   :  { %v820_v62 = vpop.permute.xlu0 %819 }
 0x7d1   :  { %v825_v63 = vsel %vm553_vm6, %v820_v62, 0 }
 0x7d2   :  { %7658 = vmatpush3.bf16.msra.mxu0 %v825_v63 }
 0x7d3   :  { %v8200_v1 = vpop.eup %8199  ;;  %7669 = vmatprep.subr.bf16.mxu0 %v8637_v10 }
 0x7d4   :  { %v767_v3 = vmul.f32 %v8200_v1, %v8196_v56  ;;  %v868_v12 = vpop.permute.xlu0 %867 }
 0x7d6   :  { %v769_v4 = vpack.c.bf16 %v767_v3, %v767_v3 }
 0x7d7   :  { %v8202_v5 = vpop.eup %8201 }
 0x7d8   :  { %v768_v7 = vmul.f32 %v8202_v5, %v8198_v58  ;;  %7654 = vmatmul.mubr.msk.bf16.vlgmr.msra.gmra.mrb[16].mxu1 %vm426_vm5, %v769_v4 }
 0x7d9   :  { %7664 = vmatpush3.bf16.xpose.msra.mxu1 %v875_v6  ;;  %7665 = vmatprep.mubr.msk.bf16.mxu1 %vm8638_vm3, %v8637_v10 }
 0x7da   :  { %v770_v9 = vpack.c.bf16 %v768_v7, %v768_v7  ;;  %7675 = vmatprep.subr.bf16.mxu1 %v8637_v10 }
 0x7dc   :  { %7660 = vmatmul.mubr.msk.bf16.vlgmr.msra.gmra.mrb[16].mxu0 %vm426_vm5, %v770_v9 }
 0x7dd   :  { %7670 = vmatpush3.bf16.xpose.msra.mxu0 %v925_v11  ;;  %7671 = vmatprep.mubr.msk.bf16.mxu0 %vm8638_vm3, %v8637_v10 }
 0x7de   :  { %7681 = vmatprep.subr.bf16.mxu0 %v8637_v10 }
 0x7e0   :  { %7666 = vmatmul.mubr.msk.bf16.vlgmr.msra.gmra.mrb[20].mxu1 %vm426_vm5, %v868_v12 }
 0x7e1   :  { %7677 = vmatprep.mubr.msk.bf16.mxu1 %vm8638_vm3, %v8637_v10 }
 0x7e4   :  { %7672 = vmatmul.mubr.msk.bf16.vlgmr.msra.gmra.mrb[20].mxu0 %vm426_vm5, %v918_v13 }
 0x7e5   :  { %7683 = vmatprep.mubr.msk.bf16.mxu0 %vm8638_vm3, %v8637_v10 }
 0x8ab   :  { %v9052_v14 = vpop.f32.mrb[16].mxu1 }
 0x8ac   :  { %v7655_v15 = vpop.f32.mrb[17].mxu1 }
 0x8ad   :  { %v816_v16 = vpop.f32.mrb[18].mxu1 }
 0x8ae   :  { %v7656_v17 = vpop.f32.mrb[19].mxu1 }
 0x8af   :  { %v9054_v18 = vpop.f32.mrb[16].mxu0 }
 0x8b0   :  { %v7891_v19 = vpack.i.bf16 %v9054_v18, %v9052_v14  ;;  %v7661_v20 = vpop.f32.mrb[17].mxu0 }
 0x8b1   :  { %v864_v22 = vpop.f32.mrb[18].mxu0 }
 0x8b2   :  { %v7662_v23 = vpop.f32.mrb[19].mxu0 }
 0x8b3   :  { %v911_v26 = vpop.f32.mrb[20].mxu1 }
 0x8b4   :  { %v967_v31 = vmul.f32 0.35355338, %v911_v26  ;;  %v7667_v32 = vpop.f32.mrb[21].mxu1 }
 0x8b5   :  { %v914_v33 = vpop.f32.mrb[22].mxu1 }
 0x8b6   :  { %v7668_v34 = vpop.f32.mrb[23].mxu1  ;;  %v969_v36 = vsel %vm426_vm5, %v967_v31, -inf }
 0x8b7   :  { %v961_v37 = vpop.f32.mrb[20].mxu0  ;;  %970 = vmax.xlane.f32.xlu0 %v969_v36 }
 0x8b8   :  { %v968_v39 = vmul.f32 0.35355338, %v961_v37  ;;  %v7673_v40 = vpop.f32.mrb[21].mxu0 }
 0x8b9   :  { %v964_v41 = vpop.f32.mrb[22].mxu0 }
 0x8ba   :  { %v7674_v42 = vpop.f32.mrb[23].mxu0  ;;  %v972_v43 = vsel %vm426_vm5, %v968_v39, -inf }
 0x8bb   :  { %973 = vmax.xlane.f32.xlu1 %v972_v43 }
 0x8cc   :  { %993 = vrot.lane.b32.xlu1 %v8956_v35, %s8645_s19 }
 0x8d0   :  { %1091 = vrot.lane.b32.xlu1 %v8956_v35, %s8646_s2 }
 0x8d4   :  { %1141 = vrot.lane.b32.xlu1 %v8960_v38, %s8646_s2 }
 0x8d8   :  { %1139 = vrot.lane.b32.xlu1 %v8960_v38, %s8647_s21 }
 0x944   :  { %v971_v44 = vpop.xlane.xlu0 %970 }
 0x945   :  { %v975_v45 = vsub.f32 %v967_v31, %v971_v44 }
 0x947   :  { %v977_v46 = vmul.f32 1.442695, %v975_v45 }
 0x948   :  { %v974_v47 = vpop.xlane.xlu1 %973 }
 0x949   :  { %8203 = vpow2.f32 %v977_v46  ;;  %v976_v48 = vsub.f32 %v968_v39, %v974_v47 }
 0x94b   :  { %v979_v49 = vmul.f32 1.442695, %v976_v48 }
 0x94c   :  { %v994_v50 = vpop.permute.xlu1 %993 }
 0x94d   :  { %8205 = vpow2.f32 %v979_v49  ;;  %v999_v51 = vsel %vm553_vm6, %v994_v50, 0 }
 0x94e   :  { %7676 = vmatpush3.bf16.msra.mxu1 %v999_v51 }
 0x94f   :  { %7687 = vmatprep.subr.bf16.mxu1 %v8637_v10 }
 0x950   :  { %v1092_v61 = vpop.permute.xlu1 %1091 }
 0x951   :  { %v1097_v2 = vsel %vm426_vm5, %v1092_v61, 0  ;;  %v7924_v61 = vld [vmem:[#allocation8 + $0x8] sm:$0xff]  }
 0x953   :  { %v8204_v52 = vpop.eup %8203 }
 0x954   :  { %v981_v53 = vsel %vm426_vm5, %v8204_v52, 0.0  ;;  %v1142_v4 = vpop.permute.xlu1 %1141 }
 0x955   :  { %982 = vadd.xlane.f32.xlu0 %v981_v53  ;;  %v1147_v6 = vsel %vm426_vm5, %v1142_v4, 0 }
 0x957   :  { %v8206_v54 = vpop.eup %8205 }
 0x958   :  { %v984_v55 = vsel %vm426_vm5, %v8206_v54, 0.0  ;;  %v1140_v8 = vpop.permute.xlu1 %1139 }
 0x959   :  { %985 = vadd.xlane.f32.xlu0 %v984_v55 }
 0x96f   :  { %1041 = vrot.lane.b32.xlu0 %v8960_v38, %s8645_s19 }
 0x973   :  { %1089 = vrot.lane.b32.xlu0 %v8956_v35, %s8647_s21 }
 0x9e2   :  { %v983_v56 = vpop.xlane.xlu0 %982 }
 0x9e3   :  { %8207 = vrcp.f32 %v983_v56 }
 0x9e6   :  { %v986_v57 = vpop.xlane.xlu0 %985 }
 0x9e7   :  { %8209 = vrcp.f32 %v986_v57 }
 0x9ea   :  { %v1042_v58 = vpop.permute.xlu0 %1041 }
 0x9eb   :  { %v1047_v59 = vsel %vm553_vm6, %v1042_v58, 0 }
 0x9ec   :  { %7682 = vmatpush3.bf16.msra.mxu0 %v1047_v59 }
 0x9ed   :  { %v8208_v60 = vpop.eup %8207  ;;  %7693 = vmatprep.subr.bf16.mxu0 %v8637_v10 }
 0x9ee   :  { %v989_v62 = vmul.f32 %v8208_v60, %v8204_v52  ;;  %v1090_v7 = vpop.permute.xlu0 %1089 }
 0x9f0   :  { %v991_v63 = vpack.c.bf16 %v989_v62, %v989_v62 }
 0x9f1   :  { %v8210_v1 = vpop.eup %8209 }
 0x9f2   :  { %v990_v3 = vmul.f32 %v8210_v1, %v8206_v54  ;;  %7678 = vmatmul.mubr.msk.bf16.vlgmr.msra.gmra.mrb[24].mxu1 %vm426_vm5, %v991_v63 }
 0x9f3   :  { %7688 = vmatpush3.bf16.xpose.msra.mxu1 %v1097_v2  ;;  %7689 = vmatprep.mubr.msk.bf16.mxu1 %vm8638_vm3, %v8637_v10 }
 0x9f4   :  { %v992_v5 = vpack.c.bf16 %v990_v3, %v990_v3  ;;  %7699 = vmatprep.subr.bf16.mxu1 %v8637_v10 }
 0x9f6   :  { %7684 = vmatmul.mubr.msk.bf16.vlgmr.msra.gmra.mrb[24].mxu0 %vm426_vm5, %v992_v5 }
 0x9f7   :  { %7694 = vmatpush3.bf16.xpose.msra.mxu0 %v1147_v6  ;;  %7695 = vmatprep.mubr.msk.bf16.mxu0 %vm8638_vm3, %v8637_v10 }
 0x9f8   :  { %7705 = vmatprep.subr.bf16.mxu0 %v8637_v10 }
 0x9fa   :  { %7690 = vmatmul.mubr.msk.bf16.vlgmr.msra.gmra.mrb[28].mxu1 %vm426_vm5, %v1090_v7 }
 0x9fb   :  { %7701 = vmatprep.mubr.msk.bf16.mxu1 %vm8638_vm3, %v8637_v10 }
 0x9fe   :  { %7696 = vmatmul.mubr.msk.bf16.vlgmr.msra.gmra.mrb[28].mxu0 %vm426_vm5, %v1140_v8 }
 0x9ff   :  { %7707 = vmatprep.mubr.msk.bf16.mxu0 %vm8638_vm3, %v8637_v10 }
 0xac5   :  { %v1035_v9 = vpop.f32.mrb[24].mxu1 }
 0xac6   :  { %v7679_v11 = vpop.f32.mrb[25].mxu1 }
 0xac7   :  { %v1038_v12 = vpop.f32.mrb[26].mxu1 }
 0xac8   :  { %v7680_v13 = vpop.f32.mrb[27].mxu1 }
 0xac9   :  { %v1083_v15 = vpop.f32.mrb[24].mxu0 }
 0xaca   :  { %v7896_v16 = vpack.i.bf16 %v1083_v15, %v1035_v9  ;;  %v7685_v17 = vpop.f32.mrb[25].mxu0 }
 0xacb   :  { %v1086_v20 = vpop.f32.mrb[26].mxu0 }
 0xacc   :  { %v7686_v22 = vpop.f32.mrb[27].mxu0 }
 0xacd   :  { %v1133_v23 = vpop.f32.mrb[28].mxu1 }
 0xace   :  { %v1189_v26 = vmul.f32 0.35355338, %v1133_v23  ;;  %v7691_v31 = vpop.f32.mrb[29].mxu1 }
 0xacf   :  { %v1136_v32 = vpop.f32.mrb[30].mxu1 }
 0xad0   :  { %v7692_v33 = vpop.f32.mrb[31].mxu1  ;;  %v1191_v34 = vsel %vm426_vm5, %v1189_v26, -inf }
 0xad1   :  { %v1183_v36 = vpop.f32.mrb[28].mxu0  ;;  %1192 = vmax.xlane.f32.xlu0 %v1191_v34 }
 0xad2   :  { %v1190_v37 = vmul.f32 0.35355338, %v1183_v36  ;;  %v7697_v39 = vpop.f32.mrb[29].mxu0 }
 0xad3   :  { %v1186_v40 = vpop.f32.mrb[30].mxu0 }
 0xad4   :  { %v7698_v41 = vpop.f32.mrb[31].mxu0  ;;  %v1194_v42 = vsel %vm426_vm5, %v1190_v37, -inf }
 0xad5   :  { %1195 = vmax.xlane.f32.xlu1 %v1194_v42 }
 0xae6   :  { %1215 = vrot.lane.b32.xlu1 %v8956_v35, %s8648_s7 }
 0xaea   :  { %7892 = vrot.lane.b32.xlu1 %v7891_v19, %s8619_s24 }
 0xaee   :  { %7897 = vrot.lane.b32.xlu1 %v7896_v16, %s8649_s5 }
 0xb5e   :  { %v1193_v43 = vpop.xlane.xlu0 %1192 }
 0xb5f   :  { %v1197_v44 = vsub.f32 %v1189_v26, %v1193_v43 }
 0xb61   :  { %v1199_v45 = vmul.f32 1.442695, %v1197_v44 }
 0xb62   :  { %v1196_v46 = vpop.xlane.xlu1 %1195 }
 0xb63   :  { %8211 = vpow2.f32 %v1199_v45  ;;  %v1198_v47 = vsub.f32 %v1190_v37, %v1196_v46 }
 0xb65   :  { %v1201_v48 = vmul.f32 1.442695, %v1198_v47 }
 0xb66   :  { %v1216_v49 = vpop.permute.xlu1 %1215 }
 0xb67   :  { %8213 = vpow2.f32 %v1201_v48  ;;  %v1221_v50 = vsel %vm553_vm6, %v1216_v49, 0  ;;  %v1454_v49 = vld [vmem:[#allocation10] sm:$0xff] }
 0xb68   :  { %7700 = vmatpush3.bf16.msra.mxu1 %v1221_v50  ;;  %v1462_v50 = vld [vmem:[#allocation10 + $0x40] sm:$0xff] }
 0xb69   :  { %7711 = vmatprep.subr.bf16.mxu1 %v8637_v10 }
 0xb6a   :  { %v7893_v8 = vpop.permute.xlu1 %7892 }
 0xb6b   :  { %v7895_v11 = vunpack.i.h.bf16 %v7893_v8  ;;  %v7894_v12 = vunpack.i.l.bf16 %v7893_v8 }
 0xb6d   :  { %v8212_v35 = vpop.eup %8211  ;;  %v1336_v17 = vsel %vm426_vm5, %v9014_v30, %v7895_v11  ;;  %v1335_v20 = vsel %vm426_vm5, %v9012_v21, %v7894_v12  ;;  %v1350_v30 = vsub.s32 2, %v8948_v27 }
 0xb6e   :  { %v1203_v14 = vsel %vm426_vm5, %v8212_v35, 0.0  ;;  %v7898_v9 = vpop.permute.xlu1 %7897 }
 0xb6f   :  { %1204 = vadd.xlane.f32.xlu0 %v1203_v14  ;;  %v7900_v13 = vunpack.i.h.bf16 %v7898_v9  ;;  %v7899_v15 = vunpack.i.l.bf16 %v7898_v9  ;;  %v1351_v21 = vrot.slane %v8951_v29, %v1350_v30  ;;  %v6786_v14 = vcombine.high %v1454_v49, %v1462_v50 }
 0xb71   :  { %v8214_v18 = vpop.eup %8213  ;;  %v1339_v26 = vsel %vm1337_vm7, %v1336_v17, %v7900_v13  ;;  %v1338_v31 = vsel %vm1337_vm7, %v1335_v20, %v7899_v15 }
 0xb72   :  { %v1206_v19 = vsel %vm426_vm5, %v8214_v18, 0.0 }
 0xb73   :  { %1207 = vadd.xlane.f32.xlu0 %v1206_v19  ;;  %v6785_v19 = vcombine.low %v1454_v49, %v1462_v50  ;;  %v1458_v50 = vld [vmem:[#allocation10 + $0x20] sm:$0xff] }
 0xb89   :  { %1263 = vrot.lane.b32.xlu0 %v8960_v38, %s8648_s7  ;;  %v7923_v38 = vld [vmem:[#allocation8] sm:$0xff]  }
 0xbfc   :  { %v1205_v51 = vpop.xlane.xlu0 %1204 }
 0xbfd   :  { %8215 = vrcp.f32 %v1205_v51 }
 0xc00   :  { %v1208_v52 = vpop.xlane.xlu0 %1207 }
 0xc01   :  { %8217 = vrcp.f32 %v1208_v52 }
 0xc04   :  { %v1264_v53 = vpop.permute.xlu0 %1263 }
 0xc05   :  { %v1269_v54 = vsel %vm553_vm6, %v1264_v53, 0  ;;  %v1470_v53 = vld [vmem:[#allocation10 + $0x80] sm:$0xff] }
 0xc06   :  { %7706 = vmatpush3.bf16.msra.mxu0 %v1269_v54  ;;  %v1478_v54 = vld [vmem:[#allocation10 + $0xc0] sm:$0xff] }
 0xc07   :  { %v8216_v55 = vpop.eup %8215  ;;  %1713 = vmatprep.subr.bf16.mxu0 %v6786_v14  ;;  %v1467_v14 = vld [vmem:[#allocation10 + $0x68] sm:$0xff] }
 0xc08   :  { %v1211_v56 = vmul.f32 %v8216_v55, %v8212_v35  ;;  %v1455_v35 = vld [vmem:[#allocation10 + $0x8] sm:$0xff] }
 0xc09   :  { %v1471_v55 = vld [vmem:[#allocation10 + $0x88] sm:$0xff] }
 0xc0a   :  { %v1213_v57 = vpack.c.bf16 %v1211_v56, %v1211_v56  ;;  %v6802_v56 = vcombine.high %v1470_v53, %v1478_v54 }
 0xc0b   :  { %v8218_v58 = vpop.eup %8217 }
 0xc0c   :  { %v1212_v59 = vmul.f32 %v8218_v58, %v8214_v18  ;;  %7702 = vmatmul.mubr.msk.bf16.vlgmr.msra.gmra.mrb[32].mxu1 %vm426_vm5, %v1213_v57  ;;  %v1463_v18 = vld [vmem:[#allocation10 + $0x48] sm:$0xff]  ;;  %v6801_v58 = vcombine.low %v1470_v53, %v1478_v54  ;;  %v1474_v53 = vld [vmem:[#allocation10 + $0xa0] sm:$0xff] }
 0xc0d   :  { %7715 = vmatprep.mubr.msk.bf16.mxu1 %vm8638_vm3, %v8637_v10  ;;  %7712 = vmatpush3.bf16.msra.mxu1 %v7923_v38  ;;  %v6787_v51 = vcombine.low %v1455_v35, %v1463_v18  ;;  %v6788_v52 = vcombine.high %v1455_v35, %v1463_v18  ;;  %v1479_v57 = vld [vmem:[#allocation10 + $0xc8] sm:$0xff]  ;;  %v1456_v38 = vld [vmem:[#allocation10 + $0x10] sm:$0xff]  ;;  %v1466_v35 = vld [vmem:[#allocation10 + $0x60] sm:$0xff] }
 0xc0e   :  { %v1214_v60 = vpack.c.bf16 %v1212_v59, %v1212_v59  ;;  %7713 = vmatprep.subr.bf16.mxu1 %v8637_v10  ;;  %v6803_v59 = vcombine.low %v1471_v55, %v1479_v57  ;;  %v1482_v54 = vld [vmem:[#allocation10 + $0xe0] sm:$0xff] }
 0xc10   :  { %7708 = vmatmul.mubr.msk.bf16.vlgmr.msra.gmra.mrb[32].mxu0 %vm426_vm5, %v1214_v60  ;;  %v6804_v60 = vcombine.high %v1471_v55, %v1479_v57  ;;  %v1475_v55 = vld [vmem:[#allocation10 + $0xa8] sm:$0xff]  ;;  %v6793_v57 = vcombine.low %v1458_v50, %v1466_v35 }
 0xc11   :  { %1745 = vmatprep.mubr.bf16.mxu0 %v8636_v0  ;;  %7714 = vmatpush3.bf16.msra.mxu1 %v7924_v61  ;;  %v1464_v61 = vld [vmem:[#allocation10 + $0x50] sm:$0xff] }
 0xc12   :  { %1756 = vmatprep.subr.bf16.mxu1 %v6788_v52  ;;  %1714 = vmatpush1.bf16.msra.mxu0 %v6785_v19 }
 0xc13   :  { %1715 = vmatprep.subr.bf16.mxu0 %v6802_v56  ;;  %v1483_v56 = vld [vmem:[#allocation10 + $0xe8] sm:$0xff] }
 0xc16   :  { %1716 = vmatpush1.bf16.msra.mxu0 %v6801_v58 }
 0xcdf   :  { %v1257_v62 = vpop.f32.mrb[32].mxu1 }
 0xce0   :  { %v7703_v63 = vpop.f32.mrb[33].mxu1 }
 0xce1   :  { %v1260_v1 = vpop.f32.mrb[34].mxu1  ;;  %v6790_v63 = vcombine.high %v1456_v38, %v1464_v61 }
 0xce2   :  { %v7704_v2 = vpop.f32.mrb[35].mxu1  ;;  %v1465_v1 = vld [vmem:[#allocation10 + $0x58] sm:$0xff] }
 0xce3   :  { %v1305_v3 = vpop.f32.mrb[32].mxu0  ;;  %v6789_v2 = vcombine.low %v1456_v38, %v1464_v61  ;;  %1799 = vmatprep.subr.bf16.mxu0 %v6790_v63  ;;  %v1460_v38 = vld [vmem:[#allocation10 + $0x30] sm:$0xff]  ;;  %v1469_v63 = vld [vmem:[#allocation10 + $0x78] sm:$0xff] }
 0xce4   :  { %v7901_v4 = vpack.i.bf16 %v1305_v3, %v1257_v62  ;;  %v7709_v5 = vpop.f32.mrb[33].mxu0  ;;  %v1457_v62 = vld [vmem:[#allocation10 + $0x18] sm:$0xff]  ;;  %v1468_v61 = vld [vmem:[#allocation10 + $0x70] sm:$0xff] }
 0xce5   :  { %v1308_v6 = vpop.f32.mrb[34].mxu0  ;;  %v6791_v3 = vcombine.low %v1457_v62, %v1465_v1 }
 0xce6   :  { %v7710_v7 = vpop.f32.mrb[35].mxu0  ;;  %7902 = vrot.lane.b32.xlu0 %v7901_v4, %s8650_s6  ;;  %v6792_v4 = vcombine.high %v1457_v62, %v1465_v1  ;;  %v1461_v62 = vld [vmem:[#allocation10 + $0x38] sm:$0xff]  ;;  %v6809_v1 = vcombine.low %v1474_v53, %v1482_v54 }
 0xd58   :  { %v7903_v16 = vpop.permute.xlu0 %7902 }
 0xd59   :  { %v7905_v22 = vunpack.i.h.bf16 %v7903_v16  ;;  %v7904_v23 = vunpack.i.l.bf16 %v7903_v16 }
 0xd5b   :  { %v1342_v32 = vsel %vm1340_vm8, %v1339_v26, %v7905_v22  ;;  %v1341_v33 = vsel %vm1340_vm8, %v1338_v31, %v7904_v23  ;;  %v1443_v26 = vsub.s32 3, %v8948_v27 }
 0xd5c   :  { %v1343_v34 = vpack.c.bf16 %v1342_v32, %v1341_v33  ;;  %v1449_v33 = vsub.s32 4, %v8948_v27 }
 0xd5d   :  { %v1444_v32 = vrot.slane %v8951_v29, %v1443_v26 }
 0xd5e   :  { %7716 = vmatmul.mubr.msk.bf16.vlgmr.msra.gmra.mrb[36].mxu1 %vm376_vm4, %v1343_v34 }
 0xd5f   :  { %1788 = vmatprep.mubr.bf16.mxu1 %v8636_v0  ;;  %1757 = vmatpush1.bf16.msra.mxu1 %v6787_v51  ;;  %v6794_v51 = vcombine.high %v1458_v50, %v1466_v35  ;;  %v7946_v50 = vld [vmem:[#allocation11 + $0xe8] sm:$0xff]  }
 0xd60   :  { %1758 = vmatprep.subr.bf16.mxu1 %v6804_v60  ;;  %v6812_v60 = vcombine.high %v1475_v55, %v1483_v56  ;;  %v7947_v35 = vld [vmem:[#allocation11 + $0x28] sm:$0xff]  }
 0xd63   :  { %1759 = vmatpush1.bf16.msra.mxu1 %v6803_v59  ;;  %v6810_v59 = vcombine.high %v1474_v53, %v1482_v54  ;;  %v7954_v53 = vld [vmem:[#allocation11 + $0xf8] sm:$0xff]  }
 0xd64   :  { %1842 = vmatprep.subr.bf16.mxu1 %v6792_v4  ;;  %v6800_v4 = vcombine.high %v1461_v62, %v1469_v63  ;;  %v7955_v54 = vld [vmem:[#allocation11 + $0x38] sm:$0xff]  }
 0xe31   :  { %v1401_v36 = vpop.f32.mrb[36].mxu1 }
 0xe32   :  { %v1402_v37 = vadd.f32 %v1401_v36, %v1351_v21  ;;  %v7717_v39 = vpop.f32.mrb[37].mxu1 }
 0xe33   :  { %v1404_v40 = vpop.f32.mrb[38].mxu1  ;;  %v1450_v39 = vrot.slane %v8951_v29, %v1449_v33  ;;  %v1459_v29 = vld [vmem:[#allocation10 + $0x28] sm:$0xff] }
 0xe34   :  { %v9132_v41 = vadd.f32 %v1402_v37, %v8941_v25  ;;  %v1405_v42 = vadd.f32 %v1404_v40, %v1351_v21  ;;  %v7718_v43 = vpop.f32.mrb[39].mxu1  ;;  %v6796_v52 = vcombine.high %v1459_v29, %v1467_v14  ;;  %v6795_v58 = vcombine.low %v1459_v29, %v1467_v14  ;;  %v7948_v29 = vld [vmem:[#allocation11 + $0xa8] sm:$0xff]   ;;  %v7949_v14 = vld [vmem:[#allocation11 + $0x70] sm:$0xff]  }
 0xe36   :  { %v9135_v44 = vadd.f32 %v8939_v24, %v1405_v42  ;;  %v1410_v45 = vsel %vm376_vm4, %v9132_v41, 0.0  ;;  %v1419_v48 = vmul.f32 %v9132_v41, %v9132_v41 }
 0xe37   :  { %1411 = vadd.xlane.f32.xlu1 %v1410_v45  ;;  %v1472_v45 = vld [vmem:[#allocation10 + $0x90] sm:$0xff] }
 0xe38   :  { %v1413_v46 = vsel %vm376_vm4, %v9135_v44, 0.0  ;;  %v1420_v47 = vmul.f32 %v9135_v44, %v9135_v44  ;;  %v1421_v24 = vsel %vm376_vm4, %v1419_v48, 0.0 }
 0xe39   :  { %1414 = vadd.xlane.f32.xlu0 %v1413_v46  ;;  %v1473_v46 = vld [vmem:[#allocation10 + $0x98] sm:$0xff] }
 0xe3a   :  { %v1424_v25 = vsel %vm376_vm4, %v1420_v47, 0.0  ;;  %v1481_v47 = vld [vmem:[#allocation10 + $0xd8] sm:$0xff] }
 0xe3b   :  { %1425 = vadd.xlane.f32.xlu1 %v1424_v25  ;;  %v6808_v49 = vcombine.high %v1473_v46, %v1481_v47  ;;  %v6807_v19 = vcombine.low %v1473_v46, %v1481_v47  ;;  %v7941_v46 = vld [vmem:[#allocation11 + $0x60] sm:$0xff]  }
 0xe3c   :  { %v7942_v47 = vld [vmem:[#allocation11 + $0xe0] sm:$0xff]  }
 0xe3d   :  { %1422 = vadd.xlane.f32.xlu0 %v1421_v24 }
 0xec4   :  { %v1412_v5 = vpop.xlane.xlu1 %1411 }
 0xec5   :  { %v1417_v7 = vmul.f32 0.03125, %v1412_v5  ;;  %v1476_v5 = vld [vmem:[#allocation10 + $0xb0] sm:$0xff] }
 0xec6   :  { %v1415_v6 = vpop.xlane.xlu0 %1414 }
 0xec7   :  { %v1418_v8 = vmul.f32 0.03125, %v1415_v6  ;;  %v1429_v15 = vmul.f32 %v1417_v7, %v1417_v7  ;;  %v1433_v21 = vsub.f32 %v9132_v41, %v1417_v7  ;;  %v1484_v6 = vld [vmem:[#allocation10 + $0xf0] sm:$0xff]  ;;  %v1477_v7 = vld [vmem:[#allocation10 + $0xb8] sm:$0xff] }
 0xec8   :  { %v1426_v9 = vpop.xlane.xlu1 %1425 }
 0xec9   :  { %v1430_v11 = vmul.f32 %v1418_v8, %v1418_v8  ;;  %v1428_v12 = vmul.f32 0.03125, %v1426_v9  ;;  %v1434_v31 = vsub.f32 %v9135_v44, %v1418_v8  ;;  %v1480_v44 = vld [vmem:[#allocation10 + $0xd0] sm:$0xff]  ;;  %v1485_v8 = vld [vmem:[#allocation10 + $0xf8] sm:$0xff]  ;;  %v6797_v9 = vcombine.low %v1460_v38, %v1468_v61 }
 0xeca   :  { %v1423_v13 = vpop.xlane.xlu0 %1422  ;;  %v6806_v24 = vcombine.high %v1472_v45, %v1480_v44  ;;  %v6805_v18 = vcombine.low %v1472_v45, %v1480_v44  ;;  %v7939_v45 = vld [vmem:[#allocation11 + $0x18] sm:$0xff]  }
 0xecb   :  { %v1432_v16 = vsub.f32 %v1428_v12, %v1430_v11  ;;  %v1427_v17 = vmul.f32 0.03125, %v1423_v13  ;;  %v6799_v11 = vcombine.low %v1461_v62, %v1469_v63  ;;  %v6814_v12 = vcombine.high %v1476_v5, %v1484_v6  ;;  %v7940_v44 = vld [vmem:[#allocation11 + $0x98] sm:$0xff]  }
 0xecc   :  { %v6816_v13 = vcombine.high %v1477_v7, %v1485_v8 }
 0xecd   :  { %v1436_v20 = vadd.f32 1e-05, %v1432_v16  ;;  %v1431_v22 = vsub.f32 %v1427_v17, %v1429_v15  ;;  %v6813_v15 = vcombine.low %v1476_v5, %v1484_v6  ;;  %v6815_v16 = vcombine.low %v1477_v7, %v1485_v8  ;;  %v7925_v17 = vld [vmem:[#allocation11 + $0x40] sm:$0xff]   ;;  %v345_v6 = vld [vmem:[#allocation13 + $0x30] sm:$0xff] }
 0xece   :  { %v343_v5 = vld [vmem:[#allocation13 + $0x20] sm:$0xff] }
 0xecf   :  { %8219 = vrsqrt.f32 %v1436_v20  ;;  %v1435_v23 = vadd.f32 1e-05, %v1431_v22  ;;  %v7926_v20 = vld [vmem:[#allocation11 + $0xc0] sm:$0xff]  }
 0xed0   :  { %v7927_v22 = vld [vmem:[#allocation11] sm:$0xff]  }
 0xed1   :  { %8221 = vrsqrt.f32 %v1435_v23  ;;  %v7928_v23 = vld [vmem:[#allocation11 + $0x80] sm:$0xff]  }
 0xed9   :  { %v8220_v34 = vpop.eup %8219 }
 0xeda   :  { %v1440_v36 = vmul.f32 %v8220_v34, %v1434_v31  ;;  %v7929_v31 = vld [vmem:[#allocation11 + $0x48] sm:$0xff]  }
 0xedb   :  { %v8222_v37 = vpop.eup %8221  ;;  %v7931_v34 = vld [vmem:[#allocation11 + $0x8] sm:$0xff]  }
 0xedc   :  { %v1446_v40 = vmul.f32 %v1444_v32, %v1440_v36  ;;  %v1439_v42 = vmul.f32 %v8222_v37, %v1433_v21  ;;  %v7932_v21 = vld [vmem:[#allocation11 + $0x88] sm:$0xff]   ;;  %v7933_v36 = vld [vmem:[#allocation11 + $0x50] sm:$0xff]  }
 0xedd   :  { %v7934_v37 = vld [vmem:[#allocation11 + $0xd0] sm:$0xff]  }
 0xede   :  { %v1445_v43 = vmul.f32 %v1444_v32, %v1439_v42  ;;  %v9157_v48 = vadd.f32 %v1450_v39, %v1446_v40  ;;  %v7930_v32 = vld [vmem:[#allocation11 + $0xc8] sm:$0xff]   ;;  %v7936_v40 = vld [vmem:[#allocation11 + $0x90] sm:$0xff]   ;;  %v7937_v42 = vld [vmem:[#allocation11 + $0x58] sm:$0xff]  }
 0xee0   :  { %v9159_v25 = vadd.f32 %v1450_v39, %v1445_v43  ;;  %v7935_v39 = vld [vmem:[#allocation11 + $0x10] sm:$0xff]   ;;  %v7938_v43 = vld [vmem:[#allocation11 + $0xd8] sm:$0xff]  }
 0xee2   :  { %v9163_v41 = vpack.c.bf16 %v9157_v48, %v9159_v25 }
 0xee4   :  { %6817 = vmatmul.mubr.msk.bf16.vlgmr.msra.gmra.mrb[36].mxu0 %vm376_vm4, %v9163_v41  ;;  %6818 = vmatmul.mubr.msk.bf16.vlgmr.msra.gmra.mrb[40].mxu1 %vm376_vm4, %v9163_v41 }
 0xee5   :  { %1800 = vmatpush1.bf16.msra.mxu0 %v6789_v2  ;;  %1843 = vmatpush1.bf16.msra.mxu1 %v6791_v3  ;;  %v6811_v2 = vcombine.low %v1475_v55, %v1483_v56  ;;  %v6798_v3 = vcombine.high %v1460_v38, %v1468_v61  ;;  %v7956_v55 = vld [vmem:[#allocation11 + $0xb8] sm:$0xff]   ;;  %v7957_v56 = vld [vmem:[#allocation11 + $0x140] sm:$0xff]  }
 0xee6   :  { %1801 = vmatprep.subr.bf16.mxu0 %v6806_v24  ;;  %1844 = vmatprep.subr.bf16.mxu1 %v6808_v49  ;;  %v7944_v24 = vld [vmem:[#allocation11 + $0xa0] sm:$0xff]   ;;  %v7945_v49 = vld [vmem:[#allocation11 + $0x68] sm:$0xff]   ;;  %v342_v38 = vld [vmem:[#allocation13 + $0x18] sm:$0xff] }
 0xee7   :  { %1831 = vmatprep.mubr.bf16.mxu0 %v8636_v0  ;;  %1874 = vmatprep.mubr.bf16.mxu1 %v8636_v0  ;;  %v9190_v61 = vld [vmem:[#allocation13] sm:$0xff] }
 0xee9   :  { %1802 = vmatpush1.bf16.msra.mxu0 %v6805_v18  ;;  %1845 = vmatpush1.bf16.msra.mxu1 %v6807_v19  ;;  %v7950_v18 = vld [vmem:[#allocation11 + $0xf0] sm:$0xff]  }
 0xeea   :  { %1885 = vmatprep.subr.bf16.mxu0 %v6794_v51  ;;  %1928 = vmatprep.subr.bf16.mxu1 %v6796_v52  ;;  %v7951_v19 = vld [vmem:[#allocation11 + $0x30] sm:$0xff]   ;;  %v7953_v52 = vld [vmem:[#allocation11 + $0x78] sm:$0xff]  }
 0xeeb   :  { %v7952_v51 = vld [vmem:[#allocation11 + $0xb0] sm:$0xff]  }
 0xeec   :  { %6819 = vmatmul.mubr.msk.bf16.vlgmr.msra.gmra.mrb[40].mxu0 %vm376_vm4, %v9163_v41  ;;  %6820 = vmatmul.mubr.msk.bf16.vlgmr.msra.gmra.mrb[44].mxu1 %vm376_vm4, %v9163_v41 }
 0xeed   :  { %1886 = vmatpush1.bf16.msra.mxu0 %v6793_v57  ;;  %1929 = vmatpush1.bf16.msra.mxu1 %v6795_v58  ;;  %v7958_v57 = vld [vmem:[#allocation11 + $0x1c0] sm:$0xff]   ;;  %v9188_v58 = vsub.s32 0, %v8948_v27 }
 0xeee   :  { %1887 = vmatprep.subr.bf16.mxu0 %v6810_v59  ;;  %1930 = vmatprep.subr.bf16.mxu1 %v6812_v60  ;;  %v341_v59 = vld [vmem:[#allocation13 + $0x10] sm:$0xff]  ;;  %v340_v60 = vld [vmem:[#allocation13 + $0x8] sm:$0xff] }
 0xeef   :  { %1917 = vmatprep.mubr.bf16.mxu0 %v8636_v0  ;;  %1960 = vmatprep.mubr.bf16.mxu1 %v8636_v0  ;;  %v1489_v62 = vrot.slane %v9190_v61, %v9188_v58  ;;  %v1497_v63 = vrot.slane %v341_v59, %v9188_v58 }
 0xef1   :  { %1888 = vmatpush1.bf16.msra.mxu0 %v6809_v1  ;;  %1931 = vmatpush1.bf16.msra.mxu1 %v6811_v2  ;;  %v1493_v1 = vrot.slane %v340_v60, %v9188_v58  ;;  %v1501_v2 = vrot.slane %v342_v38, %v9188_v58  ;;  %v7961_v60 = vld [vmem:[#allocation11 + $0x148] sm:$0xff]  }
 0xef2   :  { %1971 = vmatprep.subr.bf16.mxu0 %v6798_v3  ;;  %2014 = vmatprep.subr.bf16.mxu1 %v6800_v4  ;;  %v7962_v38 = vld [vmem:[#allocation11 + $0x1c8] sm:$0xff]  }
 0xef4   :  { %6821 = vmatmul.mubr.msk.bf16.vlgmr.msra.gmra.mrb[44].mxu0 %vm376_vm4, %v9163_v41  ;;  %6822 = vmatmul.mubr.msk.bf16.vlgmr.msra.gmra.mrb[48].mxu1 %vm376_vm4, %v9163_v41 }
 0xef5   :  { %1972 = vmatpush1.bf16.msra.mxu0 %v6797_v9  ;;  %2015 = vmatpush1.bf16.msra.mxu1 %v6799_v11 }
 0xef6   :  { %1973 = vmatprep.subr.bf16.mxu0 %v6814_v12  ;;  %2016 = vmatprep.subr.bf16.mxu1 %v6816_v13  ;;  %v344_v12 = vld [vmem:[#allocation13 + $0x28] sm:$0xff]  ;;  %v346_v13 = vld [vmem:[#allocation13 + $0x38] sm:$0xff] }
 0xef7   :  { %2003 = vmatprep.mubr.bf16.mxu0 %v8636_v0  ;;  %2046 = vmatprep.mubr.bf16.mxu1 %v8636_v0 }
 0xef9   :  { %1974 = vmatpush1.bf16.msra.mxu0 %v6813_v15  ;;  %2017 = vmatpush1.bf16.msra.mxu1 %v6815_v16 }
 0xefa   :  { %7195 = vmatprep.subr.bf16.mxu0 %v7925_v17  ;;  %7217 = vmatprep.subr.bf16.mxu1 %v7926_v20 }
 0xefc   :  { %6823 = vmatmul.mubr.msk.bf16.vlgmr.msra.gmra.mrb[48].mxu0 %vm376_vm4, %v9163_v41  ;;  %6824 = vmatmul.mubr.msk.bf16.vlgmr.msra.gmra.mrb[52].mxu1 %vm376_vm4, %v9163_v41  ;;  %v7943_v41 = vld [vmem:[#allocation11 + $0x20] sm:$0xff]  }
 0xefd   :  { %7196 = vmatpush3.bf16.msra.mxu0 %v7927_v22  ;;  %7218 = vmatpush3.bf16.msra.mxu1 %v7928_v23 }
 0xefe   :  { %7197 = vmatprep.subr.bf16.mxu0 %v7929_v31  ;;  %7219 = vmatprep.subr.bf16.mxu1 %v7930_v32 }
 0xf01   :  { %7198 = vmatpush3.bf16.msra.mxu0 %v7931_v34  ;;  %7220 = vmatpush3.bf16.msra.mxu1 %v7932_v21  ;;  %v1505_v34 = vrot.slane %v343_v5, %v9188_v58  ;;  %v1513_v21 = vrot.slane %v345_v6, %v9188_v58 }
 0xf02   :  { %7199 = vmatprep.subr.bf16.mxu0 %v7933_v36  ;;  %7221 = vmatprep.subr.bf16.mxu1 %v7934_v37 }
 0xf05   :  { %7200 = vmatpush3.bf16.msra.mxu0 %v7935_v39  ;;  %7222 = vmatpush3.bf16.msra.mxu1 %v7936_v40  ;;  %v1509_v39 = vrot.slane %v344_v12, %v9188_v58  ;;  %v1517_v40 = vrot.slane %v346_v13, %v9188_v58 }
 0xf06   :  { %7201 = vmatprep.subr.bf16.mxu0 %v7937_v42  ;;  %7223 = vmatprep.subr.bf16.mxu1 %v7938_v43 }
 0xf09   :  { %7202 = vmatpush3.bf16.msra.mxu0 %v7939_v45  ;;  %7224 = vmatpush3.bf16.msra.mxu1 %v7940_v44 }
 0xf0a   :  { %7203 = vmatprep.subr.bf16.mxu0 %v7941_v46  ;;  %7225 = vmatprep.subr.bf16.mxu1 %v7942_v47 }
 0xf0d   :  { %7204 = vmatpush3.bf16.msra.mxu0 %v7943_v41  ;;  %7226 = vmatpush3.bf16.msra.mxu1 %v7944_v24 }
 0xf0e   :  { %7205 = vmatprep.subr.bf16.mxu0 %v7945_v49  ;;  %7227 = vmatprep.subr.bf16.mxu1 %v7946_v50  ;;  %v347_v49 = vld [vmem:[#allocation13 + $0x40] sm:$0xff] }
 0xf11   :  { %7206 = vmatpush3.bf16.msra.mxu0 %v7947_v35  ;;  %7228 = vmatpush3.bf16.msra.mxu1 %v7948_v29  ;;  %v349_v29 = vld [vmem:[#allocation13 + $0x50] sm:$0xff] }
 0xf12   :  { %7207 = vmatprep.subr.bf16.mxu0 %v7949_v14  ;;  %7229 = vmatprep.subr.bf16.mxu1 %v7950_v18  ;;  %v1529_v5 = vrot.slane %v349_v29, %v9188_v58 }
 0xf15   :  { %7208 = vmatpush3.bf16.msra.mxu0 %v7951_v19  ;;  %7230 = vmatpush3.bf16.msra.mxu1 %v7952_v51 }
 0xf16   :  { %7209 = vmatprep.subr.bf16.mxu0 %v7953_v52  ;;  %7231 = vmatprep.subr.bf16.mxu1 %v7954_v53  ;;  %v7959_v52 = vld [vmem:[#allocation11 + $0x100] sm:$0xff]  }
 0xf17   :  { %v7960_v53 = vld [vmem:[#allocation11 + $0x180] sm:$0xff]  }
 0xf19   :  { %7210 = vmatpush3.bf16.msra.mxu0 %v7955_v54  ;;  %7232 = vmatpush3.bf16.msra.mxu1 %v7956_v55  ;;  %v348_v54 = vld [vmem:[#allocation13 + $0x48] sm:$0xff] }
 0xf1a   :  { %7239 = vmatprep.subr.bf16.mxu0 %v7957_v56  ;;  %7261 = vmatprep.subr.bf16.mxu1 %v7958_v57 }
 0xfb7   :  { %v1747_v3 = vpop.f32.mrb[36].mxu0  ;;  %v1790_v4 = vpop.f32.mrb[40].mxu1 }
 0xfb8   :  { %v1748_v7 = vadd.f32 %v1747_v3, %v1489_v62  ;;  %v1791_v8 = vadd.f32 %v1790_v4, %v1497_v63  ;;  %v1749_v9 = vpop.f32.mrb[37].mxu0  ;;  %v1792_v11 = vpop.f32.mrb[41].mxu1 }
 0xfb9   :  { %v1750_v15 = vadd.f32 %v1749_v9, %v1493_v1  ;;  %v1793_v16 = vadd.f32 %v1792_v11, %v1501_v2  ;;  %v1751_v17 = vpop.f32.mrb[38].mxu0  ;;  %v1794_v20 = vpop.f32.mrb[42].mxu1  ;;  %v1525_v11 = vrot.slane %v348_v54, %v9188_v58 }
 0xfba   :  { %v1752_v22 = vadd.f32 %v1751_v17, %v1489_v62  ;;  %v1795_v23 = vadd.f32 %v1794_v20, %v1497_v63  ;;  %v1753_v31 = vpop.f32.mrb[39].mxu0  ;;  %v1796_v32 = vpop.f32.mrb[43].mxu1  ;;  %v2057_v42 = vmax.f32 %v1748_v7, 0.0  ;;  %v2059_v43 = vmax.f32 %v1791_v8, 0.0  ;;  %v350_v63 = vld [vmem:[#allocation13 + $0x58] sm:$0xff] }
 0xfbb   :  { %v1754_v36 = vadd.f32 %v1753_v31, %v1493_v1  ;;  %v1797_v37 = vadd.f32 %v1796_v32, %v1501_v2  ;;  %v2058_v46 = vmax.f32 %v1750_v15, 0.0  ;;  %v2060_v47 = vmax.f32 %v1793_v16, 0.0  ;;  %v7963_v15 = vld [vmem:[#allocation11 + $0x108] sm:$0xff]   ;;  %v7965_v32 = vld [vmem:[#allocation11 + $0x150] sm:$0xff]  }
 0xfbc   :  { %v2073_v45 = vmax.f32 %v1752_v22, 0.0  ;;  %v2075_v44 = vmax.f32 %v1795_v23, 0.0  ;;  %v9202_v62 = vrot.slane %v347_v49, %v9188_v58  ;;  %v7964_v16 = vld [vmem:[#allocation11 + $0x188] sm:$0xff]   ;;  %v1533_v17 = vrot.slane %v350_v63, %v9188_v58  ;;  %v353_v49 = vld [vmem:[#allocation13 + $0x70] sm:$0xff] }
 0xfbd   :  { %v2074_v41 = vmax.f32 %v1754_v36, 0.0  ;;  %v2076_v24 = vmax.f32 %v1797_v37, 0.0 }
 0xfbe   :  { %v2089_v50 = vpack.c.bf16 %v2073_v45, %v2057_v42  ;;  %v2091_v35 = vpack.c.bf16 %v2075_v44, %v2059_v43  ;;  %v7967_v43 = vld [vmem:[#allocation11 + $0x110] sm:$0xff]   ;;  %v351_v45 = vld [vmem:[#allocation13 + $0x60] sm:$0xff] }
 0xfbf   :  { %v2090_v14 = vpack.c.bf16 %v2074_v41, %v2058_v46  ;;  %v2092_v18 = vpack.c.bf16 %v2076_v24, %v2060_v47  ;;  %v1833_v19 = vpop.f32.mrb[40].mxu0  ;;  %v1876_v51 = vpop.f32.mrb[44].mxu1  ;;  %v7968_v24 = vld [vmem:[#allocation11 + $0x190] sm:$0xff]  }
 0xfc0   :  { %v1834_v55 = vadd.f32 %v1833_v19, %v1505_v34  ;;  %v1877_v56 = vadd.f32 %v1876_v51, %v1513_v21  ;;  %v1835_v57 = vpop.f32.mrb[41].mxu0  ;;  %v1878_v59 = vpop.f32.mrb[45].mxu1  ;;  %v7969_v19 = vld [vmem:[#allocation11 + $0x158] sm:$0xff]  }
 0xfc1   :  { %v1836_v1 = vadd.f32 %v1835_v57, %v1509_v39  ;;  %v1879_v2 = vadd.f32 %v1878_v59, %v1517_v40  ;;  %v1837_v3 = vpop.f32.mrb[42].mxu0  ;;  %v1880_v4 = vpop.f32.mrb[46].mxu1  ;;  %3165 = vmatprep.mubr.bf16.mxu0 %v2090_v14  ;;  %3206 = vmatprep.mubr.bf16.mxu1 %v2092_v18  ;;  %v7970_v51 = vld [vmem:[#allocation11 + $0x1d8] sm:$0xff]   ;;  %v1537_v57 = vrot.slane %v351_v45, %v9188_v58 }
 0xfc2   :  { %v1838_v6 = vadd.f32 %v1837_v3, %v1505_v34  ;;  %v1881_v7 = vadd.f32 %v1880_v4, %v1513_v21  ;;  %v1839_v8 = vpop.f32.mrb[43].mxu0  ;;  %v1882_v9 = vpop.f32.mrb[47].mxu1  ;;  %3166 = vmatmul.mubr.bf16.vlgmr.msra.gmra.mrb[52].mxu0 %v2089_v50  ;;  %3207 = vmatmul.mubr.bf16.vlgmr.msra.gmra.mrb[56].mxu1 %v2091_v35  ;;  %v2061_v20 = vmax.f32 %v1834_v55, 0.0  ;;  %v2063_v22 = vmax.f32 %v1877_v56, 0.0  ;;  %v7966_v34 = vld [vmem:[#allocation11 + $0x1d0] sm:$0xff]   ;;  %v352_v50 = vld [vmem:[#allocation13 + $0x68] sm:$0xff] }
 0xfc3   :  { %v1840_v12 = vadd.f32 %v1839_v8, %v1509_v39  ;;  %v1883_v13 = vadd.f32 %v1882_v9, %v1517_v40  ;;  %7240 = vmatpush3.bf16.msra.mxu0 %v7959_v52  ;;  %7262 = vmatpush3.bf16.msra.mxu1 %v7960_v53  ;;  %v2062_v21 = vmax.f32 %v1836_v1, 0.0  ;;  %v2064_v36 = vmax.f32 %v1879_v2, 0.0  ;;  %v354_v52 = vld [vmem:[#allocation13 + $0x78] sm:$0xff] }
 0xfc4   :  { %v2077_v23 = vmax.f32 %v1838_v6, 0.0  ;;  %v2079_v31 = vmax.f32 %v1881_v7, 0.0  ;;  %7241 = vmatprep.subr.bf16.mxu0 %v7961_v60  ;;  %7263 = vmatprep.subr.bf16.mxu1 %v7962_v38  ;;  %v1545_v1 = vrot.slane %v353_v49, %v9188_v58  ;;  %v1541_v2 = vrot.slane %v352_v50, %v9188_v58  ;;  %v7971_v6 = vld [vmem:[#allocation11 + $0x118] sm:$0xff]  }
 0xfc5   :  { %v2078_v37 = vmax.f32 %v1840_v12, 0.0  ;;  %v2080_v42 = vmax.f32 %v1883_v13, 0.0  ;;  %v7972_v7 = vld [vmem:[#allocation11 + $0x198] sm:$0xff]   ;;  %v1549_v8 = vrot.slane %v354_v52, %v9188_v58  ;;  %v7979_v52 = vld [vmem:[#allocation11 + $0x128] sm:$0xff]  }
 0xfc6   :  { %v9207_v39 = vpack.c.bf16 %v2077_v23, %v2061_v20  ;;  %v9209_v40 = vpack.c.bf16 %v2079_v31, %v2063_v22 }
 0xfc7   :  { %v2094_v44 = vpack.c.bf16 %v2078_v37, %v2062_v21  ;;  %v2096_v46 = vpack.c.bf16 %v2080_v42, %v2064_v36  ;;  %7242 = vmatpush3.bf16.msra.mxu0 %v7963_v15  ;;  %7264 = vmatpush3.bf16.msra.mxu1 %v7964_v16  ;;  %v1919_v47 = vpop.f32.mrb[44].mxu0  ;;  %v1962_v41 = vpop.f32.mrb[48].mxu1  ;;  %v7975_v36 = vld [vmem:[#allocation11 + $0x120] sm:$0xff]  }
 0xfc8   :  { %v1920_v35 = vadd.f32 %v1919_v47, %v9202_v62  ;;  %v1963_v29 = vadd.f32 %v1962_v41, %v1529_v5  ;;  %v1921_v14 = vpop.f32.mrb[45].mxu0  ;;  %v1964_v18 = vpop.f32.mrb[49].mxu1  ;;  %7243 = vmatprep.subr.bf16.mxu0 %v7965_v32  ;;  %7265 = vmatprep.subr.bf16.mxu1 %v7966_v34  ;;  %v7976_v37 = vld [vmem:[#allocation11 + $0x1a0] sm:$0xff]   ;;  %v7978_v47 = vld [vmem:[#allocation11 + $0x1e8] sm:$0xff]  }
 0xfc9   :  { %v1922_v53 = vadd.f32 %v1921_v14, %v1525_v11  ;;  %v1965_v54 = vadd.f32 %v1964_v18, %v1533_v17  ;;  %v1923_v55 = vpop.f32.mrb[46].mxu0  ;;  %v1966_v56 = vpop.f32.mrb[50].mxu1  ;;  %3247 = vmatprep.mubr.bf16.mxu0 %v2094_v44  ;;  %3288 = vmatprep.mubr.bf16.mxu1 %v2096_v46  ;;  %v7977_v46 = vld [vmem:[#allocation11 + $0x168] sm:$0xff]  }
 0xfca   :  { %v1924_v59 = vadd.f32 %v1923_v55, %v9202_v62  ;;  %v1967_v60 = vadd.f32 %v1966_v56, %v1529_v5  ;;  %v1925_v38 = vpop.f32.mrb[47].mxu0  ;;  %v1968_v63 = vpop.f32.mrb[51].mxu1  ;;  %v2065_v9 = vmax.f32 %v1920_v35, 0.0  ;;  %v2067_v12 = vmax.f32 %v1963_v29, 0.0  ;;  %v7973_v62 = vld [vmem:[#allocation11 + $0x160] sm:$0xff]  }
 0xfcb   :  { %v1926_v3 = vadd.f32 %v1925_v38, %v1525_v11  ;;  %v1969_v4 = vadd.f32 %v1968_v63, %v1533_v17  ;;  %7244 = vmatpush3.bf16.msra.mxu0 %v7967_v43  ;;  %7266 = vmatpush3.bf16.msra.mxu1 %v7968_v24  ;;  %v7974_v5 = vld [vmem:[#allocation11 + $0x1e0] sm:$0xff]   ;;  %v2066_v16 = vmax.f32 %v1922_v53, 0.0  ;;  %v2068_v20 = vmax.f32 %v1965_v54, 0.0  ;;  %v7980_v53 = vld [vmem:[#allocation11 + $0x1a8] sm:$0xff]   ;;  %v7982_v38 = vld [vmem:[#allocation11 + $0x1f0] sm:$0xff]  }
 0xfcc   :  { %v2081_v13 = vmax.f32 %v1924_v59, 0.0  ;;  %v2083_v15 = vmax.f32 %v1967_v60, 0.0  ;;  %7245 = vmatprep.subr.bf16.mxu0 %v7969_v19  ;;  %7267 = vmatprep.subr.bf16.mxu1 %v7970_v51  ;;  %v7981_v60 = vld [vmem:[#allocation11 + $0x170] sm:$0xff]  }
 0xfcd   :  { %v2082_v22 = vmax.f32 %v1926_v3, 0.0  ;;  %v2084_v23 = vmax.f32 %v1969_v4, 0.0 }
 0xfce   :  { %v9217_v11 = vpack.c.bf16 %v2081_v13, %v2065_v9  ;;  %v9219_v17 = vpack.c.bf16 %v2083_v15, %v2067_v12  ;;  %v7984_v9 = vld [vmem:[#allocation11 + $0x1b0] sm:$0xff]   ;;  %v7985_v12 = vld [vmem:[#allocation11 + $0x178] sm:$0xff]  }
 0xfcf   :  { %v9221_v31 = vpack.c.bf16 %v2082_v22, %v2066_v16  ;;  %v9223_v32 = vpack.c.bf16 %v2084_v23, %v2068_v20  ;;  %7246 = vmatpush3.bf16.msra.mxu0 %v7971_v6  ;;  %7268 = vmatpush3.bf16.msra.mxu1 %v7972_v7  ;;  %v2005_v34 = vpop.f32.mrb[48].mxu0  ;;  %v2048_v21 = vpop.f32.mrb[52].mxu1  ;;  %v7986_v13 = vld [vmem:[#allocation11 + $0x1f8] sm:$0xff]   ;;  %v7990_v16 = vld [vmem:[#allocation11 + $0x2c0] sm:$0xff]   ;;  %v7993_v23 = vld [vmem:[#allocation11 + $0x248] sm:$0xff]  }
 0xfd0   :  { %v2006_v42 = vadd.f32 %v2005_v34, %v1537_v57  ;;  %v2049_v43 = vadd.f32 %v2048_v21, %v1545_v1  ;;  %v2007_v45 = vpop.f32.mrb[49].mxu0  ;;  %v2050_v44 = vpop.f32.mrb[53].mxu1  ;;  %7247 = vmatprep.subr.bf16.mxu0 %v7973_v62  ;;  %7269 = vmatprep.subr.bf16.mxu1 %v7974_v5  ;;  %v7987_v15 = vld [vmem:[#allocation11 + $0x138] sm:$0xff]   ;;  %v7989_v5 = vld [vmem:[#allocation11 + $0x240] sm:$0xff]   ;;  %v7994_v34 = vld [vmem:[#allocation11 + $0x2c8] sm:$0xff]  }
 0xfd1   :  { %v2008_v41 = vadd.f32 %v2007_v45, %v1541_v2  ;;  %v2051_v24 = vadd.f32 %v2050_v44, %v1549_v8  ;;  %v2009_v49 = vpop.f32.mrb[50].mxu0  ;;  %v2052_v50 = vpop.f32.mrb[54].mxu1  ;;  %v7988_v62 = vld [vmem:[#allocation11 + $0x1b8] sm:$0xff]   ;;  %v7991_v20 = vld [vmem:[#allocation11 + $0x200] sm:$0xff]   ;;  %v7995_v21 = vld [vmem:[#allocation11 + $0x208] sm:$0xff]  }
 0xfd2   :  { %v2010_v35 = vadd.f32 %v2009_v49, %v1537_v57  ;;  %v2053_v29 = vadd.f32 %v2052_v50, %v1545_v1  ;;  %v2011_v14 = vpop.f32.mrb[51].mxu0  ;;  %v2054_v18 = vpop.f32.mrb[55].mxu1  ;;  %v2069_v54 = vmax.f32 %v2006_v42, 0.0  ;;  %v2071_v55 = vmax.f32 %v2049_v43, 0.0  ;;  %v7992_v22 = vld [vmem:[#allocation11 + $0x280] sm:$0xff]   ;;  %v7998_v42 = vld [vmem:[#allocation11 + $0x2d0] sm:$0xff]  }
 0xfd3   :  { %v2012_v19 = vadd.f32 %v2011_v14, %v1541_v2  ;;  %v2055_v51 = vadd.f32 %v2054_v18, %v1549_v8  ;;  %7248 = vmatpush3.bf16.msra.mxu0 %v7975_v36  ;;  %7270 = vmatpush3.bf16.msra.mxu1 %v7976_v37  ;;  %v2070_v63 = vmax.f32 %v2008_v41, 0.0  ;;  %v2072_v3 = vmax.f32 %v2051_v24, 0.0  ;;  %v7983_v8 = vld [vmem:[#allocation11 + $0x130] sm:$0xff]   ;;  %v7996_v36 = vld [vmem:[#allocation11 + $0x288] sm:$0xff]   ;;  %v8003_v44 = vld [vmem:[#allocation11 + $0x218] sm:$0xff]  }
 0xfd4   :  { %v2085_v56 = vmax.f32 %v2010_v35, 0.0  ;;  %v2087_v59 = vmax.f32 %v2053_v29, 0.0  ;;  %7249 = vmatprep.subr.bf16.mxu0 %v7977_v46  ;;  %7271 = vmatprep.subr.bf16.mxu1 %v7978_v47  ;;  %v7997_v37 = vld [vmem:[#allocation11 + $0x250] sm:$0xff]   ;;  %v8005_v46 = vld [vmem:[#allocation11 + $0x260] sm:$0xff]   ;;  %v8009_v24 = vld [vmem:[#allocation11 + $0x268] sm:$0xff]  }
 0xfd5   :  { %v2086_v57 = vmax.f32 %v2012_v19, 0.0  ;;  %v2088_v1 = vmax.f32 %v2055_v51, 0.0  ;;  %v7999_v43 = vld [vmem:[#allocation11 + $0x210] sm:$0xff]   ;;  %v8007_v47 = vld [vmem:[#allocation11 + $0x220] sm:$0xff]   ;;  %v8010_v49 = vld [vmem:[#allocation11 + $0x2e8] sm:$0xff]  }
 0xfd6   :  { %v9225_v4 = vpack.c.bf16 %v2085_v56, %v2069_v54  ;;  %v9227_v2 = vpack.c.bf16 %v2087_v59, %v2071_v55  ;;  %v8000_v45 = vld [vmem:[#allocation11 + $0x290] sm:$0xff]   ;;  %v8008_v41 = vld [vmem:[#allocation11 + $0x2a0] sm:$0xff]   ;;  %v8011_v50 = vld [vmem:[#allocation11 + $0x228] sm:$0xff]  }
 0xfd7   :  { %v9229_v6 = vpack.c.bf16 %v2086_v57, %v2070_v63  ;;  %v9231_v7 = vpack.c.bf16 %v2088_v1, %v2072_v3  ;;  %7250 = vmatpush3.bf16.msra.mxu0 %v7979_v52  ;;  %7272 = vmatpush3.bf16.msra.mxu1 %v7980_v53  ;;  %v8012_v35 = vld [vmem:[#allocation11 + $0x2a8] sm:$0xff]   ;;  %v8013_v29 = vld [vmem:[#allocation11 + $0x270] sm:$0xff]   ;;  %v8017_v51 = vld [vmem:[#allocation11 + $0x278] sm:$0xff]  }
 0xfd8   :  { %7251 = vmatprep.subr.bf16.mxu0 %v7981_v60  ;;  %7273 = vmatprep.subr.bf16.mxu1 %v7982_v38  ;;  %v8014_v14 = vld [vmem:[#allocation11 + $0x2f0] sm:$0xff]   ;;  %v8018_v52 = vld [vmem:[#allocation11 + $0x2f8] sm:$0xff]   ;;  %v8021_v55 = vld [vmem:[#allocation11 + $0x340] sm:$0xff]  }
 0xfd9   :  { %v8015_v18 = vld [vmem:[#allocation11 + $0x230] sm:$0xff]   ;;  %v8019_v53 = vld [vmem:[#allocation11 + $0x238] sm:$0xff]   ;;  %v8022_v56 = vld [vmem:[#allocation11 + $0x3c0] sm:$0xff]  }
 0xfda   :  { %v8016_v19 = vld [vmem:[#allocation11 + $0x2b0] sm:$0xff]   ;;  %v8020_v54 = vld [vmem:[#allocation11 + $0x2b8] sm:$0xff]   ;;  %v8023_v59 = vld [vmem:[#allocation11 + $0x300] sm:$0xff]  }
 0xfdb   :  { %7252 = vmatpush3.bf16.msra.mxu0 %v7983_v8  ;;  %7274 = vmatpush3.bf16.msra.mxu1 %v7984_v9  ;;  %v8024_v60 = vld [vmem:[#allocation11 + $0x380] sm:$0xff]   ;;  %v8025_v38 = vld [vmem:[#allocation11 + $0x348] sm:$0xff]   ;;  %v8029_v1 = vld [vmem:[#allocation11 + $0x350] sm:$0xff]  }
 0xfdc   :  { %7253 = vmatprep.subr.bf16.mxu0 %v7985_v12  ;;  %7275 = vmatprep.subr.bf16.mxu1 %v7986_v13  ;;  %v8026_v63 = vld [vmem:[#allocation11 + $0x3c8] sm:$0xff]   ;;  %v8030_v8 = vld [vmem:[#allocation11 + $0x3d0] sm:$0xff]   ;;  %v8033_v12 = vld [vmem:[#allocation11 + $0x358] sm:$0xff]  }
 0xfdd   :  { %v8027_v3 = vld [vmem:[#allocation11 + $0x308] sm:$0xff]   ;;  %v8031_v9 = vld [vmem:[#allocation11 + $0x310] sm:$0xff]   ;;  %v8035_v13 = vld [vmem:[#allocation11 + $0x318] sm:$0xff]  }
 0xfde   :  { %v8028_v57 = vld [vmem:[#allocation11 + $0x388] sm:$0xff]  }
 0xfdf   :  { %7254 = vmatpush3.bf16.msra.mxu0 %v7987_v15  ;;  %7276 = vmatpush3.bf16.msra.mxu1 %v7988_v62  ;;  %v8037_v15 = vld [vmem:[#allocation11 + $0x360] sm:$0xff]  }
 0xfe0   :  { %7283 = vmatprep.subr.bf16.mxu0 %v7989_v5  ;;  %7305 = vmatprep.subr.bf16.mxu1 %v7990_v16  ;;  %v8038_v62 = vld [vmem:[#allocation11 + $0x3e0] sm:$0xff]   ;;  %v8041_v16 = vld [vmem:[#allocation11 + $0x368] sm:$0xff]  }
 0xfe1   :  { %v8040_v5 = vld [vmem:[#allocation11 + $0x3a0] sm:$0xff]  }
 0xfe2   :  { %3248 = vmatmul.mubr.bf16.vlgmr.msra.gmra.mrb[56].mxu0 %v9207_v39  ;;  %3289 = vmatmul.mubr.bf16.vlgmr.msra.gmra.mrb[60].mxu1 %v9209_v40  ;;  %v8001_v39 = vld [vmem:[#allocation11 + $0x258] sm:$0xff]  }
 0xfe3   :  { %7284 = vmatpush3.bf16.msra.mxu0 %v7991_v20  ;;  %3329 = vmatprep.mubr.bf16.mxu0 %v9221_v31  ;;  %v8002_v40 = vld [vmem:[#allocation11 + $0x2d8] sm:$0xff]   ;;  %v8042_v20 = vld [vmem:[#allocation11 + $0x3e8] sm:$0xff]  }
 0xfe4   :  { %7306 = vmatpush3.bf16.msra.mxu1 %v7992_v22  ;;  %3370 = vmatprep.mubr.bf16.mxu1 %v9223_v32  ;;  %v8004_v31 = vld [vmem:[#allocation11 + $0x298] sm:$0xff]   ;;  %v8006_v32 = vld [vmem:[#allocation11 + $0x2e0] sm:$0xff]   ;;  %v8043_v22 = vld [vmem:[#allocation11 + $0x328] sm:$0xff]  }
 0xfe5   :  { %7285 = vmatprep.subr.bf16.mxu0 %v7993_v23  ;;  %7307 = vmatprep.subr.bf16.mxu1 %v7994_v34  ;;  %v8044_v23 = vld [vmem:[#allocation11 + $0x3a8] sm:$0xff]   ;;  %v8045_v34 = vld [vmem:[#allocation11 + $0x370] sm:$0xff]  }
 0xfe7   :  { %7286 = vmatpush3.bf16.msra.mxu0 %v7995_v21  ;;  %v8046_v21 = vld [vmem:[#allocation11 + $0x3f0] sm:$0xff]  }
 0xfe8   :  { %7308 = vmatpush3.bf16.msra.mxu1 %v7996_v36  ;;  %7287 = vmatprep.subr.bf16.mxu0 %v7997_v37  ;;  %v8047_v36 = vld [vmem:[#allocation11 + $0x330] sm:$0xff]  }
 0xfe9   :  { %7309 = vmatprep.subr.bf16.mxu1 %v7998_v42  ;;  %v8048_v37 = vld [vmem:[#allocation11 + $0x3b0] sm:$0xff]   ;;  %v8049_v42 = vld [vmem:[#allocation11 + $0x378] sm:$0xff]  }
 0xfeb   :  { %7288 = vmatpush3.bf16.msra.mxu0 %v7999_v43  ;;  %v8050_v43 = vld [vmem:[#allocation11 + $0x3f8] sm:$0xff]  }
 0xfec   :  { %7310 = vmatpush3.bf16.msra.mxu1 %v8000_v45  ;;  %7289 = vmatprep.subr.bf16.mxu0 %v8001_v39  ;;  %v8051_v45 = vld [vmem:[#allocation11 + $0x338] sm:$0xff]  }
 0xfed   :  { %7311 = vmatprep.subr.bf16.mxu1 %v8002_v40  ;;  %v8052_v39 = vld [vmem:[#allocation11 + $0x3b8] sm:$0xff]   ;;  %v2363_v40 = vsub.s32 5, %v8948_v27 }
 0xfef   :  { %7290 = vmatpush3.bf16.msra.mxu0 %v8003_v44 }
 0xff0   :  { %7312 = vmatpush3.bf16.msra.mxu1 %v8004_v31  ;;  %7291 = vmatprep.subr.bf16.mxu0 %v8005_v46  ;;  %v2364_v46 = vrot.slane %v9190_v61, %v2363_v40 }
 0xff1   :  { %7313 = vmatprep.subr.bf16.mxu1 %v8006_v32 }
 0xff3   :  { %7292 = vmatpush3.bf16.msra.mxu0 %v8007_v47 }
 0xff4   :  { %7314 = vmatpush3.bf16.msra.mxu1 %v8008_v41  ;;  %7293 = vmatprep.subr.bf16.mxu0 %v8009_v24 }
 0xff5   :  { %7315 = vmatprep.subr.bf16.mxu1 %v8010_v49 }
 0xff7   :  { %7294 = vmatpush3.bf16.msra.mxu0 %v8011_v50 }
 0xff8   :  { %7316 = vmatpush3.bf16.msra.mxu1 %v8012_v35  ;;  %7295 = vmatprep.subr.bf16.mxu0 %v8013_v29 }
 0xff9   :  { %7317 = vmatprep.subr.bf16.mxu1 %v8014_v14 }
 0xffb   :  { %7296 = vmatpush3.bf16.msra.mxu0 %v8015_v18 }
 0xffc   :  { %7318 = vmatpush3.bf16.msra.mxu1 %v8016_v19  ;;  %7297 = vmatprep.subr.bf16.mxu0 %v8017_v51 }
 0xffd   :  { %7319 = vmatprep.subr.bf16.mxu1 %v8018_v52 }
 0xfff   :  { %7298 = vmatpush3.bf16.msra.mxu0 %v8019_v53 }
0x1000   :  { %7320 = vmatpush3.bf16.msra.mxu1 %v8020_v54  ;;  %7327 = vmatprep.subr.bf16.mxu0 %v8021_v55 }
0x1001   :  { %7349 = vmatprep.subr.bf16.mxu1 %v8022_v56 }
0x1002   :  { %3330 = vmatmul.mubr.bf16.vlgmr.msra.gmra.mrb[60].mxu0 %v9217_v11  ;;  %v8032_v11 = vld [vmem:[#allocation11 + $0x390] sm:$0xff]  }
0x1003   :  { %3371 = vmatmul.mubr.bf16.vlgmr.msra.gmra.mrb[64].mxu1 %v9219_v17  ;;  %7328 = vmatpush3.bf16.msra.mxu0 %v8023_v59  ;;  %v8034_v17 = vld [vmem:[#allocation11 + $0x3d8] sm:$0xff]  }
0x1004   :  { %3411 = vmatprep.mubr.bf16.mxu0 %v9229_v6  ;;  %7350 = vmatpush3.bf16.msra.mxu1 %v8024_v60  ;;  %v8036_v6 = vld [vmem:[#allocation11 + $0x398] sm:$0xff]  }
0x1005   :  { %3452 = vmatprep.mubr.bf16.mxu1 %v9231_v7  ;;  %7329 = vmatprep.subr.bf16.mxu0 %v8025_v38  ;;  %v8039_v7 = vld [vmem:[#allocation11 + $0x320] sm:$0xff]  }
0x1006   :  { %7351 = vmatprep.subr.bf16.mxu1 %v8026_v63 }
0x1007   :  { %7330 = vmatpush3.bf16.msra.mxu0 %v8027_v3 }
0x1008   :  { %7352 = vmatpush3.bf16.msra.mxu1 %v8028_v57  ;;  %7331 = vmatprep.subr.bf16.mxu0 %v8029_v1 }
0x1009   :  { %7353 = vmatprep.subr.bf16.mxu1 %v8030_v8 }
0x100b   :  { %7332 = vmatpush3.bf16.msra.mxu0 %v8031_v9 }
0x100c   :  { %7354 = vmatpush3.bf16.msra.mxu1 %v8032_v11  ;;  %7333 = vmatprep.subr.bf16.mxu0 %v8033_v12 }
0x100d   :  { %7355 = vmatprep.subr.bf16.mxu1 %v8034_v17 }
0x100f   :  { %7334 = vmatpush3.bf16.msra.mxu0 %v8035_v13 }
0x1010   :  { %7356 = vmatpush3.bf16.msra.mxu1 %v8036_v6  ;;  %7335 = vmatprep.subr.bf16.mxu0 %v8037_v15 }
0x1011   :  { %7357 = vmatprep.subr.bf16.mxu1 %v8038_v62 }
0x1013   :  { %7336 = vmatpush3.bf16.msra.mxu0 %v8039_v7 }
0x1014   :  { %7358 = vmatpush3.bf16.msra.mxu1 %v8040_v5  ;;  %7337 = vmatprep.subr.bf16.mxu0 %v8041_v16 }
0x1015   :  { %7359 = vmatprep.subr.bf16.mxu1 %v8042_v20 }
0x1017   :  { %7338 = vmatpush3.bf16.msra.mxu0 %v8043_v22 }
0x1018   :  { %7360 = vmatpush3.bf16.msra.mxu1 %v8044_v23  ;;  %7339 = vmatprep.subr.bf16.mxu0 %v8045_v34 }
0x1019   :  { %7361 = vmatprep.subr.bf16.mxu1 %v8046_v21 }
0x101b   :  { %7340 = vmatpush3.bf16.msra.mxu0 %v8047_v36 }
0x101c   :  { %7362 = vmatpush3.bf16.msra.mxu1 %v8048_v37  ;;  %7341 = vmatprep.subr.bf16.mxu0 %v8049_v42 }
0x101d   :  { %7363 = vmatprep.subr.bf16.mxu1 %v8050_v43 }
0x101f   :  { %7342 = vmatpush3.bf16.msra.mxu0 %v8051_v45 }
0x1020   :  { %7364 = vmatpush3.bf16.msra.mxu1 %v8052_v39  ;;  %7719 = vmatprep.subr.bf16.mxu0 %v8637_v10 }
0x1021   :  { %7727 = vmatprep.subr.bf16.mxu1 %v8637_v10 }
0x1022   :  { %3412 = vmatmul.mubr.bf16.vlgmr.msra.gmra.mrb[64].mxu0 %v9225_v4 }
0x1023   :  { %3453 = vmatmul.mubr.bf16.vlgmr.msra.gmra.mrb[68].mxu1 %v9227_v2  ;;  %7723 = vmatprep.mubr.msk.bf16.mxu0 %vm8638_vm3, %v8637_v10 }
0x1024   :  { %7729 = vmatprep.mubr.msk.bf16.mxu1 %vm8638_vm3, %v8637_v10 }
0x1095   :  { %v7211_v44 = vpop.f32.mrb[52].mxu0  ;;  %v7233_v31 = vpop.f32.mrb[56].mxu1 }
0x1096   :  { %v7212_v32 = vpop.f32.mrb[53].mxu0  ;;  %v7234_v47 = vpop.f32.mrb[57].mxu1 }
0x1097   :  { %v7213_v41 = vadd.f32 %v7212_v32, %v7211_v44  ;;  %v7235_v4 = vadd.f32 %v7234_v47, %v7233_v31  ;;  %v7214_v24 = vpop.f32.mrb[54].mxu0  ;;  %v7236_v2 = vpop.f32.mrb[58].mxu1 }
0x1098   :  { %v7215_v49 = vpop.f32.mrb[55].mxu0  ;;  %v7237_v50 = vpop.f32.mrb[59].mxu1 }
0x1099   :  { %v3168_v35 = vadd.f32 %v7213_v41, %v2364_v46  ;;  %v7216_v29 = vadd.f32 %v7215_v49, %v7214_v24  ;;  %v7238_v14 = vadd.f32 %v7237_v50, %v7236_v2 }
0x109b   :  { %v3209_v18 = vadd.f32 %v7235_v4, %v3168_v35  ;;  %v3171_v19 = vadd.f32 %v7216_v29, %v2364_v46 }
0x109d   :  { %v3212_v51 = vadd.f32 %v7238_v14, %v3171_v19 }
0x10b5   :  { %v7255_v52 = vpop.f32.mrb[56].mxu0  ;;  %v7277_v53 = vpop.f32.mrb[60].mxu1 }
0x10b6   :  { %v7256_v54 = vpop.f32.mrb[57].mxu0  ;;  %v7278_v55 = vpop.f32.mrb[61].mxu1 }
0x10b7   :  { %v7257_v56 = vadd.f32 %v7256_v54, %v7255_v52  ;;  %v7279_v59 = vadd.f32 %v7278_v55, %v7277_v53  ;;  %v7258_v60 = vpop.f32.mrb[58].mxu0  ;;  %v7280_v38 = vpop.f32.mrb[62].mxu1 }
0x10b8   :  { %v7259_v63 = vpop.f32.mrb[59].mxu0  ;;  %v7281_v3 = vpop.f32.mrb[63].mxu1 }
0x10b9   :  { %v3250_v57 = vadd.f32 %v7257_v56, %v3209_v18  ;;  %v7260_v1 = vadd.f32 %v7259_v63, %v7258_v60  ;;  %v7282_v8 = vadd.f32 %v7281_v3, %v7280_v38  ;;  %v8053_v56 = vld [vmem:[#allocation14] sm:$0xff]  }
0x10ba   :  { %7720 = vmatpush3.bf16.msra.mxu0 %v8053_v56 }
0x10bb   :  { %v3291_v9 = vadd.f32 %v7279_v59, %v3250_v57  ;;  %v3253_v11 = vadd.f32 %v7260_v1, %v3212_v51  ;;  %7721 = vmatprep.subr.bf16.mxu0 %v8637_v10 }
0x10bd   :  { %v3294_v12 = vadd.f32 %v7282_v8, %v3253_v11 }
0x10d5   :  { %v7299_v17 = vpop.f32.mrb[60].mxu0 }
0x10d6   :  { %v7321_v13 = vpop.f32.mrb[64].mxu1  ;;  %v7300_v6 = vpop.f32.mrb[61].mxu0 }
0x10d7   :  { %v7301_v15 = vadd.f32 %v7300_v6, %v7299_v17  ;;  %v7322_v62 = vpop.f32.mrb[65].mxu1  ;;  %v7302_v7 = vpop.f32.mrb[62].mxu0  ;;  %v3495_v6 = vsub.s32 6, %v8948_v27 }
0x10d8   :  { %v7323_v5 = vadd.f32 %v7322_v62, %v7321_v13  ;;  %v7324_v16 = vpop.f32.mrb[66].mxu1  ;;  %v7303_v20 = vpop.f32.mrb[63].mxu0 }
0x10d9   :  { %v3332_v22 = vadd.f32 %v7301_v15, %v3291_v9  ;;  %v7304_v23 = vadd.f32 %v7303_v20, %v7302_v7  ;;  %v7325_v34 = vpop.f32.mrb[67].mxu1  ;;  %v3496_v62 = vrot.slane %v9190_v61, %v3495_v6  ;;  %v3501_v7 = vsub.s32 7, %v8948_v27 }
0x10da   :  { %v7326_v21 = vadd.f32 %v7325_v34, %v7324_v16 }
0x10db   :  { %v3373_v36 = vadd.f32 %v7323_v5, %v3332_v22  ;;  %v3335_v37 = vadd.f32 %v7304_v23, %v3294_v12 }
0x10dd   :  { %v3376_v42 = vadd.f32 %v7326_v21, %v3335_v37  ;;  %v3502_v21 = vrot.slane %v9190_v61, %v3501_v7 }
0x10f5   :  { %v7343_v43 = vpop.f32.mrb[64].mxu0 }
0x10f6   :  { %v7365_v45 = vpop.f32.mrb[68].mxu1  ;;  %v7344_v39 = vpop.f32.mrb[65].mxu0 }
0x10f7   :  { %v7345_v44 = vadd.f32 %v7344_v39, %v7343_v43  ;;  %v7366_v31 = vpop.f32.mrb[69].mxu1  ;;  %v7346_v46 = vpop.f32.mrb[66].mxu0 }
0x10f8   :  { %v7367_v32 = vadd.f32 %v7366_v31, %v7365_v45  ;;  %v7368_v47 = vpop.f32.mrb[70].mxu1  ;;  %v7347_v41 = vpop.f32.mrb[67].mxu0  ;;  %v9278_v45 = vld [vmem:[#allocation20] sm:$0xff] }
0x10f9   :  { %v3414_v4 = vadd.f32 %v7345_v44, %v3373_v36  ;;  %v7348_v24 = vadd.f32 %v7347_v41, %v7346_v46  ;;  %v7369_v2 = vpop.f32.mrb[71].mxu1  ;;  %v3529_v39 = vrot.slane %v9278_v45, %v362_v28 }
0x10fa   :  { %v7370_v49 = vadd.f32 %v7369_v2, %v7368_v47 }
0x10fb   :  { %v3455_v50 = vadd.f32 %v7367_v32, %v3414_v4  ;;  %v3417_v35 = vadd.f32 %v7348_v24, %v3376_v42 }
0x10fd   :  { %v3461_v29 = vadd.f32 %v3455_v50, %v9159_v25  ;;  %v3458_v14 = vadd.f32 %v7370_v49, %v3417_v35  ;;  %v8054_v25 = vld [vmem:[#allocation14 + $0x8] sm:$0xff]  }
0x10fe   :  { %7722 = vmatpush3.bf16.msra.mxu0 %v8054_v25 }
0x10ff   :  { %v3462_v18 = vadd.f32 %v3458_v14, %v9157_v48  ;;  %v3463_v19 = vsel %vm376_vm4, %v3461_v29, 0.0  ;;  %v3471_v51 = vmul.f32 %v3461_v29, %v3461_v29  ;;  %7733 = vmatprep.subr.bf16.mxu0 %v8637_v10 }
0x1100   :  { %3464 = vadd.xlane.f32.xlu0 %v3463_v19 }
0x1101   :  { %v3466_v52 = vsel %vm376_vm4, %v3462_v18, 0.0  ;;  %v3472_v53 = vmul.f32 %v3462_v18, %v3462_v18  ;;  %v3473_v54 = vsel %vm376_vm4, %v3471_v51, 0.0 }
0x1102   :  { %3467 = vadd.xlane.f32.xlu1 %v3466_v52 }
0x1103   :  { %v3476_v55 = vsel %vm376_vm4, %v3472_v53, 0.0 }
0x1104   :  { %3474 = vadd.xlane.f32.xlu0 %v3473_v54 }
0x1106   :  { %3477 = vadd.xlane.f32.xlu1 %v3476_v55 }
0x118d   :  { %v3465_v48 = vpop.xlane.xlu0 %3464 }
0x118e   :  { %v3469_v59 = vmul.f32 0.03125, %v3465_v48 }
0x118f   :  { %v3468_v60 = vpop.xlane.xlu1 %3467 }
0x1190   :  { %v3470_v38 = vmul.f32 0.03125, %v3468_v60  ;;  %v3481_v3 = vmul.f32 %v3469_v59, %v3469_v59  ;;  %v3485_v15 = vsub.f32 %v3461_v29, %v3469_v59 }
0x1191   :  { %v3475_v63 = vpop.xlane.xlu0 %3474 }
0x1192   :  { %v3479_v57 = vmul.f32 0.03125, %v3475_v63  ;;  %v3482_v8 = vmul.f32 %v3470_v38, %v3470_v38  ;;  %v3486_v16 = vsub.f32 %v3462_v18, %v3470_v38 }
0x1193   :  { %v3478_v1 = vpop.xlane.xlu1 %3477 }
0x1194   :  { %v3483_v9 = vsub.f32 %v3479_v57, %v3481_v3  ;;  %v3480_v11 = vmul.f32 0.03125, %v3478_v1 }
0x1196   :  { %v3487_v12 = vadd.f32 1e-05, %v3483_v9  ;;  %v3484_v17 = vsub.f32 %v3480_v11, %v3482_v8 }
0x1198   :  { %8223 = vrsqrt.f32 %v3487_v12  ;;  %v3488_v13 = vadd.f32 1e-05, %v3484_v17 }
0x119a   :  { %8225 = vrsqrt.f32 %v3488_v13 }
0x11a2   :  { %v8224_v5 = vpop.eup %8223 }
0x11a3   :  { %v3491_v20 = vmul.f32 %v8224_v5, %v3485_v15 }
0x11a4   :  { %v8226_v22 = vpop.eup %8225 }
0x11a5   :  { %v3492_v23 = vmul.f32 %v8226_v22, %v3486_v16  ;;  %v3497_v34 = vmul.f32 %v3496_v62, %v3491_v20 }
0x11a7   :  { %v3498_v36 = vmul.f32 %v3496_v62, %v3492_v23  ;;  %v9269_v37 = vadd.f32 %v3502_v21, %v3497_v34 }
0x11a9   :  { %v9271_v42 = vadd.f32 %v3502_v21, %v3498_v36 }
0x11ab   :  { %v3521_v43 = vpack.c.bf16 %v9271_v42, %v9269_v37 }
0x11ad   :  { %7724 = vmatmul.mubr.msk.bf16.vlgmr.msra.gmra.mrb[68].mxu0 %vm376_vm4, %v3521_v43 }
0x11ae   :  { %7735 = vmatprep.mubr.msk.bf16.mxu0 %vm8638_vm3, %v8637_v10 }
0x1280   :  { %v3579_v61 = vpop.f32.mrb[68].mxu0 }
0x1281   :  { %v3580_v44 = vadd.f32 %v3579_v61, %v3529_v39  ;;  %v7725_v31 = vpop.f32.mrb[69].mxu0 }
0x1282   :  { %v3582_v46 = vpop.f32.mrb[70].mxu0 }
0x1283   :  { %v9283_v32 = vpack.c.bf16 %v3580_v44, %v3580_v44  ;;  %v3583_v47 = vadd.f32 %v3582_v46, %v3529_v39  ;;  %v7726_v41 = vpop.f32.mrb[71].mxu0 }
0x1285   :  { %v9285_v4 = vpack.c.bf16 %v3583_v47, %v3583_v47  ;;  %3589 = vrot.lane.b32.xlu0 %v9283_v32, %s8639_s13 }
0x1287   :  { %3638 = vrot.lane.b32.xlu1 %v9285_v4, %s8639_s13 }
0x12f7   :  { %v3590_v24 = vpop.permute.xlu0 %3589 }
0x12f8   :  { %v3595_v2 = vsel %vm426_vm5, %v3590_v24, 0 }
0x12f9   :  { %7728 = vmatpush3.bf16.xpose.msra.mxu1 %v3595_v2  ;;  %v3639_v28 = vpop.permute.xlu1 %3638 }
0x12fa   :  { %v3644_v49 = vsel %vm426_vm5, %v3639_v28, 0  ;;  %7739 = vmatprep.subr.bf16.mxu1 %v8637_v10 }
0x12fb   :  { %7734 = vmatpush3.bf16.xpose.msra.mxu0 %v3644_v49 }
0x12fc   :  { %7745 = vmatprep.subr.bf16.mxu0 %v8637_v10 }
0x1300   :  { %7730 = vmatmul.mubr.msk.bf16.vlgmr.msra.gmra.mrb[72].mxu1 %vm426_vm5, %v9283_v32 }
0x1301   :  { %7741 = vmatprep.mubr.msk.bf16.mxu1 %vm8638_vm3, %v8637_v10 }
0x1302   :  { %7736 = vmatmul.mubr.msk.bf16.vlgmr.msra.gmra.mrb[72].mxu0 %vm426_vm5, %v9285_v4 }
0x1303   :  { %7747 = vmatprep.mubr.msk.bf16.mxu0 %vm8638_vm3, %v8637_v10 }
0x13d3   :  { %v3631_v50 = vpop.f32.mrb[72].mxu1 }
0x13d4   :  { %v3686_v35 = vmul.f32 0.35355338, %v3631_v50  ;;  %v7731_v29 = vpop.f32.mrb[73].mxu1 }
0x13d5   :  { %v3634_v14 = vpop.f32.mrb[74].mxu1  ;;  %v3680_v18 = vpop.f32.mrb[72].mxu0 }
0x13d6   :  { %v3687_v19 = vmul.f32 0.35355338, %v3680_v18  ;;  %v7732_v51 = vpop.f32.mrb[75].mxu1  ;;  %v7737_v52 = vpop.f32.mrb[73].mxu0  ;;  %v3688_v53 = vsel %vm426_vm5, %v3686_v35, -inf }
0x13d7   :  { %3689 = vmax.xlane.f32.xlu1 %v3688_v53  ;;  %v3683_v54 = vpop.f32.mrb[74].mxu0 }
0x13d8   :  { %v7738_v55 = vpop.f32.mrb[75].mxu0  ;;  %v3691_v56 = vsel %vm426_vm5, %v3687_v19, -inf }
0x13d9   :  { %3692 = vmax.xlane.f32.xlu0 %v3691_v56 }
0x13e8   :  { %3760 = vrot.lane.b32.xlu1 %v9285_v4, %s8622_s30 }
0x13ef   :  { %3712 = vrot.lane.b32.xlu0 %v9283_v32, %s8622_s30  ;;  %s8651_s30 = smov [#allocation25]  }
0x13f0   :  { %s6740_s16 = sshll.u32 %s8651_s30, 4  ;;  %s6741_s16 = int_to_ptr.vmem [resolvable:$true] %s6740_s16 }
0x13f1   :  { %s8577_s10 = scalar_lea.vmem %s6741_s16, 256  ;;  %p8582_p1 = scmp.lt.s32.totalorder %s6741_s16, %s6741_s16 }
0x13f2   :  { %p8578_p0 = scmp.ne.s32.totalorder %s6741_s16, %s8577_s10  ;;  %p8583_p2 = scmp.lt.s32.totalorder %s8577_s10, %s8577_s10 }
0x13f4   :  { %p8584_p3 = por %p8583_p2, %p8582_p1 }
0x13f6   :  { %p8585_p4 = pnand %p8584_p3, %p8578_p0 }
0x1464   :  { %v3690_v25 = vpop.xlane.xlu1 %3689 }
0x1465   :  { %v3694_v48 = vsub.f32 %v3686_v35, %v3690_v25 }
0x1466   :  { %v3693_v59 = vpop.xlane.xlu0 %3692 }
0x1467   :  { %v3696_v60 = vmul.f32 1.442695, %v3694_v48  ;;  %v3695_v38 = vsub.f32 %v3687_v19, %v3693_v59 }
0x1468   :  { %v3761_v63 = vpop.permute.xlu1 %3760 }
0x1469   :  { %8227 = vpow2.f32 %v3696_v60  ;;  %v3698_v3 = vmul.f32 1.442695, %v3695_v38  ;;  %v3766_v57 = vsel %vm553_vm6, %v3761_v63, 0 }
0x146a   :  { %7746 = vmatpush3.bf16.msra.mxu0 %v3766_v57  ;;  %v3713_v1 = vpop.permute.xlu0 %3712 }
0x146b   :  { %8229 = vpow2.f32 %v3698_v3  ;;  %v3718_v8 = vsel %vm553_vm6, %v3713_v1, 0  ;;  %7757 = vmatprep.subr.bf16.mxu0 %v8637_v10 }
0x146c   :  { %7740 = vmatpush3.bf16.msra.mxu1 %v3718_v8 }
0x146d   :  { %7751 = vmatprep.subr.bf16.mxu1 %v8637_v10 }
0x1473   :  { %v8228_v9 = vpop.eup %8227 }
0x1474   :  { %v3700_v11 = vsel %vm426_vm5, %v8228_v9, 0.0 }
0x1475   :  { %v8230_v12 = vpop.eup %8229  ;;  %3701 = vadd.xlane.f32.xlu0 %v3700_v11 }
0x1476   :  { %v3703_v17 = vsel %vm426_vm5, %v8230_v12, 0.0 }
0x1477   :  { %3704 = vadd.xlane.f32.xlu1 %v3703_v17 }
0x1488   :  { %3810 = vrot.lane.b32.xlu1 %v9283_v32, %s8640_s27 }
0x148b   :  { %3860 = vrot.lane.b32.xlu0 %v9285_v4, %s8640_s27 }
0x148c   :  { %3808 = vrot.lane.b32.xlu1 %v9283_v32, %s8641_s1 }
0x148f   :  { %3858 = vrot.lane.b32.xlu0 %v9285_v4, %s8641_s1 }
0x1502   :  { %v3702_v13 = vpop.xlane.xlu0 %3701 }
0x1503   :  { %8231 = vrcp.f32 %v3702_v13 }
0x1504   :  { %v3705_v15 = vpop.xlane.xlu1 %3704 }
0x1505   :  { %8233 = vrcp.f32 %v3705_v15 }
0x1506   :  { %v3861_v34 = vpop.permute.xlu0 %3860 }
0x1507   :  { %v3866_v43 = vsel %vm426_vm5, %v3861_v34, 0 }
0x1508   :  { %v3811_v20 = vpop.permute.xlu1 %3810 }
0x1509   :  { %v3816_v21 = vsel %vm426_vm5, %v3811_v20, 0 }
0x150a   :  { %v3859_v61 = vpop.permute.xlu0 %3858 }
0x150c   :  { %v3809_v39 = vpop.permute.xlu1 %3808 }
0x150d   :  { %v8232_v62 = vpop.eup %8231 }
0x150e   :  { %v3708_v5 = vmul.f32 %v8232_v62, %v8228_v9 }
0x150f   :  { %v8234_v16 = vpop.eup %8233 }
0x1510   :  { %v3709_v22 = vmul.f32 %v8234_v16, %v8230_v12  ;;  %v3710_v23 = vpack.c.bf16 %v3708_v5, %v3708_v5 }
0x1512   :  { %7742 = vmatmul.mubr.msk.bf16.vlgmr.msra.gmra.mrb[76].mxu1 %vm426_vm5, %v3710_v23  ;;  %v3711_v36 = vpack.c.bf16 %v3709_v22, %v3709_v22 }
0x1513   :  { %7752 = vmatpush3.bf16.xpose.msra.mxu1 %v3816_v21  ;;  %7753 = vmatprep.mubr.msk.bf16.mxu1 %vm8638_vm3, %v8637_v10 }
0x1514   :  { %7748 = vmatmul.mubr.msk.bf16.vlgmr.msra.gmra.mrb[76].mxu0 %vm426_vm5, %v3711_v36  ;;  %7763 = vmatprep.subr.bf16.mxu1 %v8637_v10 }
0x1515   :  { %7758 = vmatpush3.bf16.xpose.msra.mxu0 %v3866_v43  ;;  %7759 = vmatprep.mubr.msk.bf16.mxu0 %vm8638_vm3, %v8637_v10 }
0x1516   :  { %7769 = vmatprep.subr.bf16.mxu0 %v8637_v10 }
0x151a   :  { %7754 = vmatmul.mubr.msk.bf16.vlgmr.msra.gmra.mrb[80].mxu1 %vm426_vm5, %v3809_v39 }
0x151b   :  { %7765 = vmatprep.mubr.msk.bf16.mxu1 %vm8638_vm3, %v8637_v10 }
0x151c   :  { %7760 = vmatmul.mubr.msk.bf16.vlgmr.msra.gmra.mrb[80].mxu0 %vm426_vm5, %v3859_v61 }
0x151d   :  { %7771 = vmatprep.mubr.msk.bf16.mxu0 %vm8638_vm3, %v8637_v10 }
0x15e5   :  { %v9339_v44 = vpop.f32.mrb[76].mxu1 }
0x15e6   :  { %v7743_v31 = vpop.f32.mrb[77].mxu1 }
0x15e7   :  { %v3757_v46 = vpop.f32.mrb[78].mxu1  ;;  %v9341_v47 = vpop.f32.mrb[76].mxu0 }
0x15e8   :  { %v7744_v41 = vpop.f32.mrb[79].mxu1  ;;  %v7749_v24 = vpop.f32.mrb[77].mxu0 }
0x15e9   :  { %v3805_v2 = vpop.f32.mrb[78].mxu0 }
0x15ea   :  { %v7750_v28 = vpop.f32.mrb[79].mxu0 }
0x15ed   :  { %v3852_v49 = vpop.f32.mrb[80].mxu1 }
0x15ee   :  { %v3908_v50 = vmul.f32 0.35355338, %v3852_v49  ;;  %v7755_v35 = vpop.f32.mrb[81].mxu1 }
0x15ef   :  { %v3855_v29 = vpop.f32.mrb[82].mxu1  ;;  %v3902_v14 = vpop.f32.mrb[80].mxu0 }
0x15f0   :  { %v3909_v18 = vmul.f32 0.35355338, %v3902_v14  ;;  %v7756_v19 = vpop.f32.mrb[83].mxu1  ;;  %v7761_v51 = vpop.f32.mrb[81].mxu0  ;;  %v3910_v52 = vsel %vm426_vm5, %v3908_v50, -inf }
0x15f1   :  { %3911 = vmax.xlane.f32.xlu1 %v3910_v52  ;;  %v3905_v53 = vpop.f32.mrb[82].mxu0 }
0x15f2   :  { %v7762_v54 = vpop.f32.mrb[83].mxu0  ;;  %v3913_v55 = vsel %vm426_vm5, %v3909_v18, -inf }
0x15f3   :  { %3914 = vmax.xlane.f32.xlu0 %v3913_v55 }
0x1602   :  { %3982 = vrot.lane.b32.xlu1 %v9285_v4, %s8642_s17 }
0x1609   :  { %3934 = vrot.lane.b32.xlu0 %v9283_v32, %s8642_s17 }
0x167e   :  { %v3912_v56 = vpop.xlane.xlu1 %3911 }
0x167f   :  { %v3916_v25 = vsub.f32 %v3908_v50, %v3912_v56 }
0x1680   :  { %v3915_v48 = vpop.xlane.xlu0 %3914 }
0x1681   :  { %v3918_v59 = vmul.f32 1.442695, %v3916_v25  ;;  %v3917_v60 = vsub.f32 %v3909_v18, %v3915_v48 }
0x1682   :  { %v3983_v38 = vpop.permute.xlu1 %3982 }
0x1683   :  { %8235 = vpow2.f32 %v3918_v59  ;;  %v3920_v63 = vmul.f32 1.442695, %v3917_v60  ;;  %v3988_v3 = vsel %vm553_vm6, %v3983_v38, 0 }
0x1684   :  { %7770 = vmatpush3.bf16.msra.mxu0 %v3988_v3  ;;  %v3935_v57 = vpop.permute.xlu0 %3934 }
0x1685   :  { %8237 = vpow2.f32 %v3920_v63  ;;  %v3940_v1 = vsel %vm553_vm6, %v3935_v57, 0  ;;  %7781 = vmatprep.subr.bf16.mxu0 %v8637_v10 }
0x1686   :  { %7764 = vmatpush3.bf16.msra.mxu1 %v3940_v1 }
0x1687   :  { %7775 = vmatprep.subr.bf16.mxu1 %v8637_v10 }
0x168d   :  { %v8236_v8 = vpop.eup %8235 }
0x168e   :  { %v3922_v9 = vsel %vm426_vm5, %v8236_v8, 0.0 }
0x168f   :  { %v8238_v11 = vpop.eup %8237  ;;  %3923 = vadd.xlane.f32.xlu0 %v3922_v9 }
0x1690   :  { %v3925_v12 = vsel %vm426_vm5, %v8238_v11, 0.0 }
0x1691   :  { %3926 = vadd.xlane.f32.xlu1 %v3925_v12 }
0x16a2   :  { %4032 = vrot.lane.b32.xlu1 %v9283_v32, %s8643_s9 }
0x16a5   :  { %4082 = vrot.lane.b32.xlu0 %v9285_v4, %s8643_s9 }
0x16a6   :  { %4030 = vrot.lane.b32.xlu1 %v9283_v32, %s8644_s3 }
0x16a9   :  { %4080 = vrot.lane.b32.xlu0 %v9285_v4, %s8644_s3 }
0x171c   :  { %v3924_v17 = vpop.xlane.xlu0 %3923 }
0x171d   :  { %8239 = vrcp.f32 %v3924_v17 }
0x171e   :  { %v3927_v13 = vpop.xlane.xlu1 %3926 }
0x171f   :  { %8241 = vrcp.f32 %v3927_v13 }
0x1720   :  { %v4083_v23 = vpop.permute.xlu0 %4082 }
0x1721   :  { %v4088_v36 = vsel %vm426_vm5, %v4083_v23, 0 }
0x1722   :  { %v4033_v16 = vpop.permute.xlu1 %4032 }
0x1723   :  { %v4038_v34 = vsel %vm426_vm5, %v4033_v16, 0 }
0x1724   :  { %v4081_v39 = vpop.permute.xlu0 %4080 }
0x1726   :  { %v4031_v43 = vpop.permute.xlu1 %4030 }
0x1727   :  { %v8240_v15 = vpop.eup %8239 }
0x1728   :  { %v3930_v62 = vmul.f32 %v8240_v15, %v8236_v8 }
0x1729   :  { %v8242_v5 = vpop.eup %8241 }
0x172a   :  { %v3931_v20 = vmul.f32 %v8242_v5, %v8238_v11  ;;  %v3932_v22 = vpack.c.bf16 %v3930_v62, %v3930_v62 }
0x172c   :  { %7766 = vmatmul.mubr.msk.bf16.vlgmr.msra.gmra.mrb[84].mxu1 %vm426_vm5, %v3932_v22  ;;  %v3933_v21 = vpack.c.bf16 %v3931_v20, %v3931_v20 }
0x172d   :  { %7776 = vmatpush3.bf16.xpose.msra.mxu1 %v4038_v34  ;;  %7777 = vmatprep.mubr.msk.bf16.mxu1 %vm8638_vm3, %v8637_v10 }
0x172e   :  { %7772 = vmatmul.mubr.msk.bf16.vlgmr.msra.gmra.mrb[84].mxu0 %vm426_vm5, %v3933_v21  ;;  %7787 = vmatprep.subr.bf16.mxu1 %v8637_v10 }
0x172f   :  { %7782 = vmatpush3.bf16.xpose.msra.mxu0 %v4088_v36  ;;  %7783 = vmatprep.mubr.msk.bf16.mxu0 %vm8638_vm3, %v8637_v10 }
0x1730   :  { %7793 = vmatprep.subr.bf16.mxu0 %v8637_v10 }
0x1734   :  { %7778 = vmatmul.mubr.msk.bf16.vlgmr.msra.gmra.mrb[88].mxu1 %vm426_vm5, %v4031_v43 }
0x1735   :  { %7789 = vmatprep.mubr.msk.bf16.mxu1 %vm8638_vm3, %v8637_v10 }
0x1736   :  { %7784 = vmatmul.mubr.msk.bf16.vlgmr.msra.gmra.mrb[88].mxu0 %vm426_vm5, %v4081_v39 }
0x1737   :  { %7795 = vmatprep.mubr.msk.bf16.mxu0 %vm8638_vm3, %v8637_v10 }
0x17ff   :  { %v9379_v61 = vpop.f32.mrb[84].mxu1 }
0x1800   :  { %v7767_v31 = vpop.f32.mrb[85].mxu1 }
0x1801   :  { %v3979_v46 = vpop.f32.mrb[86].mxu1  ;;  %v9381_v41 = vpop.f32.mrb[84].mxu0 }
0x1802   :  { %v7906_v24 = vpack.i.bf16 %v9381_v41, %v9379_v61  ;;  %v7768_v2 = vpop.f32.mrb[87].mxu1  ;;  %v7773_v28 = vpop.f32.mrb[85].mxu0 }
0x1803   :  { %v4027_v49 = vpop.f32.mrb[86].mxu0 }
0x1804   :  { %v7774_v50 = vpop.f32.mrb[87].mxu0 }
0x1807   :  { %v4074_v35 = vpop.f32.mrb[88].mxu1 }
0x1808   :  { %v4130_v29 = vmul.f32 0.35355338, %v4074_v35  ;;  %v7779_v14 = vpop.f32.mrb[89].mxu1 }
0x1809   :  { %v4077_v18 = vpop.f32.mrb[90].mxu1  ;;  %v4124_v19 = vpop.f32.mrb[88].mxu0 }
0x180a   :  { %v4131_v51 = vmul.f32 0.35355338, %v4124_v19  ;;  %v7780_v52 = vpop.f32.mrb[91].mxu1  ;;  %v7785_v53 = vpop.f32.mrb[89].mxu0  ;;  %v4132_v54 = vsel %vm426_vm5, %v4130_v29, -inf }
0x180b   :  { %4133 = vmax.xlane.f32.xlu1 %v4132_v54  ;;  %v4127_v55 = vpop.f32.mrb[90].mxu0 }
0x180c   :  { %v7786_v56 = vpop.f32.mrb[91].mxu0  ;;  %v4135_v25 = vsel %vm426_vm5, %v4131_v51, -inf }
0x180d   :  { %4136 = vmax.xlane.f32.xlu0 %v4135_v25 }
0x181c   :  { %4204 = vrot.lane.b32.xlu1 %v9285_v4, %s8645_s19 }
0x1823   :  { %4156 = vrot.lane.b32.xlu0 %v9283_v32, %s8645_s19 }
0x1898   :  { %v4134_v48 = vpop.xlane.xlu1 %4133 }
0x1899   :  { %v4138_v59 = vsub.f32 %v4130_v29, %v4134_v48 }
0x189a   :  { %v4137_v60 = vpop.xlane.xlu0 %4136 }
0x189b   :  { %v4140_v38 = vmul.f32 1.442695, %v4138_v59  ;;  %v4139_v63 = vsub.f32 %v4131_v51, %v4137_v60 }
0x189c   :  { %v4205_v3 = vpop.permute.xlu1 %4204 }
0x189d   :  { %8243 = vpow2.f32 %v4140_v38  ;;  %v4142_v57 = vmul.f32 1.442695, %v4139_v63  ;;  %v4210_v1 = vsel %vm553_vm6, %v4205_v3, 0 }
0x189e   :  { %7794 = vmatpush3.bf16.msra.mxu0 %v4210_v1  ;;  %v4157_v8 = vpop.permute.xlu0 %4156 }
0x189f   :  { %8245 = vpow2.f32 %v4142_v57  ;;  %v4162_v9 = vsel %vm553_vm6, %v4157_v8, 0  ;;  %7805 = vmatprep.subr.bf16.mxu0 %v8637_v10 }
0x18a0   :  { %7788 = vmatpush3.bf16.msra.mxu1 %v4162_v9 }
0x18a1   :  { %7799 = vmatprep.subr.bf16.mxu1 %v8637_v10 }
0x18a7   :  { %v8244_v11 = vpop.eup %8243 }
0x18a8   :  { %v4144_v12 = vsel %vm426_vm5, %v8244_v11, 0.0 }
0x18a9   :  { %v8246_v17 = vpop.eup %8245  ;;  %4145 = vadd.xlane.f32.xlu0 %v4144_v12 }
0x18aa   :  { %v4147_v13 = vsel %vm426_vm5, %v8246_v17, 0.0 }
0x18ab   :  { %4148 = vadd.xlane.f32.xlu1 %v4147_v13 }
0x18bc   :  { %4254 = vrot.lane.b32.xlu1 %v9283_v32, %s8646_s2 }
0x18bf   :  { %4304 = vrot.lane.b32.xlu0 %v9285_v4, %s8646_s2 }
0x18c0   :  { %4252 = vrot.lane.b32.xlu1 %v9283_v32, %s8647_s21 }
0x18c3   :  { %4302 = vrot.lane.b32.xlu0 %v9285_v4, %s8647_s21 }
0x1936   :  { %v4146_v15 = vpop.xlane.xlu0 %4145 }
0x1937   :  { %8247 = vrcp.f32 %v4146_v15 }
0x1938   :  { %v4149_v62 = vpop.xlane.xlu1 %4148 }
0x1939   :  { %8249 = vrcp.f32 %v4149_v62 }
0x193a   :  { %v4305_v21 = vpop.permute.xlu0 %4304 }
0x193b   :  { %v4310_v39 = vsel %vm426_vm5, %v4305_v21, 0  ;;  %v8055_v21 = vld [vmem:[#allocation16] sm:$0xff]  }
0x193c   :  { %v4255_v22 = vpop.permute.xlu1 %4254 }
0x193d   :  { %v4260_v36 = vsel %vm426_vm5, %v4255_v22, 0 }
0x193e   :  { %v4303_v46 = vpop.permute.xlu0 %4302 }
0x1940   :  { %v4253_v31 = vpop.permute.xlu1 %4252 }
0x1941   :  { %v8248_v5 = vpop.eup %8247 }
0x1942   :  { %v4152_v16 = vmul.f32 %v8248_v5, %v8244_v11 }
0x1943   :  { %v8250_v20 = vpop.eup %8249 }
0x1944   :  { %v4153_v23 = vmul.f32 %v8250_v20, %v8246_v17  ;;  %v4154_v34 = vpack.c.bf16 %v4152_v16, %v4152_v16 }
0x1946   :  { %7790 = vmatmul.mubr.msk.bf16.vlgmr.msra.gmra.mrb[92].mxu1 %vm426_vm5, %v4154_v34  ;;  %v4155_v43 = vpack.c.bf16 %v4153_v23, %v4153_v23 }
0x1947   :  { %7800 = vmatpush3.bf16.xpose.msra.mxu1 %v4260_v36  ;;  %7801 = vmatprep.mubr.msk.bf16.mxu1 %vm8638_vm3, %v8637_v10  ;;  %v8056_v36 = vld [vmem:[#allocation16 + $0x8] sm:$0xff]  }
0x1948   :  { %7796 = vmatmul.mubr.msk.bf16.vlgmr.msra.gmra.mrb[92].mxu0 %vm426_vm5, %v4155_v43  ;;  %7811 = vmatprep.subr.bf16.mxu1 %v8637_v10 }
0x1949   :  { %7806 = vmatpush3.bf16.xpose.msra.mxu0 %v4310_v39  ;;  %7807 = vmatprep.mubr.msk.bf16.mxu0 %vm8638_vm3, %v8637_v10 }
0x194a   :  { %7817 = vmatprep.subr.bf16.mxu0 %v8637_v10 }
0x194e   :  { %7802 = vmatmul.mubr.msk.bf16.vlgmr.msra.gmra.mrb[96].mxu1 %vm426_vm5, %v4253_v31 }
0x194f   :  { %7813 = vmatprep.mubr.msk.bf16.mxu1 %vm8638_vm3, %v8637_v10 }
0x1950   :  { %7808 = vmatmul.mubr.msk.bf16.vlgmr.msra.gmra.mrb[96].mxu0 %vm426_vm5, %v4303_v46 }
0x1951   :  { %7819 = vmatprep.mubr.msk.bf16.mxu0 %vm8638_vm3, %v8637_v10 }
0x1a19   :  { %v4198_v2 = vpop.f32.mrb[92].mxu1 }
0x1a1a   :  { %v7791_v28 = vpop.f32.mrb[93].mxu1 }
0x1a1b   :  { %v4201_v49 = vpop.f32.mrb[94].mxu1  ;;  %v4246_v50 = vpop.f32.mrb[92].mxu0 }
0x1a1c   :  { %v7911_v35 = vpack.i.bf16 %v4246_v50, %v4198_v2  ;;  %v7792_v29 = vpop.f32.mrb[95].mxu1  ;;  %v7797_v14 = vpop.f32.mrb[93].mxu0 }
0x1a1d   :  { %v4249_v18 = vpop.f32.mrb[94].mxu0 }
0x1a1e   :  { %v7798_v19 = vpop.f32.mrb[95].mxu0 }
0x1a21   :  { %v4296_v51 = vpop.f32.mrb[96].mxu1 }
0x1a22   :  { %v4352_v52 = vmul.f32 0.35355338, %v4296_v51  ;;  %v7803_v53 = vpop.f32.mrb[97].mxu1 }
0x1a23   :  { %v4299_v54 = vpop.f32.mrb[98].mxu1  ;;  %v4346_v55 = vpop.f32.mrb[96].mxu0 }
0x1a24   :  { %v4353_v56 = vmul.f32 0.35355338, %v4346_v55  ;;  %v7804_v25 = vpop.f32.mrb[99].mxu1  ;;  %v7809_v48 = vpop.f32.mrb[97].mxu0  ;;  %v4354_v59 = vsel %vm426_vm5, %v4352_v52, -inf }
0x1a25   :  { %4355 = vmax.xlane.f32.xlu1 %v4354_v59  ;;  %v4349_v60 = vpop.f32.mrb[98].mxu0 }
0x1a26   :  { %v7810_v38 = vpop.f32.mrb[99].mxu0  ;;  %v4357_v63 = vsel %vm426_vm5, %v4353_v56, -inf }
0x1a27   :  { %4358 = vmax.xlane.f32.xlu0 %v4357_v63 }
0x1ab2   :  { %v4356_v3 = vpop.xlane.xlu1 %4355 }
0x1ab3   :  { %v4360_v57 = vsub.f32 %v4352_v52, %v4356_v3 }
0x1ab4   :  { %v4359_v1 = vpop.xlane.xlu0 %4358 }
0x1ab5   :  { %v4362_v8 = vmul.f32 1.442695, %v4360_v57  ;;  %v4361_v9 = vsub.f32 %v4353_v56, %v4359_v1 }
0x1ab7   :  { %8251 = vpow2.f32 %v4362_v8  ;;  %v4364_v11 = vmul.f32 1.442695, %v4361_v9 }
0x1ab9   :  { %8253 = vpow2.f32 %v4364_v11 }
0x1ac1   :  { %v8252_v12 = vpop.eup %8251 }
0x1ac2   :  { %v4366_v17 = vsel %vm426_vm5, %v8252_v12, 0.0 }
0x1ac3   :  { %v8254_v13 = vpop.eup %8253  ;;  %4367 = vadd.xlane.f32.xlu0 %v4366_v17 }
0x1ac4   :  { %v4369_v15 = vsel %vm426_vm5, %v8254_v13, 0.0 }
0x1ac5   :  { %4370 = vadd.xlane.f32.xlu1 %v4369_v15 }
0x1ad6   :  { %4426 = vrot.lane.b32.xlu1 %v9285_v4, %s8648_s7 }
0x1ad9   :  { %4378 = vrot.lane.b32.xlu0 %v9283_v32, %s8648_s7 }
0x1ada   :  { %7907 = vrot.lane.b32.xlu1 %v7906_v24, %s8619_s24 }
0x1add   :  { %7912 = vrot.lane.b32.xlu0 %v7911_v35, %s8649_s5 }
0x1b50   :  { %v4368_v62 = vpop.xlane.xlu0 %4367 }
0x1b51   :  { %8255 = vrcp.f32 %v4368_v62  ;;  %v4614_v62 = vld [vmem:[#allocation17] sm:$0xff] }
0x1b52   :  { %v4371_v5 = vpop.xlane.xlu1 %4370 }
0x1b53   :  { %8257 = vrcp.f32 %v4371_v5  ;;  %v4622_v5 = vld [vmem:[#allocation17 + $0x40] sm:$0xff] }
0x1b54   :  { %v4379_v16 = vpop.permute.xlu0 %4378 }
0x1b55   :  { %v4384_v20 = vsel %vm553_vm6, %v4379_v16, 0  ;;  %v4615_v16 = vld [vmem:[#allocation17 + $0x8] sm:$0xff] }
0x1b56   :  { %v4427_v22 = vpop.permute.xlu1 %4426  ;;  %7812 = vmatpush3.bf16.msra.mxu1 %v4384_v20  ;;  %v6976_v20 = vcombine.high %v4614_v62, %v4622_v5 }
0x1b57   :  { %v4432_v4 = vsel %vm553_vm6, %v4427_v22, 0  ;;  %7823 = vmatprep.subr.bf16.mxu1 %v8637_v10  ;;  %v4623_v22 = vld [vmem:[#allocation17 + $0x48] sm:$0xff] }
0x1b58   :  { %7818 = vmatpush3.bf16.msra.mxu0 %v4432_v4  ;;  %v7913_v19 = vpop.permute.xlu0 %7912  ;;  %v6975_v4 = vcombine.low %v4614_v62, %v4622_v5 }
0x1b59   :  { %v7915_v53 = vunpack.i.h.bf16 %v7913_v19  ;;  %v7914_v54 = vunpack.i.l.bf16 %v7913_v19  ;;  %4873 = vmatprep.subr.bf16.mxu0 %v6976_v20  ;;  %v4626_v20 = vld [vmem:[#allocation17 + $0x60] sm:$0xff] }
0x1b5a   :  { %v7908_v29 = vpop.permute.xlu1 %7907 }
0x1b5b   :  { %v8256_v32 = vpop.eup %8255  ;;  %v7910_v14 = vunpack.i.h.bf16 %v7908_v29  ;;  %v7909_v18 = vunpack.i.l.bf16 %v7908_v29 }
0x1b5c   :  { %v4374_v23 = vmul.f32 %v8256_v32, %v8252_v12  ;;  %v6977_v32 = vcombine.low %v4615_v16, %v4623_v22 }
0x1b5d   :  { %v8258_v61 = vpop.eup %8257  ;;  %v4499_v51 = vsel %vm426_vm5, %v9341_v47, %v7910_v14  ;;  %v4498_v52 = vsel %vm426_vm5, %v9339_v44, %v7909_v18  ;;  %v4512_v44 = vrot.slane %v9278_v45, %v1350_v30 }
0x1b5e   :  { %v4375_v41 = vmul.f32 %v8258_v61, %v8254_v13  ;;  %v4376_v24 = vpack.c.bf16 %v4374_v23, %v4374_v23  ;;  %v4500_v48 = vsel %vm1337_vm7, %v4498_v52, %v7914_v54  ;;  %v4501_v59 = vsel %vm1337_vm7, %v4499_v51, %v7915_v53  ;;  %v4630_v61 = vld [vmem:[#allocation17 + $0x80] sm:$0xff] }
0x1b5f   :  { %v6978_v23 = vcombine.high %v4615_v16, %v4623_v22  ;;  %v4618_v16 = vld [vmem:[#allocation17 + $0x20] sm:$0xff] }
0x1b60   :  { %7814 = vmatmul.mubr.msk.bf16.vlgmr.msra.gmra.mrb[100].mxu1 %vm426_vm5, %v4376_v24  ;;  %v4377_v34 = vpack.c.bf16 %v4375_v41, %v4375_v41  ;;  %v4638_v41 = vld [vmem:[#allocation17 + $0xc0] sm:$0xff]  ;;  %v4631_v24 = vld [vmem:[#allocation17 + $0x88] sm:$0xff] }
0x1b61   :  { %7827 = vmatprep.mubr.msk.bf16.mxu1 %vm8638_vm3, %v8637_v10  ;;  %7824 = vmatpush3.bf16.msra.mxu1 %v8055_v21  ;;  %v4639_v21 = vld [vmem:[#allocation17 + $0xc8] sm:$0xff] }
0x1b62   :  { %7820 = vmatmul.mubr.msk.bf16.vlgmr.msra.gmra.mrb[100].mxu0 %vm426_vm5, %v4377_v34  ;;  %7825 = vmatprep.subr.bf16.mxu1 %v8637_v10  ;;  %v6992_v34 = vcombine.high %v4630_v61, %v4638_v41 }
0x1b63   :  { %4905 = vmatprep.mubr.bf16.mxu0 %v8636_v0  ;;  %4874 = vmatpush1.bf16.msra.mxu0 %v6975_v4 }
0x1b64   :  { %4875 = vmatprep.subr.bf16.mxu0 %v6992_v34  ;;  %v4643_v34 = vld [vmem:[#allocation17 + $0xe8] sm:$0xff] }
0x1b65   :  { %7826 = vmatpush3.bf16.msra.mxu1 %v8056_v36  ;;  %v6991_v36 = vcombine.low %v4630_v61, %v4638_v41  ;;  %v4634_v61 = vld [vmem:[#allocation17 + $0xa0] sm:$0xff] }
0x1b66   :  { %4916 = vmatprep.subr.bf16.mxu1 %v6978_v23  ;;  %v4642_v41 = vld [vmem:[#allocation17 + $0xe0] sm:$0xff] }
0x1b67   :  { %4876 = vmatpush1.bf16.msra.mxu0 %v6991_v36 }
0x1c33   :  { %v4420_v43 = vpop.f32.mrb[100].mxu1 }
0x1c34   :  { %v7815_v39 = vpop.f32.mrb[101].mxu1 }
0x1c35   :  { %v4423_v31 = vpop.f32.mrb[102].mxu1  ;;  %v4468_v46 = vpop.f32.mrb[100].mxu0  ;;  %v6994_v39 = vcombine.high %v4631_v24, %v4639_v21 }
0x1c36   :  { %v7916_v2 = vpack.i.bf16 %v4468_v46, %v4420_v43  ;;  %v7816_v28 = vpop.f32.mrb[103].mxu1  ;;  %v7821_v49 = vpop.f32.mrb[101].mxu0  ;;  %v6993_v43 = vcombine.low %v4631_v24, %v4639_v21  ;;  %v4616_v31 = vld [vmem:[#allocation17 + $0x10] sm:$0xff]  ;;  %v4635_v24 = vld [vmem:[#allocation17 + $0xa8] sm:$0xff]  ;;  %v6983_v21 = vcombine.low %v4618_v16, %v4626_v20 }
0x1c37   :  { %v4471_v50 = vpop.f32.mrb[102].mxu0  ;;  %v4624_v46 = vld [vmem:[#allocation17 + $0x50] sm:$0xff] }
0x1c38   :  { %7917 = vrot.lane.b32.xlu1 %v7916_v2, %s8650_s6  ;;  %v7822_v35 = vpop.f32.mrb[103].mxu0  ;;  %v4617_v2 = vld [vmem:[#allocation17 + $0x18] sm:$0xff]  ;;  %v6979_v28 = vcombine.low %v4616_v31, %v4624_v46  ;;  %v6980_v49 = vcombine.high %v4616_v31, %v4624_v46  ;;  %v4620_v31 = vld [vmem:[#allocation17 + $0x30] sm:$0xff] }
0x1c39   :  { %v4625_v50 = vld [vmem:[#allocation17 + $0x58] sm:$0xff]  ;;  %v4628_v46 = vld [vmem:[#allocation17 + $0x70] sm:$0xff] }
0x1c3a   :  { %v6981_v35 = vcombine.low %v4617_v2, %v4625_v50  ;;  %v6982_v29 = vcombine.high %v4617_v2, %v4625_v50  ;;  %4959 = vmatprep.subr.bf16.mxu0 %v6980_v49  ;;  %v4621_v2 = vld [vmem:[#allocation17 + $0x38] sm:$0xff]  ;;  %v6999_v49 = vcombine.low %v4634_v61, %v4642_v41  ;;  %v7001_v50 = vcombine.low %v4635_v24, %v4643_v34 }
0x1caa   :  { %v7918_v55 = vpop.permute.xlu1 %7917 }
0x1cab   :  { %v7920_v56 = vunpack.i.h.bf16 %v7918_v55  ;;  %v7919_v25 = vunpack.i.l.bf16 %v7918_v55 }
0x1cad   :  { %v4503_v60 = vsel %vm1340_vm8, %v4501_v59, %v7920_v56  ;;  %v4502_v38 = vsel %vm1340_vm8, %v4500_v48, %v7919_v25 }
0x1cae   :  { %v4504_v63 = vpack.c.bf16 %v4503_v60, %v4502_v38 }
0x1cb0   :  { %7828 = vmatmul.mubr.msk.bf16.vlgmr.msra.gmra.mrb[104].mxu1 %vm376_vm4, %v4504_v63 }
0x1cb1   :  { %4948 = vmatprep.mubr.bf16.mxu1 %v8636_v0  ;;  %4917 = vmatpush1.bf16.msra.mxu1 %v6977_v32  ;;  %v6984_v32 = vcombine.high %v4618_v16, %v4626_v20  ;;  %v8079_v16 = vld [vmem:[#allocation19 + $0x28] sm:$0xff]  }
0x1cb2   :  { %4918 = vmatprep.subr.bf16.mxu1 %v6994_v39  ;;  %v7002_v39 = vcombine.high %v4635_v24, %v4643_v34  ;;  %v8080_v20 = vld [vmem:[#allocation19 + $0xa8] sm:$0xff]   ;;  %v8089_v24 = vld [vmem:[#allocation19 + $0x140] sm:$0xff]  }
0x1cb3   :  { %v8090_v34 = vld [vmem:[#allocation19 + $0x1c0] sm:$0xff]  }
0x1cb5   :  { %4919 = vmatpush1.bf16.msra.mxu1 %v6993_v43  ;;  %v7000_v43 = vcombine.high %v4634_v61, %v4642_v41  ;;  %v8087_v61 = vld [vmem:[#allocation19 + $0x38] sm:$0xff]  }
0x1cb6   :  { %5002 = vmatprep.subr.bf16.mxu1 %v6982_v29  ;;  %v8088_v41 = vld [vmem:[#allocation19 + $0xb8] sm:$0xff]  }
0x1d83   :  { %v4562_v47 = vpop.f32.mrb[104].mxu1 }
0x1d84   :  { %v4563_v3 = vadd.f32 %v4562_v47, %v4512_v44  ;;  %v7829_v57 = vpop.f32.mrb[105].mxu1  ;;  %v4604_v47 = vrot.slane %v9278_v45, %v1443_v26 }
0x1d85   :  { %v4565_v1 = vpop.f32.mrb[106].mxu1 }
0x1d86   :  { %v9458_v8 = vadd.f32 %v4563_v3, %v9269_v37  ;;  %v4566_v9 = vadd.f32 %v4565_v1, %v4512_v44  ;;  %v7830_v11 = vpop.f32.mrb[107].mxu1 }
0x1d88   :  { %v9461_v12 = vadd.f32 %v4566_v9, %v9271_v42  ;;  %v4571_v17 = vsel %vm376_vm4, %v9458_v8, 0.0  ;;  %v4579_v13 = vmul.f32 %v9458_v8, %v9458_v8  ;;  %v4610_v9 = vrot.slane %v9278_v45, %v1449_v33  ;;  %v4619_v33 = vld [vmem:[#allocation17 + $0x28] sm:$0xff] }
0x1d89   :  { %4572 = vadd.xlane.f32.xlu0 %v4571_v17  ;;  %v4627_v45 = vld [vmem:[#allocation17 + $0x68] sm:$0xff] }
0x1d8a   :  { %v4574_v30 = vsel %vm376_vm4, %v9461_v12, 0.0  ;;  %v4581_v15 = vsel %vm376_vm4, %v4579_v13, 0.0  ;;  %v4580_v37 = vmul.f32 %v9461_v12, %v9461_v12  ;;  %v6986_v23 = vcombine.high %v4619_v33, %v4627_v45 }
0x1d8b   :  { %4575 = vadd.xlane.f32.xlu1 %v4574_v30  ;;  %v4632_v30 = vld [vmem:[#allocation17 + $0x90] sm:$0xff]  ;;  %v6985_v36 = vcombine.low %v4619_v33, %v4627_v45 }
0x1d8c   :  { %v4584_v42 = vsel %vm376_vm4, %v4580_v37, 0.0  ;;  %v4633_v37 = vld [vmem:[#allocation17 + $0x98] sm:$0xff]  ;;  %v8081_v33 = vld [vmem:[#allocation19 + $0x70] sm:$0xff]  }
0x1d8d   :  { %4582 = vadd.xlane.f32.xlu0 %v4581_v15  ;;  %v4640_v15 = vld [vmem:[#allocation17 + $0xd0] sm:$0xff] }
0x1d8e   :  { %v6995_v22 = vcombine.low %v4632_v30, %v4640_v15  ;;  %v8082_v45 = vld [vmem:[#allocation19 + $0xf0] sm:$0xff]  }
0x1d91   :  { %4585 = vadd.xlane.f32.xlu0 %v4584_v42 }
0x1e16   :  { %v4573_v14 = vpop.xlane.xlu0 %4572 }
0x1e17   :  { %v4577_v18 = vmul.f32 0.03125, %v4573_v14  ;;  %v4636_v14 = vld [vmem:[#allocation17 + $0xb0] sm:$0xff] }
0x1e18   :  { %v4576_v19 = vpop.xlane.xlu1 %4575 }
0x1e19   :  { %v4589_v52 = vmul.f32 %v4577_v18, %v4577_v18  ;;  %v4578_v53 = vmul.f32 0.03125, %v4576_v19  ;;  %v4593_v63 = vsub.f32 %v9458_v8, %v4577_v18  ;;  %v4641_v8 = vld [vmem:[#allocation17 + $0xd8] sm:$0xff]  ;;  %v4644_v18 = vld [vmem:[#allocation17 + $0xf0] sm:$0xff] }
0x1e1a   :  { %v4583_v51 = vpop.xlane.xlu0 %4582  ;;  %v6998_v5 = vcombine.high %v4633_v37, %v4641_v8  ;;  %v6997_v4 = vcombine.low %v4633_v37, %v4641_v8  ;;  %v4637_v19 = vld [vmem:[#allocation17 + $0xb8] sm:$0xff]  ;;  %v8074_v37 = vld [vmem:[#allocation19 + $0xe0] sm:$0xff]  }
0x1e1b   :  { %v4587_v54 = vmul.f32 0.03125, %v4583_v51  ;;  %v4590_v25 = vmul.f32 %v4578_v53, %v4578_v53  ;;  %v4594_v57 = vsub.f32 %v9461_v12, %v4578_v53  ;;  %v6996_v12 = vcombine.high %v4632_v30, %v4640_v15  ;;  %v4645_v51 = vld [vmem:[#allocation17 + $0xf8] sm:$0xff]  ;;  %v8073_v15 = vld [vmem:[#allocation19 + $0x60] sm:$0xff]  }
0x1e1c   :  { %v8072_v30 = vld [vmem:[#allocation19 + $0x98] sm:$0xff]   ;;  %v8075_v8 = vld [vmem:[#allocation19 + $0x20] sm:$0xff]  }
0x1e1d   :  { %v4591_v55 = vsub.f32 %v4587_v54, %v4589_v52  ;;  %v6987_v52 = vcombine.low %v4620_v31, %v4628_v46  ;;  %v7004_v54 = vcombine.high %v4636_v14, %v4644_v18 }
0x1e1e   :  { %v4586_v56 = vpop.xlane.xlu0 %4585 }
0x1e1f   :  { %v4595_v48 = vadd.f32 1e-05, %v4591_v55  ;;  %v4588_v59 = vmul.f32 0.03125, %v4586_v56  ;;  %v7006_v55 = vcombine.high %v4637_v19, %v4645_v51  ;;  %v7003_v56 = vcombine.low %v4636_v14, %v4644_v18 }
0x1e21   :  { %8259 = vrsqrt.f32 %v4595_v48  ;;  %v4592_v60 = vsub.f32 %v4588_v59, %v4590_v25  ;;  %v7005_v25 = vcombine.low %v4637_v19, %v4645_v51  ;;  %v8057_v48 = vld [vmem:[#allocation19 + $0x40] sm:$0xff]  }
0x1e22   :  { %v8058_v59 = vld [vmem:[#allocation19 + $0xc0] sm:$0xff]  }
0x1e23   :  { %v4596_v38 = vadd.f32 1e-05, %v4592_v60  ;;  %v8059_v60 = vld [vmem:[#allocation19] sm:$0xff]  }
0x1e25   :  { %8261 = vrsqrt.f32 %v4596_v38  ;;  %v8060_v38 = vld [vmem:[#allocation19 + $0x80] sm:$0xff]  }
0x1e2b   :  { %v8260_v44 = vpop.eup %8259 }
0x1e2c   :  { %v4599_v3 = vmul.f32 %v8260_v44, %v4593_v63  ;;  %v8061_v63 = vld [vmem:[#allocation19 + $0x48] sm:$0xff]  }
0x1e2d   :  { %v8062_v44 = vld [vmem:[#allocation19 + $0xc8] sm:$0xff]  }
0x1e2e   :  { %v4605_v11 = vmul.f32 %v4604_v47, %v4599_v3  ;;  %v8064_v3 = vld [vmem:[#allocation19 + $0x88] sm:$0xff]  }
0x1e2f   :  { %v8262_v1 = vpop.eup %8261 }
0x1e30   :  { %v4600_v17 = vmul.f32 %v8262_v1, %v4594_v57  ;;  %v9481_v42 = vadd.f32 %v4610_v9, %v4605_v11  ;;  %v8066_v57 = vld [vmem:[#allocation19 + $0xd0] sm:$0xff]   ;;  %v8069_v11 = vld [vmem:[#allocation19 + $0x58] sm:$0xff]  }
0x1e31   :  { %v8067_v1 = vld [vmem:[#allocation19 + $0x10] sm:$0xff]  }
0x1e32   :  { %v4606_v13 = vmul.f32 %v4604_v47, %v4600_v17  ;;  %v8063_v47 = vld [vmem:[#allocation19 + $0x8] sm:$0xff]   ;;  %v8070_v17 = vld [vmem:[#allocation19 + $0xd8] sm:$0xff]  }
0x1e34   :  { %v9483_v62 = vadd.f32 %v4610_v9, %v4606_v13  ;;  %v8068_v9 = vld [vmem:[#allocation19 + $0x90] sm:$0xff]   ;;  %v8071_v13 = vld [vmem:[#allocation19 + $0x18] sm:$0xff]  }
0x1e36   :  { %v9487_v26 = vpack.c.bf16 %v9483_v62, %v9481_v42 }
0x1e38   :  { %7007 = vmatmul.mubr.msk.bf16.vlgmr.msra.gmra.mrb[104].mxu0 %vm376_vm4, %v9487_v26  ;;  %7008 = vmatmul.mubr.msk.bf16.vlgmr.msra.gmra.mrb[108].mxu1 %vm376_vm4, %v9487_v26 }
0x1e39   :  { %4960 = vmatpush1.bf16.msra.mxu0 %v6979_v28  ;;  %5003 = vmatpush1.bf16.msra.mxu1 %v6981_v35  ;;  %v4629_v28 = vld [vmem:[#allocation17 + $0x78] sm:$0xff]  ;;  %v6988_v35 = vcombine.high %v4620_v31, %v4628_v46 }
0x1e3a   :  { %4961 = vmatprep.subr.bf16.mxu0 %v6996_v12  ;;  %5004 = vmatprep.subr.bf16.mxu1 %v6998_v5  ;;  %v6990_v29 = vcombine.high %v4621_v2, %v4629_v28  ;;  %v6989_v53 = vcombine.low %v4621_v2, %v4629_v28  ;;  %v8077_v12 = vld [vmem:[#allocation19 + $0x68] sm:$0xff]  }
0x1e3b   :  { %4991 = vmatprep.mubr.bf16.mxu0 %v8636_v0  ;;  %5034 = vmatprep.mubr.bf16.mxu1 %v8636_v0  ;;  %v8078_v5 = vld [vmem:[#allocation19 + $0xe8] sm:$0xff]  }
0x1e3d   :  { %4962 = vmatpush1.bf16.msra.mxu0 %v6995_v22  ;;  %5005 = vmatpush1.bf16.msra.mxu1 %v6997_v4  ;;  %v8083_v22 = vld [vmem:[#allocation19 + $0x30] sm:$0xff]  }
0x1e3e   :  { %5045 = vmatprep.subr.bf16.mxu0 %v6984_v32  ;;  %5088 = vmatprep.subr.bf16.mxu1 %v6986_v23  ;;  %v8084_v4 = vld [vmem:[#allocation19 + $0xb0] sm:$0xff]   ;;  %v8085_v32 = vld [vmem:[#allocation19 + $0x78] sm:$0xff]  }
0x1e3f   :  { %v8086_v23 = vld [vmem:[#allocation19 + $0xf8] sm:$0xff]  }
0x1e40   :  { %7009 = vmatmul.mubr.msk.bf16.vlgmr.msra.gmra.mrb[108].mxu0 %vm376_vm4, %v9487_v26  ;;  %7010 = vmatmul.mubr.msk.bf16.vlgmr.msra.gmra.mrb[112].mxu1 %vm376_vm4, %v9487_v26 }
0x1e41   :  { %5046 = vmatpush1.bf16.msra.mxu0 %v6983_v21  ;;  %5089 = vmatpush1.bf16.msra.mxu1 %v6985_v36  ;;  %v3507_v21 = vld [vmem:[#allocation20 + $0x10] sm:$0xff]  ;;  %v3506_v36 = vld [vmem:[#allocation20 + $0x8] sm:$0xff] }
0x1e42   :  { %5047 = vmatprep.subr.bf16.mxu0 %v7000_v43  ;;  %5090 = vmatprep.subr.bf16.mxu1 %v7002_v39  ;;  %v3508_v43 = vld [vmem:[#allocation20 + $0x18] sm:$0xff]  ;;  %v9511_v39 = vld [vmem:[#allocation20] sm:$0xff]  ;;  %v4657_v46 = vrot.slane %v3507_v21, %v9188_v58  ;;  %v4653_v2 = vrot.slane %v3506_v36, %v9188_v58  ;;  %v8094_v21 = vld [vmem:[#allocation19 + $0x1c8] sm:$0xff]  }
0x1e43   :  { %5077 = vmatprep.mubr.bf16.mxu0 %v8636_v0  ;;  %5120 = vmatprep.mubr.bf16.mxu1 %v8636_v0  ;;  %v4649_v31 = vrot.slane %v9511_v39, %v9188_v58  ;;  %v4661_v28 = vrot.slane %v3508_v43, %v9188_v58  ;;  %v3516_v43 = vld [vmem:[#allocation20 + $0x58] sm:$0xff] }
0x1e45   :  { %5048 = vmatpush1.bf16.msra.mxu0 %v6999_v49  ;;  %5091 = vmatpush1.bf16.msra.mxu1 %v7001_v50 }
0x1e46   :  { %5131 = vmatprep.subr.bf16.mxu0 %v6988_v35  ;;  %5174 = vmatprep.subr.bf16.mxu1 %v6990_v29  ;;  %v3509_v35 = vld [vmem:[#allocation20 + $0x20] sm:$0xff]  ;;  %v3511_v29 = vld [vmem:[#allocation20 + $0x30] sm:$0xff] }
0x1e48   :  { %7011 = vmatmul.mubr.msk.bf16.vlgmr.msra.gmra.mrb[112].mxu0 %vm376_vm4, %v9487_v26  ;;  %7012 = vmatmul.mubr.msk.bf16.vlgmr.msra.gmra.mrb[116].mxu1 %vm376_vm4, %v9487_v26 }
0x1e49   :  { %5132 = vmatpush1.bf16.msra.mxu0 %v6987_v52  ;;  %5175 = vmatpush1.bf16.msra.mxu1 %v6989_v53  ;;  %v3510_v52 = vld [vmem:[#allocation20 + $0x28] sm:$0xff]  ;;  %v3512_v53 = vld [vmem:[#allocation20 + $0x38] sm:$0xff] }
0x1e4a   :  { %5133 = vmatprep.subr.bf16.mxu0 %v7004_v54  ;;  %5176 = vmatprep.subr.bf16.mxu1 %v7006_v55 }
0x1e4b   :  { %5163 = vmatprep.mubr.bf16.mxu0 %v8636_v0  ;;  %5206 = vmatprep.mubr.bf16.mxu1 %v8636_v0  ;;  %v8065_v0 = vld [vmem:[#allocation19 + $0x50] sm:$0xff]  }
0x1e4d   :  { %5134 = vmatpush1.bf16.msra.mxu0 %v7003_v56  ;;  %5177 = vmatpush1.bf16.msra.mxu1 %v7005_v25 }
0x1e4e   :  { %7409 = vmatprep.subr.bf16.mxu0 %v8057_v48  ;;  %7431 = vmatprep.subr.bf16.mxu1 %v8058_v59 }
0x1e50   :  { %7013 = vmatmul.mubr.msk.bf16.vlgmr.msra.gmra.mrb[116].mxu0 %vm376_vm4, %v9487_v26  ;;  %7014 = vmatmul.mubr.msk.bf16.vlgmr.msra.gmra.mrb[120].mxu1 %vm376_vm4, %v9487_v26  ;;  %v8076_v26 = vld [vmem:[#allocation19 + $0xa0] sm:$0xff]  }
0x1e51   :  { %7410 = vmatpush3.bf16.msra.mxu0 %v8059_v60  ;;  %7432 = vmatpush3.bf16.msra.mxu1 %v8060_v38 }
0x1e52   :  { %7411 = vmatprep.subr.bf16.mxu0 %v8061_v63  ;;  %7433 = vmatprep.subr.bf16.mxu1 %v8062_v44  ;;  %v4665_v63 = vrot.slane %v3509_v35, %v9188_v58  ;;  %v4673_v44 = vrot.slane %v3511_v29, %v9188_v58 }
0x1e55   :  { %7412 = vmatpush3.bf16.msra.mxu0 %v8063_v47  ;;  %7434 = vmatpush3.bf16.msra.mxu1 %v8064_v3 }
0x1e56   :  { %7413 = vmatprep.subr.bf16.mxu0 %v8065_v0  ;;  %7435 = vmatprep.subr.bf16.mxu1 %v8066_v57  ;;  %v4669_v0 = vrot.slane %v3510_v52, %v9188_v58  ;;  %v4677_v57 = vrot.slane %v3512_v53, %v9188_v58  ;;  %v8095_v52 = vld [vmem:[#allocation19 + $0x108] sm:$0xff]  }
0x1e57   :  { %v8096_v53 = vld [vmem:[#allocation19 + $0x188] sm:$0xff]  }
0x1e59   :  { %7414 = vmatpush3.bf16.msra.mxu0 %v8067_v1  ;;  %7436 = vmatpush3.bf16.msra.mxu1 %v8068_v9 }
0x1e5a   :  { %7415 = vmatprep.subr.bf16.mxu0 %v8069_v11  ;;  %7437 = vmatprep.subr.bf16.mxu1 %v8070_v17 }
0x1e5d   :  { %7416 = vmatpush3.bf16.msra.mxu0 %v8071_v13  ;;  %7438 = vmatpush3.bf16.msra.mxu1 %v8072_v30 }
0x1e5e   :  { %7417 = vmatprep.subr.bf16.mxu0 %v8073_v15  ;;  %7439 = vmatprep.subr.bf16.mxu1 %v8074_v37 }
0x1e61   :  { %7418 = vmatpush3.bf16.msra.mxu0 %v8075_v8  ;;  %7440 = vmatpush3.bf16.msra.mxu1 %v8076_v26  ;;  %v3513_v8 = vld [vmem:[#allocation20 + $0x40] sm:$0xff] }
0x1e62   :  { %7419 = vmatprep.subr.bf16.mxu0 %v8077_v12  ;;  %7441 = vmatprep.subr.bf16.mxu1 %v8078_v5  ;;  %v3515_v5 = vld [vmem:[#allocation20 + $0x50] sm:$0xff]  ;;  %v9523_v36 = vrot.slane %v3513_v8, %v9188_v58 }
0x1e65   :  { %7420 = vmatpush3.bf16.msra.mxu0 %v8079_v16  ;;  %7442 = vmatpush3.bf16.msra.mxu1 %v8080_v20 }
0x1e66   :  { %7421 = vmatprep.subr.bf16.mxu0 %v8081_v33  ;;  %7443 = vmatprep.subr.bf16.mxu1 %v8082_v45 }
0x1e69   :  { %7422 = vmatpush3.bf16.msra.mxu0 %v8083_v22  ;;  %7444 = vmatpush3.bf16.msra.mxu1 %v8084_v4  ;;  %v8091_v22 = vld [vmem:[#allocation19 + $0x100] sm:$0xff]  }
0x1e6a   :  { %7423 = vmatprep.subr.bf16.mxu0 %v8085_v32  ;;  %7445 = vmatprep.subr.bf16.mxu1 %v8086_v23  ;;  %v8092_v4 = vld [vmem:[#allocation19 + $0x180] sm:$0xff]   ;;  %v3514_v32 = vld [vmem:[#allocation20 + $0x48] sm:$0xff] }
0x1e6d   :  { %7424 = vmatpush3.bf16.msra.mxu0 %v8087_v61  ;;  %7446 = vmatpush3.bf16.msra.mxu1 %v8088_v41 }
0x1e6e   :  { %7453 = vmatprep.subr.bf16.mxu0 %v8089_v24  ;;  %7475 = vmatprep.subr.bf16.mxu1 %v8090_v34  ;;  %v8093_v34 = vld [vmem:[#allocation19 + $0x148] sm:$0xff]  }
0x1f0b   :  { %v4907_v49 = vpop.f32.mrb[104].mxu0  ;;  %v4950_v50 = vpop.f32.mrb[108].mxu1 }
0x1f0c   :  { %v4908_v14 = vadd.f32 %v4907_v49, %v4649_v31  ;;  %v4951_v18 = vadd.f32 %v4950_v50, %v4657_v46  ;;  %v4909_v19 = vpop.f32.mrb[105].mxu0  ;;  %v4952_v51 = vpop.f32.mrb[109].mxu1  ;;  %v4689_v49 = vrot.slane %v3515_v5, %v9188_v58 }
0x1f0d   :  { %v4910_v54 = vadd.f32 %v4909_v19, %v4653_v2  ;;  %v4953_v55 = vadd.f32 %v4952_v51, %v4661_v28  ;;  %v4911_v56 = vpop.f32.mrb[106].mxu0  ;;  %v4954_v25 = vpop.f32.mrb[110].mxu1 }
0x1f0e   :  { %v4912_v48 = vadd.f32 %v4911_v56, %v4649_v31  ;;  %v4955_v59 = vadd.f32 %v4954_v25, %v4657_v46  ;;  %v4913_v60 = vpop.f32.mrb[107].mxu0  ;;  %v4956_v38 = vpop.f32.mrb[111].mxu1  ;;  %v5217_v1 = vmax.f32 %v4908_v14, 0.0  ;;  %v5219_v9 = vmax.f32 %v4951_v18, 0.0 }
0x1f0f   :  { %v4914_v47 = vadd.f32 %v4913_v60, %v4653_v2  ;;  %v4957_v3 = vadd.f32 %v4956_v38, %v4661_v28  ;;  %v5218_v13 = vmax.f32 %v4910_v54, 0.0  ;;  %v5220_v30 = vmax.f32 %v4953_v55, 0.0  ;;  %v8098_v60 = vld [vmem:[#allocation19 + $0x1d0] sm:$0xff]  }
0x1f10   :  { %v5233_v11 = vmax.f32 %v4912_v48, 0.0  ;;  %v5235_v17 = vmax.f32 %v4955_v59, 0.0  ;;  %v4685_v18 = vrot.slane %v3514_v32, %v9188_v58  ;;  %v4693_v54 = vrot.slane %v3516_v43, %v9188_v58  ;;  %v8097_v59 = vld [vmem:[#allocation19 + $0x150] sm:$0xff]  }
0x1f11   :  { %v5234_v15 = vmax.f32 %v4914_v47, 0.0  ;;  %v5236_v37 = vmax.f32 %v4957_v3, 0.0 }
0x1f12   :  { %v5249_v26 = vpack.c.bf16 %v5233_v11, %v5217_v1  ;;  %v5251_v12 = vpack.c.bf16 %v5235_v17, %v5219_v9  ;;  %v3517_v1 = vld [vmem:[#allocation20 + $0x60] sm:$0xff] }
0x1f13   :  { %v5250_v16 = vpack.c.bf16 %v5234_v15, %v5218_v13  ;;  %v5252_v20 = vpack.c.bf16 %v5236_v37, %v5220_v30  ;;  %v4993_v33 = vpop.f32.mrb[108].mxu0  ;;  %v5036_v45 = vpop.f32.mrb[112].mxu1  ;;  %v8100_v30 = vld [vmem:[#allocation19 + $0x190] sm:$0xff]   ;;  %v3518_v37 = vld [vmem:[#allocation20 + $0x68] sm:$0xff] }
0x1f14   :  { %v4994_v23 = vadd.f32 %v4993_v33, %v4665_v63  ;;  %v5037_v61 = vadd.f32 %v5036_v45, %v4673_v44  ;;  %v4995_v41 = vpop.f32.mrb[109].mxu0  ;;  %v5038_v24 = vpop.f32.mrb[113].mxu1  ;;  %v3519_v15 = vld [vmem:[#allocation20 + $0x70] sm:$0xff]  ;;  %v3520_v33 = vld [vmem:[#allocation20 + $0x78] sm:$0xff]  ;;  %v4701_v43 = vrot.slane %v3518_v37, %v9188_v58 }
0x1f15   :  { %v4996_v31 = vadd.f32 %v4995_v41, %v4669_v0  ;;  %v5039_v46 = vadd.f32 %v5038_v24, %v4677_v57  ;;  %v4997_v2 = vpop.f32.mrb[110].mxu0  ;;  %v5040_v28 = vpop.f32.mrb[114].mxu1  ;;  %6325 = vmatprep.mubr.bf16.mxu0 %v5250_v16  ;;  %6366 = vmatprep.mubr.bf16.mxu1 %v5252_v20  ;;  %v8101_v16 = vld [vmem:[#allocation19 + $0x158] sm:$0xff]  }
0x1f16   :  { %v4998_v50 = vadd.f32 %v4997_v2, %v4665_v63  ;;  %v5041_v35 = vadd.f32 %v5040_v28, %v4673_v44  ;;  %v4999_v29 = vpop.f32.mrb[111].mxu0  ;;  %v5042_v14 = vpop.f32.mrb[115].mxu1  ;;  %6326 = vmatmul.mubr.bf16.vlgmr.msra.gmra.mrb[120].mxu0 %v5249_v26  ;;  %6367 = vmatmul.mubr.bf16.vlgmr.msra.gmra.mrb[124].mxu1 %v5251_v12  ;;  %v5221_v55 = vmax.f32 %v4994_v23, 0.0  ;;  %v5223_v56 = vmax.f32 %v5037_v61, 0.0  ;;  %v8102_v20 = vld [vmem:[#allocation19 + $0x1d8] sm:$0xff]  }
0x1f17   :  { %v5000_v19 = vadd.f32 %v4999_v29, %v4669_v0  ;;  %v5043_v51 = vadd.f32 %v5042_v14, %v4677_v57  ;;  %7454 = vmatpush3.bf16.msra.mxu0 %v8091_v22  ;;  %7476 = vmatpush3.bf16.msra.mxu1 %v8092_v4  ;;  %v5222_v38 = vmax.f32 %v4996_v31, 0.0  ;;  %v5224_v63 = vmax.f32 %v5039_v46, 0.0  ;;  %v8099_v57 = vld [vmem:[#allocation19 + $0x110] sm:$0xff]   ;;  %v8103_v2 = vld [vmem:[#allocation19 + $0x118] sm:$0xff]  }
0x1f18   :  { %v5237_v25 = vmax.f32 %v4998_v50, 0.0  ;;  %v5239_v48 = vmax.f32 %v5041_v35, 0.0  ;;  %7455 = vmatprep.subr.bf16.mxu0 %v8093_v34  ;;  %7477 = vmatprep.subr.bf16.mxu1 %v8094_v21  ;;  %v4697_v23 = vrot.slane %v3517_v1, %v9188_v58  ;;  %v4705_v21 = vrot.slane %v3519_v15, %v9188_v58  ;;  %v8104_v28 = vld [vmem:[#allocation19 + $0x198] sm:$0xff]   ;;  %v8110_v1 = vld [vmem:[#allocation19 + $0x1e8] sm:$0xff]  }
0x1f19   :  { %v5238_v44 = vmax.f32 %v5000_v19, 0.0  ;;  %v5240_v47 = vmax.f32 %v5043_v51, 0.0  ;;  %v4709_v50 = vrot.slane %v3520_v33, %v9188_v58 }
0x1f1a   :  { %v9528_v3 = vpack.c.bf16 %v5237_v25, %v5221_v55  ;;  %v9530_v0 = vpack.c.bf16 %v5239_v48, %v5223_v56 }
0x1f1b   :  { %v5254_v9 = vpack.c.bf16 %v5238_v44, %v5222_v38  ;;  %v5256_v11 = vpack.c.bf16 %v5240_v47, %v5224_v63  ;;  %7456 = vmatpush3.bf16.msra.mxu0 %v8095_v52  ;;  %7478 = vmatpush3.bf16.msra.mxu1 %v8096_v53  ;;  %v5079_v17 = vpop.f32.mrb[112].mxu0  ;;  %v5122_v13 = vpop.f32.mrb[116].mxu1 }
0x1f1c   :  { %v5080_v8 = vadd.f32 %v5079_v17, %v9523_v36  ;;  %v5123_v26 = vadd.f32 %v5122_v13, %v4689_v49  ;;  %v5081_v12 = vpop.f32.mrb[113].mxu0  ;;  %v5124_v5 = vpop.f32.mrb[117].mxu1  ;;  %7457 = vmatprep.subr.bf16.mxu0 %v8097_v59  ;;  %7479 = vmatprep.subr.bf16.mxu1 %v8098_v60  ;;  %v8107_v59 = vld [vmem:[#allocation19 + $0x120] sm:$0xff]  }
0x1f1d   :  { %v5082_v45 = vadd.f32 %v5081_v12, %v4685_v18  ;;  %v5125_v22 = vadd.f32 %v5124_v5, %v4693_v54  ;;  %v5083_v4 = vpop.f32.mrb[114].mxu0  ;;  %v5126_v32 = vpop.f32.mrb[118].mxu1  ;;  %6407 = vmatprep.mubr.bf16.mxu0 %v5254_v9  ;;  %6448 = vmatprep.mubr.bf16.mxu1 %v5256_v11  ;;  %v8108_v60 = vld [vmem:[#allocation19 + $0x1a0] sm:$0xff]   ;;  %v8111_v5 = vld [vmem:[#allocation19 + $0x128] sm:$0xff]  }
0x1f1e   :  { %v5084_v61 = vadd.f32 %v5083_v4, %v9523_v36  ;;  %v5127_v41 = vadd.f32 %v5126_v32, %v4689_v49  ;;  %v5085_v24 = vpop.f32.mrb[115].mxu0  ;;  %v5128_v34 = vpop.f32.mrb[119].mxu1  ;;  %v5225_v35 = vmax.f32 %v5080_v8, 0.0  ;;  %v5227_v29 = vmax.f32 %v5123_v26, 0.0  ;;  %v8105_v36 = vld [vmem:[#allocation19 + $0x160] sm:$0xff]   ;;  %v8113_v4 = vld [vmem:[#allocation19 + $0x170] sm:$0xff]  }
0x1f1f   :  { %v5086_v31 = vadd.f32 %v5085_v24, %v4685_v18  ;;  %v5129_v46 = vadd.f32 %v5128_v34, %v4693_v54  ;;  %7458 = vmatpush3.bf16.msra.mxu0 %v8099_v57  ;;  %7480 = vmatpush3.bf16.msra.mxu1 %v8100_v30  ;;  %v8106_v49 = vld [vmem:[#allocation19 + $0x1e0] sm:$0xff]   ;;  %v5226_v51 = vmax.f32 %v5082_v45, 0.0  ;;  %v5228_v52 = vmax.f32 %v5125_v22, 0.0  ;;  %v8109_v57 = vld [vmem:[#allocation19 + $0x168] sm:$0xff]   ;;  %v8114_v32 = vld [vmem:[#allocation19 + $0x1f0] sm:$0xff]  }
0x1f20   :  { %v5241_v14 = vmax.f32 %v5084_v61, 0.0  ;;  %v5243_v19 = vmax.f32 %v5127_v41, 0.0  ;;  %7459 = vmatprep.subr.bf16.mxu0 %v8101_v16  ;;  %7481 = vmatprep.subr.bf16.mxu1 %v8102_v20  ;;  %v8112_v16 = vld [vmem:[#allocation19 + $0x1a8] sm:$0xff]  }
0x1f21   :  { %v5242_v53 = vmax.f32 %v5086_v31, 0.0  ;;  %v5244_v55 = vmax.f32 %v5129_v46, 0.0  ;;  %v8115_v46 = vld [vmem:[#allocation19 + $0x130] sm:$0xff]  }
0x1f22   :  { %v9538_v18 = vpack.c.bf16 %v5241_v14, %v5225_v35  ;;  %v9540_v54 = vpack.c.bf16 %v5243_v19, %v5227_v29  ;;  %v8119_v35 = vld [vmem:[#allocation19 + $0x138] sm:$0xff]   ;;  %v8121_v14 = vld [vmem:[#allocation19 + $0x240] sm:$0xff]  }
0x1f23   :  { %v9542_v56 = vpack.c.bf16 %v5242_v53, %v5226_v51  ;;  %v9544_v25 = vpack.c.bf16 %v5244_v55, %v5228_v52  ;;  %7460 = vmatpush3.bf16.msra.mxu0 %v8103_v2  ;;  %7482 = vmatpush3.bf16.msra.mxu1 %v8104_v28  ;;  %v5165_v58 = vpop.f32.mrb[116].mxu0  ;;  %v5208_v48 = vpop.f32.mrb[120].mxu1  ;;  %v8116_v2 = vld [vmem:[#allocation19 + $0x1b0] sm:$0xff]   ;;  %v8117_v28 = vld [vmem:[#allocation19 + $0x178] sm:$0xff]   ;;  %v8122_v19 = vld [vmem:[#allocation19 + $0x2c0] sm:$0xff]  }
0x1f24   :  { %v5166_v38 = vadd.f32 %v5165_v58, %v4697_v23  ;;  %v5209_v63 = vadd.f32 %v5208_v48, %v4705_v21  ;;  %v5167_v44 = vpop.f32.mrb[117].mxu0  ;;  %v5210_v47 = vpop.f32.mrb[121].mxu1  ;;  %7461 = vmatprep.subr.bf16.mxu0 %v8105_v36  ;;  %7483 = vmatprep.subr.bf16.mxu1 %v8106_v49  ;;  %v8120_v29 = vld [vmem:[#allocation19 + $0x1b8] sm:$0xff]   ;;  %v8123_v36 = vld [vmem:[#allocation19 + $0x200] sm:$0xff]   ;;  %v8125_v51 = vld [vmem:[#allocation19 + $0x248] sm:$0xff]  }
0x1f25   :  { %v5168_v9 = vadd.f32 %v5167_v44, %v4701_v43  ;;  %v5211_v11 = vadd.f32 %v5210_v47, %v4709_v50  ;;  %v5169_v17 = vpop.f32.mrb[118].mxu0  ;;  %v5212_v13 = vpop.f32.mrb[122].mxu1  ;;  %v8124_v49 = vld [vmem:[#allocation19 + $0x280] sm:$0xff]   ;;  %v8126_v52 = vld [vmem:[#allocation19 + $0x2c8] sm:$0xff]   ;;  %v8129_v58 = vld [vmem:[#allocation19 + $0x250] sm:$0xff]  }
0x1f26   :  { %v5170_v30 = vadd.f32 %v5169_v17, %v4697_v23  ;;  %v5213_v15 = vadd.f32 %v5212_v13, %v4705_v21  ;;  %v5171_v37 = vpop.f32.mrb[119].mxu0  ;;  %v5214_v8 = vpop.f32.mrb[123].mxu1  ;;  %v5229_v20 = vmax.f32 %v5166_v38, 0.0  ;;  %v5231_v33 = vmax.f32 %v5209_v63, 0.0  ;;  %v8127_v53 = vld [vmem:[#allocation19 + $0x208] sm:$0xff]   ;;  %v8130_v48 = vld [vmem:[#allocation19 + $0x2d0] sm:$0xff]  }
0x1f27   :  { %v5172_v26 = vadd.f32 %v5171_v37, %v4701_v43  ;;  %v5215_v12 = vadd.f32 %v5214_v8, %v4709_v50  ;;  %7462 = vmatpush3.bf16.msra.mxu0 %v8107_v59  ;;  %7484 = vmatpush3.bf16.msra.mxu1 %v8108_v60  ;;  %v5230_v61 = vmax.f32 %v5168_v9, 0.0  ;;  %v5232_v41 = vmax.f32 %v5211_v11, 0.0  ;;  %v8118_v50 = vld [vmem:[#allocation19 + $0x1f8] sm:$0xff]   ;;  %v8128_v55 = vld [vmem:[#allocation19 + $0x288] sm:$0xff]   ;;  %v8131_v59 = vld [vmem:[#allocation19 + $0x210] sm:$0xff]  }
0x1f28   :  { %v5245_v45 = vmax.f32 %v5170_v30, 0.0  ;;  %v5247_v22 = vmax.f32 %v5213_v15, 0.0  ;;  %7463 = vmatprep.subr.bf16.mxu0 %v8109_v57  ;;  %7485 = vmatprep.subr.bf16.mxu1 %v8110_v1  ;;  %v8132_v60 = vld [vmem:[#allocation19 + $0x290] sm:$0xff]   ;;  %v8135_v38 = vld [vmem:[#allocation19 + $0x218] sm:$0xff]   ;;  %v8137_v63 = vld [vmem:[#allocation19 + $0x260] sm:$0xff]  }
0x1f29   :  { %v5246_v23 = vmax.f32 %v5172_v26, 0.0  ;;  %v5248_v24 = vmax.f32 %v5215_v12, 0.0  ;;  %v8139_v44 = vld [vmem:[#allocation19 + $0x220] sm:$0xff]   ;;  %v8141_v57 = vld [vmem:[#allocation19 + $0x268] sm:$0xff]   ;;  %v8145_v17 = vld [vmem:[#allocation19 + $0x270] sm:$0xff]  }
0x1f2a   :  { %v9546_v34 = vpack.c.bf16 %v5245_v45, %v5229_v20  ;;  %v9548_v21 = vpack.c.bf16 %v5247_v22, %v5231_v33  ;;  %v8140_v47 = vld [vmem:[#allocation19 + $0x2a0] sm:$0xff]   ;;  %v8142_v1 = vld [vmem:[#allocation19 + $0x2e8] sm:$0xff]   ;;  %v8146_v13 = vld [vmem:[#allocation19 + $0x2f0] sm:$0xff]  }
0x1f2b   :  { %v9550_v43 = vpack.c.bf16 %v5246_v23, %v5230_v61  ;;  %v9552_v31 = vpack.c.bf16 %v5248_v24, %v5232_v41  ;;  %7464 = vmatpush3.bf16.msra.mxu0 %v8111_v5  ;;  %7486 = vmatpush3.bf16.msra.mxu1 %v8112_v16  ;;  %v8143_v9 = vld [vmem:[#allocation19 + $0x228] sm:$0xff]   ;;  %v8147_v30 = vld [vmem:[#allocation19 + $0x230] sm:$0xff]   ;;  %v8149_v37 = vld [vmem:[#allocation19 + $0x278] sm:$0xff]  }
0x1f2c   :  { %7465 = vmatprep.subr.bf16.mxu0 %v8113_v4  ;;  %7487 = vmatprep.subr.bf16.mxu1 %v8114_v32  ;;  %v8144_v11 = vld [vmem:[#allocation19 + $0x2a8] sm:$0xff]   ;;  %v8148_v15 = vld [vmem:[#allocation19 + $0x2b0] sm:$0xff]   ;;  %v8150_v8 = vld [vmem:[#allocation19 + $0x2f8] sm:$0xff]  }
0x1f2d   :  { %v8151_v26 = vld [vmem:[#allocation19 + $0x238] sm:$0xff]   ;;  %v8153_v5 = vld [vmem:[#allocation19 + $0x340] sm:$0xff]   ;;  %v8157_v45 = vld [vmem:[#allocation19 + $0x348] sm:$0xff]  }
0x1f2e   :  { %v8152_v12 = vld [vmem:[#allocation19 + $0x2b8] sm:$0xff]   ;;  %v8154_v16 = vld [vmem:[#allocation19 + $0x3c0] sm:$0xff]   ;;  %v8158_v22 = vld [vmem:[#allocation19 + $0x3c8] sm:$0xff]  }
0x1f2f   :  { %7466 = vmatpush3.bf16.msra.mxu0 %v8115_v46  ;;  %7488 = vmatpush3.bf16.msra.mxu1 %v8116_v2  ;;  %v8155_v20 = vld [vmem:[#allocation19 + $0x300] sm:$0xff]   ;;  %v8159_v4 = vld [vmem:[#allocation19 + $0x308] sm:$0xff]   ;;  %v8161_v61 = vld [vmem:[#allocation19 + $0x350] sm:$0xff]  }
0x1f30   :  { %7467 = vmatprep.subr.bf16.mxu0 %v8117_v28  ;;  %7489 = vmatprep.subr.bf16.mxu1 %v8118_v50  ;;  %v8156_v33 = vld [vmem:[#allocation19 + $0x380] sm:$0xff]   ;;  %v8160_v32 = vld [vmem:[#allocation19 + $0x388] sm:$0xff]   ;;  %v8162_v41 = vld [vmem:[#allocation19 + $0x3d0] sm:$0xff]  }
0x1f31   :  { %v8163_v23 = vld [vmem:[#allocation19 + $0x310] sm:$0xff]   ;;  %v8165_v24 = vld [vmem:[#allocation19 + $0x358] sm:$0xff]   ;;  %v8169_v2 = vld [vmem:[#allocation19 + $0x360] sm:$0xff]  }
0x1f32   :  { %v8167_v46 = vld [vmem:[#allocation19 + $0x318] sm:$0xff]   ;;  %v8170_v28 = vld [vmem:[#allocation19 + $0x3e0] sm:$0xff]  }
0x1f33   :  { %7468 = vmatpush3.bf16.msra.mxu0 %v8119_v35  ;;  %7490 = vmatpush3.bf16.msra.mxu1 %v8120_v29  ;;  %v8172_v50 = vld [vmem:[#allocation19 + $0x3a0] sm:$0xff]   ;;  %v8173_v35 = vld [vmem:[#allocation19 + $0x368] sm:$0xff]  }
0x1f34   :  { %7497 = vmatprep.subr.bf16.mxu0 %v8121_v14  ;;  %7519 = vmatprep.subr.bf16.mxu1 %v8122_v19  ;;  %v8174_v29 = vld [vmem:[#allocation19 + $0x3e8] sm:$0xff]  }
0x1f35   :  { %v8175_v14 = vld [vmem:[#allocation19 + $0x328] sm:$0xff]  }
0x1f36   :  { %6408 = vmatmul.mubr.bf16.vlgmr.msra.gmra.mrb[124].mxu0 %v9528_v3  ;;  %6449 = vmatmul.mubr.bf16.vlgmr.msra.gmra.mrb[128].mxu1 %v9530_v0  ;;  %v8133_v3 = vld [vmem:[#allocation19 + $0x258] sm:$0xff]   ;;  %v8176_v19 = vld [vmem:[#allocation19 + $0x3a8] sm:$0xff]  }
0x1f37   :  { %7498 = vmatpush3.bf16.msra.mxu0 %v8123_v36  ;;  %6489 = vmatprep.mubr.bf16.mxu0 %v9542_v56  ;;  %v8134_v0 = vld [vmem:[#allocation19 + $0x2d8] sm:$0xff]   ;;  %v8177_v36 = vld [vmem:[#allocation19 + $0x370] sm:$0xff]  }
0x1f38   :  { %7520 = vmatpush3.bf16.msra.mxu1 %v8124_v49  ;;  %6530 = vmatprep.mubr.bf16.mxu1 %v9544_v25  ;;  %v8136_v56 = vld [vmem:[#allocation19 + $0x298] sm:$0xff]   ;;  %v8138_v25 = vld [vmem:[#allocation19 + $0x2e0] sm:$0xff]   ;;  %v8178_v49 = vld [vmem:[#allocation19 + $0x3f0] sm:$0xff]  }
0x1f39   :  { %7499 = vmatprep.subr.bf16.mxu0 %v8125_v51  ;;  %7521 = vmatprep.subr.bf16.mxu1 %v8126_v52  ;;  %v8179_v51 = vld [vmem:[#allocation19 + $0x330] sm:$0xff]  }
0x1f3a   :  { %v8180_v52 = vld [vmem:[#allocation19 + $0x3b0] sm:$0xff]  }
0x1f3b   :  { %7500 = vmatpush3.bf16.msra.mxu0 %v8127_v53  ;;  %v8181_v53 = vld [vmem:[#allocation19 + $0x378] sm:$0xff]  }
0x1f3c   :  { %7522 = vmatpush3.bf16.msra.mxu1 %v8128_v55  ;;  %7501 = vmatprep.subr.bf16.mxu0 %v8129_v58  ;;  %v8182_v55 = vld [vmem:[#allocation19 + $0x3f8] sm:$0xff]  }
0x1f3d   :  { %7523 = vmatprep.subr.bf16.mxu1 %v8130_v48  ;;  %v8183_v58 = vld [vmem:[#allocation19 + $0x338] sm:$0xff]  }
0x1f3e   :  { %v8184_v48 = vld [vmem:[#allocation19 + $0x3b8] sm:$0xff]  }
0x1f3f   :  { %7502 = vmatpush3.bf16.msra.mxu0 %v8131_v59 }
0x1f40   :  { %7524 = vmatpush3.bf16.msra.mxu1 %v8132_v60  ;;  %7503 = vmatprep.subr.bf16.mxu0 %v8133_v3  ;;  %v5524_v3 = vrot.slane %v9511_v39, %v2363_v40 }
0x1f41   :  { %7525 = vmatprep.subr.bf16.mxu1 %v8134_v0 }
0x1f43   :  { %7504 = vmatpush3.bf16.msra.mxu0 %v8135_v38 }
0x1f44   :  { %7526 = vmatpush3.bf16.msra.mxu1 %v8136_v56  ;;  %7505 = vmatprep.subr.bf16.mxu0 %v8137_v63 }
0x1f45   :  { %7527 = vmatprep.subr.bf16.mxu1 %v8138_v25 }
0x1f47   :  { %7506 = vmatpush3.bf16.msra.mxu0 %v8139_v44 }
0x1f48   :  { %7528 = vmatpush3.bf16.msra.mxu1 %v8140_v47  ;;  %7507 = vmatprep.subr.bf16.mxu0 %v8141_v57 }
0x1f49   :  { %7529 = vmatprep.subr.bf16.mxu1 %v8142_v1 }
0x1f4b   :  { %7508 = vmatpush3.bf16.msra.mxu0 %v8143_v9 }
0x1f4c   :  { %7530 = vmatpush3.bf16.msra.mxu1 %v8144_v11  ;;  %7509 = vmatprep.subr.bf16.mxu0 %v8145_v17 }
0x1f4d   :  { %7531 = vmatprep.subr.bf16.mxu1 %v8146_v13 }
0x1f4f   :  { %7510 = vmatpush3.bf16.msra.mxu0 %v8147_v30 }
0x1f50   :  { %7532 = vmatpush3.bf16.msra.mxu1 %v8148_v15  ;;  %7511 = vmatprep.subr.bf16.mxu0 %v8149_v37 }
0x1f51   :  { %7533 = vmatprep.subr.bf16.mxu1 %v8150_v8 }
0x1f53   :  { %7512 = vmatpush3.bf16.msra.mxu0 %v8151_v26 }
0x1f54   :  { %7534 = vmatpush3.bf16.msra.mxu1 %v8152_v12  ;;  %7541 = vmatprep.subr.bf16.mxu0 %v8153_v5 }
0x1f55   :  { %7563 = vmatprep.subr.bf16.mxu1 %v8154_v16 }
0x1f56   :  { %6490 = vmatmul.mubr.bf16.vlgmr.msra.gmra.mrb[128].mxu0 %v9538_v18  ;;  %v8164_v18 = vld [vmem:[#allocation19 + $0x390] sm:$0xff]  }
0x1f57   :  { %6531 = vmatmul.mubr.bf16.vlgmr.msra.gmra.mrb[132].mxu1 %v9540_v54  ;;  %7542 = vmatpush3.bf16.msra.mxu0 %v8155_v20  ;;  %v8166_v54 = vld [vmem:[#allocation19 + $0x3d8] sm:$0xff]  }
0x1f58   :  { %6571 = vmatprep.mubr.bf16.mxu0 %v9550_v43  ;;  %7564 = vmatpush3.bf16.msra.mxu1 %v8156_v33  ;;  %v8168_v43 = vld [vmem:[#allocation19 + $0x398] sm:$0xff]  }
0x1f59   :  { %6612 = vmatprep.mubr.bf16.mxu1 %v9552_v31  ;;  %7543 = vmatprep.subr.bf16.mxu0 %v8157_v45  ;;  %v8171_v31 = vld [vmem:[#allocation19 + $0x320] sm:$0xff]  }
0x1f5a   :  { %7565 = vmatprep.subr.bf16.mxu1 %v8158_v22 }
0x1f5b   :  { %7544 = vmatpush3.bf16.msra.mxu0 %v8159_v4 }
0x1f5c   :  { %7566 = vmatpush3.bf16.msra.mxu1 %v8160_v32  ;;  %7545 = vmatprep.subr.bf16.mxu0 %v8161_v61 }
0x1f5d   :  { %7567 = vmatprep.subr.bf16.mxu1 %v8162_v41 }
0x1f5f   :  { %7546 = vmatpush3.bf16.msra.mxu0 %v8163_v23 }
0x1f60   :  { %7568 = vmatpush3.bf16.msra.mxu1 %v8164_v18  ;;  %7547 = vmatprep.subr.bf16.mxu0 %v8165_v24 }
0x1f61   :  { %7569 = vmatprep.subr.bf16.mxu1 %v8166_v54 }
0x1f63   :  { %7548 = vmatpush3.bf16.msra.mxu0 %v8167_v46 }
0x1f64   :  { %7570 = vmatpush3.bf16.msra.mxu1 %v8168_v43  ;;  %7549 = vmatprep.subr.bf16.mxu0 %v8169_v2 }
0x1f65   :  { %7571 = vmatprep.subr.bf16.mxu1 %v8170_v28 }
0x1f67   :  { %7550 = vmatpush3.bf16.msra.mxu0 %v8171_v31 }
0x1f68   :  { %7572 = vmatpush3.bf16.msra.mxu1 %v8172_v50  ;;  %7551 = vmatprep.subr.bf16.mxu0 %v8173_v35 }
0x1f69   :  { %7573 = vmatprep.subr.bf16.mxu1 %v8174_v29 }
0x1f6b   :  { %7552 = vmatpush3.bf16.msra.mxu0 %v8175_v14 }
0x1f6c   :  { %7574 = vmatpush3.bf16.msra.mxu1 %v8176_v19  ;;  %7553 = vmatprep.subr.bf16.mxu0 %v8177_v36 }
0x1f6d   :  { %7575 = vmatprep.subr.bf16.mxu1 %v8178_v49 }
0x1f6f   :  { %7554 = vmatpush3.bf16.msra.mxu0 %v8179_v51 }
0x1f70   :  { %7576 = vmatpush3.bf16.msra.mxu1 %v8180_v52  ;;  %7555 = vmatprep.subr.bf16.mxu0 %v8181_v53 }
0x1f71   :  { %7577 = vmatprep.subr.bf16.mxu1 %v8182_v55 }
0x1f73   :  { %7556 = vmatpush3.bf16.msra.mxu0 %v8183_v58 }
0x1f74   :  { %7578 = vmatpush3.bf16.msra.mxu1 %v8184_v48  ;;  %7831 = vmatprep.subr.bf16.mxu0 %v8637_v10 }
0x1f76   :  { %6572 = vmatmul.mubr.bf16.vlgmr.msra.gmra.mrb[132].mxu0 %v9546_v34 }
0x1f77   :  { %6613 = vmatmul.mubr.bf16.vlgmr.msra.gmra.mrb[136].mxu1 %v9548_v21  ;;  %7835 = vmatprep.mubr.msk.bf16.mxu0 %vm8638_vm3, %v8637_v10 }
0x1fe9   :  { %v7425_v59 = vpop.f32.mrb[120].mxu0  ;;  %v7447_v60 = vpop.f32.mrb[124].mxu1 }
0x1fea   :  { %v7426_v0 = vpop.f32.mrb[121].mxu0  ;;  %v7448_v38 = vpop.f32.mrb[125].mxu1 }
0x1feb   :  { %v7427_v56 = vadd.f32 %v7426_v0, %v7425_v59  ;;  %v7449_v63 = vadd.f32 %v7448_v38, %v7447_v60  ;;  %v7428_v25 = vpop.f32.mrb[122].mxu0  ;;  %v7450_v44 = vpop.f32.mrb[126].mxu1 }
0x1fec   :  { %v7429_v47 = vpop.f32.mrb[123].mxu0  ;;  %v7451_v57 = vpop.f32.mrb[127].mxu1 }
0x1fed   :  { %v6328_v34 = vadd.f32 %v7427_v56, %v5524_v3  ;;  %v7430_v1 = vadd.f32 %v7429_v47, %v7428_v25  ;;  %v7452_v21 = vadd.f32 %v7451_v57, %v7450_v44 }
0x1fef   :  { %v6369_v9 = vadd.f32 %v7449_v63, %v6328_v34  ;;  %v6331_v11 = vadd.f32 %v7430_v1, %v5524_v3 }
0x1ff1   :  { %v6372_v17 = vadd.f32 %v7452_v21, %v6331_v11 }
0x2009   :  { %v7469_v13 = vpop.f32.mrb[124].mxu0  ;;  %v7491_v30 = vpop.f32.mrb[128].mxu1 }
0x200a   :  { %v7470_v15 = vpop.f32.mrb[125].mxu0  ;;  %v7492_v37 = vpop.f32.mrb[129].mxu1 }
0x200b   :  { %v7471_v8 = vadd.f32 %v7470_v15, %v7469_v13  ;;  %v7493_v40 = vadd.f32 %v7492_v37, %v7491_v30  ;;  %v7472_v26 = vpop.f32.mrb[126].mxu0  ;;  %v7494_v12 = vpop.f32.mrb[130].mxu1 }
0x200c   :  { %v7473_v5 = vpop.f32.mrb[127].mxu0  ;;  %v7495_v16 = vpop.f32.mrb[131].mxu1 }
0x200d   :  { %v6410_v20 = vadd.f32 %v7471_v8, %v6369_v9  ;;  %v7474_v33 = vadd.f32 %v7473_v5, %v7472_v26  ;;  %v7496_v45 = vadd.f32 %v7495_v16, %v7494_v12 }
0x200f   :  { %v6451_v22 = vadd.f32 %v7493_v40, %v6410_v20  ;;  %v6413_v4 = vadd.f32 %v7474_v33, %v6372_v17  ;;  %v8185_v17 = vld [vmem:[#allocation22] sm:$0xff]  }
0x2010   :  { %7832 = vmatpush3.bf16.msra.mxu0 %v8185_v17 }
0x2011   :  { %v6454_v32 = vadd.f32 %v7496_v45, %v6413_v4  ;;  %7833 = vmatprep.subr.bf16.mxu0 %v8637_v10  ;;  %v6656_v10 = vrot.slane %v9511_v39, %v3495_v6 }
0x2029   :  { %v7513_v61 = vpop.f32.mrb[128].mxu0 }
0x202a   :  { %v7535_v41 = vpop.f32.mrb[132].mxu1  ;;  %v7514_v23 = vpop.f32.mrb[129].mxu0 }
0x202b   :  { %v7515_v18 = vadd.f32 %v7514_v23, %v7513_v61  ;;  %v7536_v24 = vpop.f32.mrb[133].mxu1  ;;  %v7516_v54 = vpop.f32.mrb[130].mxu0 }
0x202c   :  { %v7537_v46 = vadd.f32 %v7536_v24, %v7535_v41  ;;  %v7538_v43 = vpop.f32.mrb[134].mxu1  ;;  %v7517_v2 = vpop.f32.mrb[131].mxu0  ;;  %v6662_v24 = vrot.slane %v9511_v39, %v3501_v7 }
0x202d   :  { %v6492_v28 = vadd.f32 %v7515_v18, %v6451_v22  ;;  %v7518_v31 = vadd.f32 %v7517_v2, %v7516_v54  ;;  %v7539_v50 = vpop.f32.mrb[135].mxu1 }
0x202e   :  { %v7540_v35 = vadd.f32 %v7539_v50, %v7538_v43 }
0x202f   :  { %v6533_v29 = vadd.f32 %v7537_v46, %v6492_v28  ;;  %v6495_v14 = vadd.f32 %v7518_v31, %v6454_v32  ;;  %v7143_v28 = vld [vmem:[#allocation23] ss:$0 sm:$0xff] }
0x2031   :  { %v6536_v19 = vadd.f32 %v7540_v35, %v6495_v14 }
0x2049   :  { %v7557_v36 = vpop.f32.mrb[132].mxu0 }
0x204a   :  { %v7579_v49 = vpop.f32.mrb[136].mxu1  ;;  %v7558_v51 = vpop.f32.mrb[133].mxu0 }
0x204b   :  { %v7559_v52 = vadd.f32 %v7558_v51, %v7557_v36  ;;  %v7580_v53 = vpop.f32.mrb[137].mxu1  ;;  %v7560_v55 = vpop.f32.mrb[134].mxu0 }
0x204c   :  { %v7581_v58 = vadd.f32 %v7580_v53, %v7579_v49  ;;  %v7582_v48 = vpop.f32.mrb[138].mxu1  ;;  %v7561_v59 = vpop.f32.mrb[135].mxu0 }
0x204d   :  { %v6574_v60 = vadd.f32 %v7559_v52, %v6533_v29  ;;  %v7562_v3 = vadd.f32 %v7561_v59, %v7560_v55  ;;  %v7583_v0 = vpop.f32.mrb[139].mxu1 }
0x204e   :  { %v7584_v38 = vadd.f32 %v7583_v0, %v7582_v48 }
0x204f   :  { %v6615_v56 = vadd.f32 %v7581_v58, %v6574_v60  ;;  %v6577_v63 = vadd.f32 %v7562_v3, %v6536_v19 }
0x2051   :  { %v6621_v25 = vadd.f32 %v6615_v56, %v9481_v42  ;;  %v6618_v44 = vadd.f32 %v7584_v38, %v6577_v63  ;;  %v8186_v42 = vld [vmem:[#allocation22 + $0x8] sm:$0xff]  }
0x2052   :  { %7834 = vmatpush3.bf16.msra.mxu0 %v8186_v42 }
0x2053   :  { %v6622_v47 = vadd.f32 %v6618_v44, %v9483_v62  ;;  %v6623_v57 = vsel %vm376_vm4, %v6621_v25, 0.0  ;;  %v6631_v34 = vmul.f32 %v6621_v25, %v6621_v25 }
0x2054   :  { %6624 = vadd.xlane.f32.xlu1 %v6623_v57 }
0x2055   :  { %v6626_v1 = vsel %vm376_vm4, %v6622_v47, 0.0  ;;  %v6632_v21 = vmul.f32 %v6622_v47, %v6622_v47  ;;  %v6633_v9 = vsel %vm376_vm4, %v6631_v34, 0.0 }
0x2056   :  { %6627 = vadd.xlane.f32.xlu0 %v6626_v1 }
0x2057   :  { %v6636_v11 = vsel %vm376_vm4, %v6632_v21, 0.0 }
0x2058   :  { %6634 = vadd.xlane.f32.xlu1 %v6633_v9 }
0x205a   :  { %6637 = vadd.xlane.f32.xlu0 %v6636_v11 }
0x20e1   :  { %v6625_v62 = vpop.xlane.xlu1 %6624 }
0x20e2   :  { %v6629_v13 = vmul.f32 0.03125, %v6625_v62 }
0x20e3   :  { %v6628_v30 = vpop.xlane.xlu0 %6627 }
0x20e4   :  { %v6630_v15 = vmul.f32 0.03125, %v6628_v30  ;;  %v6641_v8 = vmul.f32 %v6629_v13, %v6629_v13  ;;  %v6645_v22 = vsub.f32 %v6621_v25, %v6629_v13 }
0x20e5   :  { %v6635_v37 = vpop.xlane.xlu1 %6634 }
0x20e6   :  { %v6639_v40 = vmul.f32 0.03125, %v6635_v37  ;;  %v6642_v12 = vmul.f32 %v6630_v15, %v6630_v15  ;;  %v6646_v32 = vsub.f32 %v6622_v47, %v6630_v15 }
0x20e7   :  { %v6638_v26 = vpop.xlane.xlu0 %6637 }
0x20e8   :  { %v6643_v5 = vsub.f32 %v6639_v40, %v6641_v8  ;;  %v6640_v16 = vmul.f32 0.03125, %v6638_v26 }
0x20ea   :  { %v6647_v20 = vadd.f32 1e-05, %v6643_v5  ;;  %v6644_v33 = vsub.f32 %v6640_v16, %v6642_v12 }
0x20ec   :  { %8263 = vrsqrt.f32 %v6647_v20  ;;  %v6648_v45 = vadd.f32 1e-05, %v6644_v33 }
0x20ee   :  { %8265 = vrsqrt.f32 %v6648_v45 }
0x20f6   :  { %v8264_v4 = vpop.eup %8263 }
0x20f7   :  { %v6651_v61 = vmul.f32 %v8264_v4, %v6645_v22 }
0x20f8   :  { %v8266_v41 = vpop.eup %8265 }
0x20f9   :  { %v6657_v23 = vmul.f32 %v6656_v10, %v6651_v61  ;;  %v6652_v18 = vmul.f32 %v8266_v41, %v6646_v32 }
0x20fb   :  { %v6658_v54 = vmul.f32 %v6656_v10, %v6652_v18  ;;  %v6663_v46 = vadd.f32 %v6662_v24, %v6657_v23 }
0x20fd   :  { %v6664_v43 = vadd.f32 %v6662_v24, %v6658_v54 }
0x20ff   :  { %v6665_v2 = vpack.c.bf16 %v6664_v43, %v6663_v46 }
0x2101   :  { %7836 = vmatmul.mubr.msk.bf16.vlgmr.msra.gmra.mrb[136].mxu0 %vm376_vm4, %v6665_v2 }
0x21d4   :  { %v6726_v31 = vpop.f32.mrb[136].mxu0 }
0x21d5   :  { %v6727_v6 = vadd.f32 %v7143_v28, %v6726_v31  ;;  %v7837_v50 = vpop.f32.mrb[137].mxu0 }
0x21d6   :  { %v6729_v35 = vpop.f32.mrb[138].mxu0 }
0x21d7   :  { %6733 = vst [vmem:[#allocation25] sm:$0xff] %v6727_v6  ;;  %v6730_v29 = vadd.f32 %v7143_v28, %v6729_v35  ;;  %v7838_v14 = vpop.f32.mrb[139].mxu0 }
0x21d9   :  { %6734 = vst [vmem:[#allocation25 + $0x8] sm:$0xff] %v6730_v29 }
0x21da   :  { %8588 = shalt.err (!%p8585_p4)
}
0x21db   :  { %s8589_s22 = scalar_lea.hbm %s9613_s14, 256 }
0x21dc   :  { %p8590_p5 = scmp.ne.s32.totalorder %s9613_s14, %s8589_s22  ;;  %p8593_p6 = scmp.lt.u32.totalorder %s8589_s22, %s9613_s14 }
0x21de   :  { %p8595_p7 = pnand %p8593_p6, %p8590_p5 }
0x21e0   :  { %8598 = shalt.err (!%p8595_p7)
}
0x21e1   :  { %6746 = dma.vmem_to_hbm [thread:$0]  %s6741_s16, 256, %s9613_s14, [#allocation4], %s8618_s23, %s8618_s23, %s8619_s24  }
0x21e2   :  { %8615 = dma.done.wait [#allocation4], 256  }
0x21e3   :  { %8616 = vsyncadd [#allocation4], 4294967040 }
0x21e4   :  { %6750 = vsyncpa [#allocation3], 1 }
0x21e5   :  { %6751 = vsyncpa [#allocation6], 1 }
0x21e6   :  { %6752 = vsyncpa [#allocation9], 1 }
0x21e7   :  { %6753 = vsyncpa [#allocation12], 1 }
0x21e8   :  { %6754 = vsyncpa [#allocation15], 1 }
0x21e9   :  { %6755 = vsyncpa [#allocation18], 1 }
0x21ea   :  { %6756 = vsyncpa [#allocation21], 1 }
0x21eb   :  { %6757 = vsyncpa [#allocation24], 1 }
0x21ec   :  { %6758 = vsyncpa [#allocation4], 1 }

</bundles_post_ra>
